<compile_context>
chip_gen: v6e
topology: v6e:2x2x1
jax: 0.10.0
libtpu: 0.0.40
codegen_flags: <defaults>
</compile_context>

<pallas_src>
from functools import partial

import jax
import jax.numpy as jnp
from jax.experimental import pallas as pl
from jax.experimental.pallas import tpu as pltpu

BN_EPS = 1e-5  # nn.BatchNorm2d default eps


def _round_up(v, m):
    return -(-v // m) * m


def bn_fold(gamma, beta, mean, var, eps=BN_EPS):
    """Fold inference BatchNorm into a per-channel (scale, shift)."""
    scale = gamma * jax.lax.rsqrt(var + eps)
    shift = beta - mean * scale
    return scale, shift


# ------------------------------ fused kernel --------------------------------

def _dsconv_kernel(xa_ref, xh_ref, wdw_ref, t1_ref, wpw_ref, t2_ref, o_ref, *,
                   K, R, stride, Wo_l, dw_dtype, mxu_dtype):
    """One (batch, row-strip) grid step of depthwise+BN+ReLU6+pointwise+BN.

    xa_ref : (1, stride*R, Cin_p, Wl_in)  main input strip (channels-last, zero-padded)
    xh_ref : (1, Hh,       Cin_p, Wl_in)  bottom halo rows of the strip
    wdw_ref: (K*K, Cin_p, 1)              BN1-scale-folded depthwise taps
    t1_ref : (Cin_p, 1)                   BN1 shift
    wpw_ref: (Cout_p, Cin_p)              BN2-scale-folded pointwise weight (mxu_dtype)
    t2_ref : (Cout_p, 1)                  BN2 shift
    o_ref  : (1, R, Cout_p, Wo_l)         output strip (channels-last, lane-padded)
    """
    sR = stride * R
    taps = wdw_ref[...]                  # (K*K, Cin_p, 1), dw_dtype (hoisted out of loops)
    t1 = t1_ref[...]                     # (Cin_p, 1)  f32
    w2 = wpw_ref[...]                    # (Cout_p, Cin_p) mxu_dtype
    t2 = t2_ref[...]                     # (Cout_p, 1) f32

    for r in range(R):                   # static unroll over the strip's output rows
        acc = None
        for kh in range(K):
            rin = stride * r + kh        # input row inside the strip (static Python int)
            src = xa_ref if rin < sR else xh_ref
            row = rin if rin < sR else rin - sR
            for kw in range(K):
                if stride == 1:
                    win = src[0, row, :, pl.ds(kw, Wo_l)]
                else:  # only valid anchors for stride>1: strided lane window
                    win = src[0, row, :, pl.ds(kw, Wo_l, stride=stride)]
                tap = win.astype(dw_dtype) * taps[kh * K + kw]   # (Cin_p, Wo_l)
                acc = tap if acc is None else acc + tap
        # folded BN1 shift + ReLU6 (f32 on the VPU)
        h = jnp.clip(acc.astype(jnp.float32) + t1, 0.0, 6.0)     # (Cin_p, Wo_l)
        # pointwise 1x1 conv + folded BN2 on the MXU (f32 accumulation), lane-dense store
        y = jnp.dot(w2, h.astype(mxu_dtype), preferred_element_type=jnp.float32)
        o_ref[0, r] = (y + t2).astype(o_ref.dtype)


# ------------------------------ host wrapper --------------------------------

def dsconv_forward(x, params, *, stride=1, rows_per_strip=8,
                   mxu_dtype=jnp.bfloat16, dw_dtype=jnp.float32, out_dtype=None):
    """DSConv forward. x: (B, C_in, H, W) NCHW, returns (B, C_out, Ho, Wo) NCHW."""
    B, C_in, H, W = x.shape
    wd = params["dw_weight"]                      # (C_in, 1, K, K)  PyTorch layout
    wp = params["pw_weight"]                      # (C_out, C_in, 1, 1)
    K = int(wd.shape[-1])
    C_out = int(wp.shape[0])
    s = int(stride)
    out_dtype = x.dtype if out_dtype is None else out_dtype

    pad = (s - 1 + (K - 1)) // 2                  # get_padding(K, s, dilation=1)
    Ho = (H + 2 * pad - K) // s + 1
    Wo = (W + 2 * pad - K) // s + 1

    # channel padding: >=8 sublanes for the input tile, MXU packing for the matmul operand
    pack = 8 * (4 // jnp.dtype(mxu_dtype).itemsize)   # f32->8, bf16->16, int8/fp8->32
    Cin_p = _round_up(C_in, max(8, pack))
    Cout_p = _round_up(C_out, 8)

    # row-strip tiling with a bottom halo of Hh rows
    Hh = max(K - s, 1)
    R = max(1, min(int(rows_per_strip), Ho))
    while (s * R) % Hh:                           # halo block size must divide the strip step
        R += 1
    num_strips = -(-Ho // R)
    sR = s * R
    rows_padded = sR * num_strips + Hh

    # lane sizing: output lanes rounded to 128; input lanes cover the widest window read
    Wo_l = _round_up(Wo, 128)
    Wl_in = _round_up(max(W + 2 * pad, (K - 1) + s * (Wo_l - 1) + 1), 128)

    # ---- fold BatchNorms into the conv weights (free under jit) ----
    s1, t1 = bn_fold(*params["bn1"])
    s2, t2 = bn_fold(*params["bn2"])
    wdw = wd[:, 0].astype(jnp.float32) * s1[:, None, None]            # (C_in, K, K)
    wpw = wp[:, :, 0, 0].astype(jnp.float32) * s2[:, None]            # (C_out, C_in)

    wdw_taps = jnp.pad(wdw, ((0, Cin_p - C_in), (0, 0), (0, 0)))
    wdw_taps = wdw_taps.transpose(1, 2, 0).reshape(K * K, Cin_p, 1).astype(dw_dtype)
    t1v = jnp.pad(t1, (0, Cin_p - C_in)).reshape(Cin_p, 1)
    wpw_p = jnp.pad(wpw, ((0, Cout_p - C_out), (0, Cin_p - C_in))).astype(mxu_dtype)
    t2v = jnp.pad(t2, (0, Cout_p - C_out)).reshape(Cout_p, 1)

    # ---- channels-last, zero-padded input: (B, rows_padded, Cin_p, Wl_in).
    #      This single pad(+transpose) is the only host-side input pass; it exists purely to
    #      adapt the PyTorch NCHW interface (a channels-last pipeline skips it entirely). ----
    xt = jnp.transpose(x, (0, 2, 1, 3))                               # (B, H, C_in, W)
    xt = jnp.pad(xt, ((0, 0),
                      (pad, rows_padded - H - pad),
                      (0, Cin_p - C_in),
                      (pad, Wl_in - W - pad)))

    # ---- explicit VMEM budget: double-buffered in/halo/out blocks + weights + margin ----
    isz = lambda dt: jnp.dtype(dt).itemsize
    blk_in = (sR + Hh) * Cin_p * Wl_in * isz(xt.dtype)
    blk_out = R * Cout_p * Wo_l * isz(out_dtype)
    blk_w = (K * K * Cin_p + Cin_p + Cout_p * Cin_p + Cout_p) * 4
    vmem_limit = int(min(max(2 * (blk_in + blk_out) + 2 * blk_w + (4 << 20), 16 << 20),
                         64 << 20))

    halo_step = sR // Hh
    out_rows = num_strips * R

    out = pl.pallas_call(
        partial(_dsconv_kernel, K=K, R=R, stride=s, Wo_l=Wo_l,
                dw_dtype=dw_dtype, mxu_dtype=mxu_dtype),
        out_shape=jax.ShapeDtypeStruct((B, out_rows, Cout_p, Wo_l), out_dtype),
        grid=(B, num_strips),
        in_specs=[
            # main strip: stride*R input rows per output strip
            pl.BlockSpec((1, sR, Cin_p, Wl_in), lambda b, so: (b, so, 0, 0)),
            # bottom halo: the next Hh rows, read through a finer row-block over the same array
            pl.BlockSpec((1, Hh, Cin_p, Wl_in),
                         lambda b, so, hs=halo_step: (b, (so + 1) * hs, 0, 0)),
            pl.BlockSpec((K * K, Cin_p, 1), lambda b, so: (0, 0, 0)),
            pl.BlockSpec((Cin_p, 1), lambda b, so: (0, 0)),
            pl.BlockSpec((Cout_p, Cin_p), lambda b, so: (0, 0)),
            pl.BlockSpec((Cout_p, 1), lambda b, so: (0, 0)),
        ],
        out_specs=pl.BlockSpec((1, R, Cout_p, Wo_l), lambda b, so: (b, so, 0, 0)),
        compiler_params=pltpu.CompilerParams(
            dimension_semantics=("parallel", "parallel"),
            vmem_limit_bytes=vmem_limit),
    )(xt, xt, wdw_taps, t1v, wpw_p, t2v)

    # crop strip/channel/lane padding and return NCHW (PyTorch interface glue only)
    y = out[:, :Ho, :C_out, :Wo]
    return jnp.transpose(y, (0, 2, 1, 3))


# ---------------------------- pure-JAX reference -----------------------------

def dsconv_reference(x, params, *, stride=1):
    """f32 reference with the exact PyTorch DSConv semantics (for validation)."""
    wd = params["dw_weight"]
    K = wd.shape[-1]
    pad = (stride - 1 + (K - 1)) // 2
    z = jax.lax.conv_general_dilated(
        x, wd, window_strides=(stride, stride), padding=((pad, pad), (pad, pad)),
        dimension_numbers=("NCHW", "OIHW", "NCHW"), feature_group_count=x.shape[1])
    g1, b1, m1, v1 = params["bn1"]
    z = (z - m1[None, :, None, None]) * jax.lax.rsqrt(v1 + BN_EPS)[None, :, None, None] \
        * g1[None, :, None, None] + b1[None, :, None, None]
    z = jnp.clip(z, 0.0, 6.0)                                   # ReLU6
    y = jnp.einsum("oc,bchw->bohw", params["pw_weight"][:, :, 0, 0], z)
    g2, b2, m2, v2 = params["bn2"]
    y = (y - m2[None, :, None, None]) * jax.lax.rsqrt(v2 + BN_EPS)[None, :, None, None] \
        * g2[None, :, None, None] + b2[None, :, None, None]
    return y


# --------------------------------- params ------------------------------------

def init_params(key, in_chs, out_chs, k=3):
    ks = jax.random.split(key, 10)

    def bn(k1, k2, k3, k4, C):
        return (1.0 + 0.1 * jax.random.normal(k1, (C,), jnp.float32),
                0.1 * jax.random.normal(k2, (C,), jnp.float32),
                0.1 * jax.random.normal(k3, (C,), jnp.float32),
                jax.random.uniform(k4, (C,), jnp.float32, minval=0.5, maxval=1.5))

    return {
        "dw_weight": jax.random.normal(ks[0], (in_chs, 1, k, k), jnp.float32) / float(k),
        "pw_weight": jax.random.normal(ks[1], (out_chs, in_chs, 1, 1), jnp.float32)
                     / jnp.sqrt(float(in_chs)),
        "bn1": bn(ks[2], ks[3], ks[4], ks[5], in_chs),
        "bn2": bn(ks[6], ks[7], ks[8], ks[9], out_chs),
    }


# ---------------------------------- main --------------------------------------

if __name__ == "__main__":
    B, C_IN, H, W = 2, 4, 16, 16
    C_OUT, KSIZE, STRIDE = 16, 3, 1

    kx, kp = jax.random.split(jax.random.PRNGKey(0))
    x = jax.random.normal(kx, (B, C_IN, H, W), jnp.float32)     # NCHW input
    params = init_params(kp, C_IN, C_OUT, KSIZE)

    # rows_per_strip is the per-generation VMEM knob; 8 rows -> grid (B, 2) at this demo size.
    fwd = jax.jit(partial(dsconv_forward, stride=STRIDE, rows_per_strip=8))
    y = jax.block_until_ready(fwd(x, params))

    PAD = (STRIDE - 1 + KSIZE - 1) // 2
    Ho = (H + 2 * PAD - KSIZE) // STRIDE + 1
    Wo = (W + 2 * PAD - KSIZE) // STRIDE + 1
    assert y.shape == (B, C_OUT, Ho, Wo), y.shape
    assert bool(jnp.all(jnp.isfinite(y)))

    # validate against the f32 reference (loose tolerance: the 1x1 conv runs on the MXU in
    # bf16 with f32 accumulation, which introduces ~0.3% relative error).
    ref = dsconv_reference(x, params, stride=STRIDE)
    rel = float(jnp.linalg.norm(y - ref) / (float(jnp.linalg.norm(ref)) + 1e-12))
    assert rel < 3e-2, rel

    print("KERNEL_OK")
</pallas_src>

<mosaic_0001>
module attributes {stable_mosaic.version = 11 : i64} {
  func.func @_dsconv_kernel(%arg0: i32, %arg1: i32, %arg2: memref<1x8x16x256xf32, #tpu.memory_space<vmem>>, %arg3: memref<1x2x16x256xf32, #tpu.memory_space<vmem>>, %arg4: memref<9x16x1xf32, #tpu.memory_space<vmem>>, %arg5: memref<16x1xf32, #tpu.memory_space<vmem>>, %arg6: memref<16x16xbf16, #tpu.memory_space<vmem>>, %arg7: memref<16x1xf32, #tpu.memory_space<vmem>>, %arg8: memref<1x8x16x128xf32, #tpu.memory_space<vmem>>) attributes {dimension_semantics = [#tpu.dimension_semantics<parallel>, #tpu.dimension_semantics<parallel>], iteration_bounds = array<i64: 2, 2>, scalar_prefetch = 0 : i64, scratch_operands = 0 : i64, tpu.core_type = #tpu.core_type<tc>, window_params = [{transform_indices = @transform_0, window_bounds = array<i64: 1, 8, 16, 256>}, {transform_indices = @transform_1, window_bounds = array<i64: 1, 2, 16, 256>}, {pipeline_mode = #tpu.pipeline_mode<synchronous>, transform_indices = @transform_2, window_bounds = array<i64: 9, 16, 1>}, {pipeline_mode = #tpu.pipeline_mode<synchronous>, transform_indices = @transform_3, window_bounds = array<i64: 16, 1>}, {pipeline_mode = #tpu.pipeline_mode<synchronous>, transform_indices = @transform_4, window_bounds = array<i64: 16, 16>}, {pipeline_mode = #tpu.pipeline_mode<synchronous>, transform_indices = @transform_5, window_bounds = array<i64: 16, 1>}, {transform_indices = @transform_6, window_bounds = array<i64: 1, 8, 16, 128>}]} {
    %c0 = arith.constant 0 : index
    %c0_0 = arith.constant 0 : index
    %c0_1 = arith.constant 0 : index
    %0 = vector.load %arg4[%c0, %c0_0, %c0_1] : memref<9x16x1xf32, #tpu.memory_space<vmem>>, vector<9x16x1xf32>
    %c0_2 = arith.constant 0 : index
    %c0_3 = arith.constant 0 : index
    %1 = vector.load %arg5[%c0_2, %c0_3] : memref<16x1xf32, #tpu.memory_space<vmem>>, vector<16x1xf32>
    %c0_4 = arith.constant 0 : index
    %c0_5 = arith.constant 0 : index
    %2 = vector.load %arg6[%c0_4, %c0_5] : memref<16x16xbf16, #tpu.memory_space<vmem>>, vector<16x16xbf16>
    %c0_6 = arith.constant 0 : index
    %c0_7 = arith.constant 0 : index
    %3 = vector.load %arg7[%c0_6, %c0_7] : memref<16x1xf32, #tpu.memory_space<vmem>>, vector<16x1xf32>
    %c0_8 = arith.constant 0 : index
    %c0_9 = arith.constant 0 : index
    %c0_10 = arith.constant 0 : index
    %c0_11 = arith.constant 0 : index
    %4 = vector.load %arg2[%c0_8, %c0_9, %c0_10, %c0_11] : memref<1x8x16x256xf32, #tpu.memory_space<vmem>>, vector<1x1x16x128xf32>
    %5 = vector.shape_cast %4 : vector<1x1x16x128xf32> to vector<16x128xf32>
    %6 = vector.extract_strided_slice %0 {offsets = [0, 0, 0], sizes = [1, 16, 1], strides = [1, 1, 1]} : vector<9x16x1xf32> to vector<1x16x1xf32>
    %7 = vector.shape_cast %6 : vector<1x16x1xf32> to vector<16x1xf32>
    %8 = vector.broadcast %7 : vector<16x1xf32> to vector<16x128xf32>
    %9 = arith.mulf %5, %8 : vector<16x128xf32>
    %c0_12 = arith.constant 0 : index
    %c0_13 = arith.constant 0 : index
    %c0_14 = arith.constant 0 : index
    %c1 = arith.constant 1 : index
    %10 = vector.load %arg2[%c0_12, %c0_13, %c0_14, %c1] : memref<1x8x16x256xf32, #tpu.memory_space<vmem>>, vector<1x1x16x128xf32>
    %11 = vector.shape_cast %10 : vector<1x1x16x128xf32> to vector<16x128xf32>
    %12 = vector.extract_strided_slice %0 {offsets = [1, 0, 0], sizes = [1, 16, 1], strides = [1, 1, 1]} : vector<9x16x1xf32> to vector<1x16x1xf32>
    %13 = vector.shape_cast %12 : vector<1x16x1xf32> to vector<16x1xf32>
    %14 = vector.broadcast %13 : vector<16x1xf32> to vector<16x128xf32>
    %15 = arith.mulf %11, %14 : vector<16x128xf32>
    %16 = arith.addf %9, %15 : vector<16x128xf32>
    %c0_15 = arith.constant 0 : index
    %c0_16 = arith.constant 0 : index
    %c0_17 = arith.constant 0 : index
    %c2 = arith.constant 2 : index
    %17 = vector.load %arg2[%c0_15, %c0_16, %c0_17, %c2] : memref<1x8x16x256xf32, #tpu.memory_space<vmem>>, vector<1x1x16x128xf32>
    %18 = vector.shape_cast %17 : vector<1x1x16x128xf32> to vector<16x128xf32>
    %19 = vector.extract_strided_slice %0 {offsets = [2, 0, 0], sizes = [1, 16, 1], strides = [1, 1, 1]} : vector<9x16x1xf32> to vector<1x16x1xf32>
    %20 = vector.shape_cast %19 : vector<1x16x1xf32> to vector<16x1xf32>
    %21 = vector.broadcast %20 : vector<16x1xf32> to vector<16x128xf32>
    %22 = arith.mulf %18, %21 : vector<16x128xf32>
    %23 = arith.addf %16, %22 : vector<16x128xf32>
    %c0_18 = arith.constant 0 : index
    %c1_19 = arith.constant 1 : index
    %c0_20 = arith.constant 0 : index
    %c0_21 = arith.constant 0 : index
    %24 = vector.load %arg2[%c0_18, %c1_19, %c0_20, %c0_21] : memref<1x8x16x256xf32, #tpu.memory_space<vmem>>, vector<1x1x16x128xf32>
    %25 = vector.shape_cast %24 : vector<1x1x16x128xf32> to vector<16x128xf32>
    %26 = vector.extract_strided_slice %0 {offsets = [3, 0, 0], sizes = [1, 16, 1], strides = [1, 1, 1]} : vector<9x16x1xf32> to vector<1x16x1xf32>
    %27 = vector.shape_cast %26 : vector<1x16x1xf32> to vector<16x1xf32>
    %28 = vector.broadcast %27 : vector<16x1xf32> to vector<16x128xf32>
    %29 = arith.mulf %25, %28 : vector<16x128xf32>
    %30 = arith.addf %23, %29 : vector<16x128xf32>
    %c0_22 = arith.constant 0 : index
    %c1_23 = arith.constant 1 : index
    %c0_24 = arith.constant 0 : index
    %c1_25 = arith.constant 1 : index
    %31 = vector.load %arg2[%c0_22, %c1_23, %c0_24, %c1_25] : memref<1x8x16x256xf32, #tpu.memory_space<vmem>>, vector<1x1x16x128xf32>
    %32 = vector.shape_cast %31 : vector<1x1x16x128xf32> to vector<16x128xf32>
    %33 = vector.extract_strided_slice %0 {offsets = [4, 0, 0], sizes = [1, 16, 1], strides = [1, 1, 1]} : vector<9x16x1xf32> to vector<1x16x1xf32>
    %34 = vector.shape_cast %33 : vector<1x16x1xf32> to vector<16x1xf32>
    %35 = vector.broadcast %34 : vector<16x1xf32> to vector<16x128xf32>
    %36 = arith.mulf %32, %35 : vector<16x128xf32>
    %37 = arith.addf %30, %36 : vector<16x128xf32>
    %c0_26 = arith.constant 0 : index
    %c1_27 = arith.constant 1 : index
    %c0_28 = arith.constant 0 : index
    %c2_29 = arith.constant 2 : index
    %38 = vector.load %arg2[%c0_26, %c1_27, %c0_28, %c2_29] : memref<1x8x16x256xf32, #tpu.memory_space<vmem>>, vector<1x1x16x128xf32>
    %39 = vector.shape_cast %38 : vector<1x1x16x128xf32> to vector<16x128xf32>
    %40 = vector.extract_strided_slice %0 {offsets = [5, 0, 0], sizes = [1, 16, 1], strides = [1, 1, 1]} : vector<9x16x1xf32> to vector<1x16x1xf32>
    %41 = vector.shape_cast %40 : vector<1x16x1xf32> to vector<16x1xf32>
    %42 = vector.broadcast %41 : vector<16x1xf32> to vector<16x128xf32>
    %43 = arith.mulf %39, %42 : vector<16x128xf32>
    %44 = arith.addf %37, %43 : vector<16x128xf32>
    %c0_30 = arith.constant 0 : index
    %c2_31 = arith.constant 2 : index
    %c0_32 = arith.constant 0 : index
    %c0_33 = arith.constant 0 : index
    %45 = vector.load %arg2[%c0_30, %c2_31, %c0_32, %c0_33] : memref<1x8x16x256xf32, #tpu.memory_space<vmem>>, vector<1x1x16x128xf32>
    %46 = vector.shape_cast %45 : vector<1x1x16x128xf32> to vector<16x128xf32>
    %47 = vector.extract_strided_slice %0 {offsets = [6, 0, 0], sizes = [1, 16, 1], strides = [1, 1, 1]} : vector<9x16x1xf32> to vector<1x16x1xf32>
    %48 = vector.shape_cast %47 : vector<1x16x1xf32> to vector<16x1xf32>
    %49 = vector.broadcast %48 : vector<16x1xf32> to vector<16x128xf32>
    %50 = arith.mulf %46, %49 : vector<16x128xf32>
    %51 = arith.addf %44, %50 : vector<16x128xf32>
    %c0_34 = arith.constant 0 : index
    %c2_35 = arith.constant 2 : index
    %c0_36 = arith.constant 0 : index
    %c1_37 = arith.constant 1 : index
    %52 = vector.load %arg2[%c0_34, %c2_35, %c0_36, %c1_37] : memref<1x8x16x256xf32, #tpu.memory_space<vmem>>, vector<1x1x16x128xf32>
    %53 = vector.shape_cast %52 : vector<1x1x16x128xf32> to vector<16x128xf32>
    %54 = vector.extract_strided_slice %0 {offsets = [7, 0, 0], sizes = [1, 16, 1], strides = [1, 1, 1]} : vector<9x16x1xf32> to vector<1x16x1xf32>
    %55 = vector.shape_cast %54 : vector<1x16x1xf32> to vector<16x1xf32>
    %56 = vector.broadcast %55 : vector<16x1xf32> to vector<16x128xf32>
    %57 = arith.mulf %53, %56 : vector<16x128xf32>
    %58 = arith.addf %51, %57 : vector<16x128xf32>
    %c0_38 = arith.constant 0 : index
    %c2_39 = arith.constant 2 : index
    %c0_40 = arith.constant 0 : index
    %c2_41 = arith.constant 2 : index
    %59 = vector.load %arg2[%c0_38, %c2_39, %c0_40, %c2_41] : memref<1x8x16x256xf32, #tpu.memory_space<vmem>>, vector<1x1x16x128xf32>
    %60 = vector.shape_cast %59 : vector<1x1x16x128xf32> to vector<16x128xf32>
    %61 = vector.extract_strided_slice %0 {offsets = [8, 0, 0], sizes = [1, 16, 1], strides = [1, 1, 1]} : vector<9x16x1xf32> to vector<1x16x1xf32>
    %62 = vector.shape_cast %61 : vector<1x16x1xf32> to vector<16x1xf32>
    %63 = vector.broadcast %62 : vector<16x1xf32> to vector<16x128xf32>
    %64 = arith.mulf %60, %63 : vector<16x128xf32>
    %65 = arith.addf %58, %64 : vector<16x128xf32>
    %66 = vector.broadcast %1 : vector<16x1xf32> to vector<16x128xf32>
    %67 = arith.addf %65, %66 : vector<16x128xf32>
    %cst = arith.constant 0.000000e+00 : f32
    %cst_42 = arith.constant 6.000000e+00 : f32
    %68 = vector.broadcast %cst : f32 to vector<16x128xf32>
    %69 = arith.maximumf %68, %67 : vector<16x128xf32>
    %70 = vector.broadcast %cst_42 : f32 to vector<16x128xf32>
    %71 = arith.minimumf %70, %69 : vector<16x128xf32>
    %72 = arith.truncf %71 : vector<16x128xf32> to vector<16x128xbf16>
    %cst_43 = arith.constant dense<0.000000e+00> : vector<16x128xf32>
    %73 = tpu.matmul %2, %72, %cst_43 {dimension_numbers = #tpu.dot_dimension_numbers<[1], [0], [0], [1], [0, 0, 1, 1], [], []>} : vector<16x16xbf16>, vector<16x128xbf16>, vector<16x128xf32> -> vector<16x128xf32>
    %74 = vector.broadcast %3 : vector<16x1xf32> to vector<16x128xf32>
    %75 = arith.addf %73, %74 : vector<16x128xf32>
    %c0_44 = arith.constant 0 : index
    %c0_45 = arith.constant 0 : index
    %c0_46 = arith.constant 0 : index
    %c0_47 = arith.constant 0 : index
    %76 = vector.load %arg8[%c0_44, %c0_45, %c0_46, %c0_47] : memref<1x8x16x128xf32, #tpu.memory_space<vmem>>, vector<1x1x16x128xf32>
    %77 = vector.shape_cast %76 : vector<1x1x16x128xf32> to vector<16x128xf32>
    %78 = vector.shape_cast %75 : vector<16x128xf32> to vector<1x1x16x128xf32>
    tpu.vector_store %arg8[%c0_44, %c0_45, %c0_46, %c0_47], %78 {strides = array<i32>} : memref<1x8x16x128xf32, #tpu.memory_space<vmem>>, vector<1x1x16x128xf32>,
    %c0_48 = arith.constant 0 : index
    %c1_49 = arith.constant 1 : index
    %c0_50 = arith.constant 0 : index
    %c0_51 = arith.constant 0 : index
    %79 = vector.load %arg2[%c0_48, %c1_49, %c0_50, %c0_51] : memref<1x8x16x256xf32, #tpu.memory_space<vmem>>, vector<1x1x16x128xf32>
    %80 = vector.shape_cast %79 : vector<1x1x16x128xf32> to vector<16x128xf32>
    %81 = vector.extract_strided_slice %0 {offsets = [0, 0, 0], sizes = [1, 16, 1], strides = [1, 1, 1]} : vector<9x16x1xf32> to vector<1x16x1xf32>
    %82 = vector.shape_cast %81 : vector<1x16x1xf32> to vector<16x1xf32>
    %83 = vector.broadcast %82 : vector<16x1xf32> to vector<16x128xf32>
    %84 = arith.mulf %80, %83 : vector<16x128xf32>
    %c0_52 = arith.constant 0 : index
    %c1_53 = arith.constant 1 : index
    %c0_54 = arith.constant 0 : index
    %c1_55 = arith.constant 1 : index
    %85 = vector.load %arg2[%c0_52, %c1_53, %c0_54, %c1_55] : memref<1x8x16x256xf32, #tpu.memory_space<vmem>>, vector<1x1x16x128xf32>
    %86 = vector.shape_cast %85 : vector<1x1x16x128xf32> to vector<16x128xf32>
    %87 = vector.extract_strided_slice %0 {offsets = [1, 0, 0], sizes = [1, 16, 1], strides = [1, 1, 1]} : vector<9x16x1xf32> to vector<1x16x1xf32>
    %88 = vector.shape_cast %87 : vector<1x16x1xf32> to vector<16x1xf32>
    %89 = vector.broadcast %88 : vector<16x1xf32> to vector<16x128xf32>
    %90 = arith.mulf %86, %89 : vector<16x128xf32>
    %91 = arith.addf %84, %90 : vector<16x128xf32>
    %c0_56 = arith.constant 0 : index
    %c1_57 = arith.constant 1 : index
    %c0_58 = arith.constant 0 : index
    %c2_59 = arith.constant 2 : index
    %92 = vector.load %arg2[%c0_56, %c1_57, %c0_58, %c2_59] : memref<1x8x16x256xf32, #tpu.memory_space<vmem>>, vector<1x1x16x128xf32>
    %93 = vector.shape_cast %92 : vector<1x1x16x128xf32> to vector<16x128xf32>
    %94 = vector.extract_strided_slice %0 {offsets = [2, 0, 0], sizes = [1, 16, 1], strides = [1, 1, 1]} : vector<9x16x1xf32> to vector<1x16x1xf32>
    %95 = vector.shape_cast %94 : vector<1x16x1xf32> to vector<16x1xf32>
    %96 = vector.broadcast %95 : vector<16x1xf32> to vector<16x128xf32>
    %97 = arith.mulf %93, %96 : vector<16x128xf32>
    %98 = arith.addf %91, %97 : vector<16x128xf32>
    %c0_60 = arith.constant 0 : index
    %c2_61 = arith.constant 2 : index
    %c0_62 = arith.constant 0 : index
    %c0_63 = arith.constant 0 : index
    %99 = vector.load %arg2[%c0_60, %c2_61, %c0_62, %c0_63] : memref<1x8x16x256xf32, #tpu.memory_space<vmem>>, vector<1x1x16x128xf32>
    %100 = vector.shape_cast %99 : vector<1x1x16x128xf32> to vector<16x128xf32>
    %101 = vector.extract_strided_slice %0 {offsets = [3, 0, 0], sizes = [1, 16, 1], strides = [1, 1, 1]} : vector<9x16x1xf32> to vector<1x16x1xf32>
    %102 = vector.shape_cast %101 : vector<1x16x1xf32> to vector<16x1xf32>
    %103 = vector.broadcast %102 : vector<16x1xf32> to vector<16x128xf32>
    %104 = arith.mulf %100, %103 : vector<16x128xf32>
    %105 = arith.addf %98, %104 : vector<16x128xf32>
    %c0_64 = arith.constant 0 : index
    %c2_65 = arith.constant 2 : index
    %c0_66 = arith.constant 0 : index
    %c1_67 = arith.constant 1 : index
    %106 = vector.load %arg2[%c0_64, %c2_65, %c0_66, %c1_67] : memref<1x8x16x256xf32, #tpu.memory_space<vmem>>, vector<1x1x16x128xf32>
    %107 = vector.shape_cast %106 : vector<1x1x16x128xf32> to vector<16x128xf32>
    %108 = vector.extract_strided_slice %0 {offsets = [4, 0, 0], sizes = [1, 16, 1], strides = [1, 1, 1]} : vector<9x16x1xf32> to vector<1x16x1xf32>
    %109 = vector.shape_cast %108 : vector<1x16x1xf32> to vector<16x1xf32>
    %110 = vector.broadcast %109 : vector<16x1xf32> to vector<16x128xf32>
    %111 = arith.mulf %107, %110 : vector<16x128xf32>
    %112 = arith.addf %105, %111 : vector<16x128xf32>
    %c0_68 = arith.constant 0 : index
    %c2_69 = arith.constant 2 : index
    %c0_70 = arith.constant 0 : index
    %c2_71 = arith.constant 2 : index
    %113 = vector.load %arg2[%c0_68, %c2_69, %c0_70, %c2_71] : memref<1x8x16x256xf32, #tpu.memory_space<vmem>>, vector<1x1x16x128xf32>
    %114 = vector.shape_cast %113 : vector<1x1x16x128xf32> to vector<16x128xf32>
    %115 = vector.extract_strided_slice %0 {offsets = [5, 0, 0], sizes = [1, 16, 1], strides = [1, 1, 1]} : vector<9x16x1xf32> to vector<1x16x1xf32>
    %116 = vector.shape_cast %115 : vector<1x16x1xf32> to vector<16x1xf32>
    %117 = vector.broadcast %116 : vector<16x1xf32> to vector<16x128xf32>
    %118 = arith.mulf %114, %117 : vector<16x128xf32>
    %119 = arith.addf %112, %118 : vector<16x128xf32>
    %c0_72 = arith.constant 0 : index
    %c3 = arith.constant 3 : index
    %c0_73 = arith.constant 0 : index
    %c0_74 = arith.constant 0 : index
    %120 = vector.load %arg2[%c0_72, %c3, %c0_73, %c0_74] : memref<1x8x16x256xf32, #tpu.memory_space<vmem>>, vector<1x1x16x128xf32>
    %121 = vector.shape_cast %120 : vector<1x1x16x128xf32> to vector<16x128xf32>
    %122 = vector.extract_strided_slice %0 {offsets = [6, 0, 0], sizes = [1, 16, 1], strides = [1, 1, 1]} : vector<9x16x1xf32> to vector<1x16x1xf32>
    %123 = vector.shape_cast %122 : vector<1x16x1xf32> to vector<16x1xf32>
    %124 = vector.broadcast %123 : vector<16x1xf32> to vector<16x128xf32>
    %125 = arith.mulf %121, %124 : vector<16x128xf32>
    %126 = arith.addf %119, %125 : vector<16x128xf32>
    %c0_75 = arith.constant 0 : index
    %c3_76 = arith.constant 3 : index
    %c0_77 = arith.constant 0 : index
    %c1_78 = arith.constant 1 : index
    %127 = vector.load %arg2[%c0_75, %c3_76, %c0_77, %c1_78] : memref<1x8x16x256xf32, #tpu.memory_space<vmem>>, vector<1x1x16x128xf32>
    %128 = vector.shape_cast %127 : vector<1x1x16x128xf32> to vector<16x128xf32>
    %129 = vector.extract_strided_slice %0 {offsets = [7, 0, 0], sizes = [1, 16, 1], strides = [1, 1, 1]} : vector<9x16x1xf32> to vector<1x16x1xf32>
    %130 = vector.shape_cast %129 : vector<1x16x1xf32> to vector<16x1xf32>
    %131 = vector.broadcast %130 : vector<16x1xf32> to vector<16x128xf32>
    %132 = arith.mulf %128, %131 : vector<16x128xf32>
    %133 = arith.addf %126, %132 : vector<16x128xf32>
    %c0_79 = arith.constant 0 : index
    %c3_80 = arith.constant 3 : index
    %c0_81 = arith.constant 0 : index
    %c2_82 = arith.constant 2 : index
    %134 = vector.load %arg2[%c0_79, %c3_80, %c0_81, %c2_82] : memref<1x8x16x256xf32, #tpu.memory_space<vmem>>, vector<1x1x16x128xf32>
    %135 = vector.shape_cast %134 : vector<1x1x16x128xf32> to vector<16x128xf32>
    %136 = vector.extract_strided_slice %0 {offsets = [8, 0, 0], sizes = [1, 16, 1], strides = [1, 1, 1]} : vector<9x16x1xf32> to vector<1x16x1xf32>
    %137 = vector.shape_cast %136 : vector<1x16x1xf32> to vector<16x1xf32>
    %138 = vector.broadcast %137 : vector<16x1xf32> to vector<16x128xf32>
    %139 = arith.mulf %135, %138 : vector<16x128xf32>
    %140 = arith.addf %133, %139 : vector<16x128xf32>
    %141 = vector.broadcast %1 : vector<16x1xf32> to vector<16x128xf32>
    %142 = arith.addf %140, %141 : vector<16x128xf32>
    %cst_83 = arith.constant 0.000000e+00 : f32
    %cst_84 = arith.constant 6.000000e+00 : f32
    %143 = vector.broadcast %cst_83 : f32 to vector<16x128xf32>
    %144 = arith.maximumf %143, %142 : vector<16x128xf32>
    %145 = vector.broadcast %cst_84 : f32 to vector<16x128xf32>
    %146 = arith.minimumf %145, %144 : vector<16x128xf32>
    %147 = arith.truncf %146 : vector<16x128xf32> to vector<16x128xbf16>
    %cst_85 = arith.constant dense<0.000000e+00> : vector<16x128xf32>
    %148 = tpu.matmul %2, %147, %cst_85 {dimension_numbers = #tpu.dot_dimension_numbers<[1], [0], [0], [1], [0, 0, 1, 1], [], []>} : vector<16x16xbf16>, vector<16x128xbf16>, vector<16x128xf32> -> vector<16x128xf32>
    %149 = vector.broadcast %3 : vector<16x1xf32> to vector<16x128xf32>
    %150 = arith.addf %148, %149 : vector<16x128xf32>
    %c0_86 = arith.constant 0 : index
    %c1_87 = arith.constant 1 : index
    %c0_88 = arith.constant 0 : index
    %c0_89 = arith.constant 0 : index
    %151 = vector.load %arg8[%c0_86, %c1_87, %c0_88, %c0_89] : memref<1x8x16x128xf32, #tpu.memory_space<vmem>>, vector<1x1x16x128xf32>
    %152 = vector.shape_cast %151 : vector<1x1x16x128xf32> to vector<16x128xf32>
    %153 = vector.shape_cast %150 : vector<16x128xf32> to vector<1x1x16x128xf32>
    tpu.vector_store %arg8[%c0_86, %c1_87, %c0_88, %c0_89], %153 {strides = array<i32>} : memref<1x8x16x128xf32, #tpu.memory_space<vmem>>, vector<1x1x16x128xf32>,
    %c0_90 = arith.constant 0 : index
    %c2_91 = arith.constant 2 : index
    %c0_92 = arith.constant 0 : index
    %c0_93 = arith.constant 0 : index
    %154 = vector.load %arg2[%c0_90, %c2_91, %c0_92, %c0_93] : memref<1x8x16x256xf32, #tpu.memory_space<vmem>>, vector<1x1x16x128xf32>
    %155 = vector.shape_cast %154 : vector<1x1x16x128xf32> to vector<16x128xf32>
    %156 = vector.extract_strided_slice %0 {offsets = [0, 0, 0], sizes = [1, 16, 1], strides = [1, 1, 1]} : vector<9x16x1xf32> to vector<1x16x1xf32>
    %157 = vector.shape_cast %156 : vector<1x16x1xf32> to vector<16x1xf32>
    %158 = vector.broadcast %157 : vector<16x1xf32> to vector<16x128xf32>
    %159 = arith.mulf %155, %158 : vector<16x128xf32>
    %c0_94 = arith.constant 0 : index
    %c2_95 = arith.constant 2 : index
    %c0_96 = arith.constant 0 : index
    %c1_97 = arith.constant 1 : index
    %160 = vector.load %arg2[%c0_94, %c2_95, %c0_96, %c1_97] : memref<1x8x16x256xf32, #tpu.memory_space<vmem>>, vector<1x1x16x128xf32>
    %161 = vector.shape_cast %160 : vector<1x1x16x128xf32> to vector<16x128xf32>
    %162 = vector.extract_strided_slice %0 {offsets = [1, 0, 0], sizes = [1, 16, 1], strides = [1, 1, 1]} : vector<9x16x1xf32> to vector<1x16x1xf32>
    %163 = vector.shape_cast %162 : vector<1x16x1xf32> to vector<16x1xf32>
    %164 = vector.broadcast %163 : vector<16x1xf32> to vector<16x128xf32>
    %165 = arith.mulf %161, %164 : vector<16x128xf32>
    %166 = arith.addf %159, %165 : vector<16x128xf32>
    %c0_98 = arith.constant 0 : index
    %c2_99 = arith.constant 2 : index
    %c0_100 = arith.constant 0 : index
    %c2_101 = arith.constant 2 : index
    %167 = vector.load %arg2[%c0_98, %c2_99, %c0_100, %c2_101] : memref<1x8x16x256xf32, #tpu.memory_space<vmem>>, vector<1x1x16x128xf32>
    %168 = vector.shape_cast %167 : vector<1x1x16x128xf32> to vector<16x128xf32>
    %169 = vector.extract_strided_slice %0 {offsets = [2, 0, 0], sizes = [1, 16, 1], strides = [1, 1, 1]} : vector<9x16x1xf32> to vector<1x16x1xf32>
    %170 = vector.shape_cast %169 : vector<1x16x1xf32> to vector<16x1xf32>
    %171 = vector.broadcast %170 : vector<16x1xf32> to vector<16x128xf32>
    %172 = arith.mulf %168, %171 : vector<16x128xf32>
    %173 = arith.addf %166, %172 : vector<16x128xf32>
    %c0_102 = arith.constant 0 : index
    %c3_103 = arith.constant 3 : index
    %c0_104 = arith.constant 0 : index
    %c0_105 = arith.constant 0 : index
    %174 = vector.load %arg2[%c0_102, %c3_103, %c0_104, %c0_105] : memref<1x8x16x256xf32, #tpu.memory_space<vmem>>, vector<1x1x16x128xf32>
    %175 = vector.shape_cast %174 : vector<1x1x16x128xf32> to vector<16x128xf32>
    %176 = vector.extract_strided_slice %0 {offsets = [3, 0, 0], sizes = [1, 16, 1], strides = [1, 1, 1]} : vector<9x16x1xf32> to vector<1x16x1xf32>
    %177 = vector.shape_cast %176 : vector<1x16x1xf32> to vector<16x1xf32>
    %178 = vector.broadcast %177 : vector<16x1xf32> to vector<16x128xf32>
    %179 = arith.mulf %175, %178 : vector<16x128xf32>
    %180 = arith.addf %173, %179 : vector<16x128xf32>
    %c0_106 = arith.constant 0 : index
    %c3_107 = arith.constant 3 : index
    %c0_108 = arith.constant 0 : index
    %c1_109 = arith.constant 1 : index
    %181 = vector.load %arg2[%c0_106, %c3_107, %c0_108, %c1_109] : memref<1x8x16x256xf32, #tpu.memory_space<vmem>>, vector<1x1x16x128xf32>
    %182 = vector.shape_cast %181 : vector<1x1x16x128xf32> to vector<16x128xf32>
    %183 = vector.extract_strided_slice %0 {offsets = [4, 0, 0], sizes = [1, 16, 1], strides = [1, 1, 1]} : vector<9x16x1xf32> to vector<1x16x1xf32>
    %184 = vector.shape_cast %183 : vector<1x16x1xf32> to vector<16x1xf32>
    %185 = vector.broadcast %184 : vector<16x1xf32> to vector<16x128xf32>
    %186 = arith.mulf %182, %185 : vector<16x128xf32>
    %187 = arith.addf %180, %186 : vector<16x128xf32>
    %c0_110 = arith.constant 0 : index
    %c3_111 = arith.constant 3 : index
    %c0_112 = arith.constant 0 : index
    %c2_113 = arith.constant 2 : index
    %188 = vector.load %arg2[%c0_110, %c3_111, %c0_112, %c2_113] : memref<1x8x16x256xf32, #tpu.memory_space<vmem>>, vector<1x1x16x128xf32>
    %189 = vector.shape_cast %188 : vector<1x1x16x128xf32> to vector<16x128xf32>
    %190 = vector.extract_strided_slice %0 {offsets = [5, 0, 0], sizes = [1, 16, 1], strides = [1, 1, 1]} : vector<9x16x1xf32> to vector<1x16x1xf32>
    %191 = vector.shape_cast %190 : vector<1x16x1xf32> to vector<16x1xf32>
    %192 = vector.broadcast %191 : vector<16x1xf32> to vector<16x128xf32>
    %193 = arith.mulf %189, %192 : vector<16x128xf32>
    %194 = arith.addf %187, %193 : vector<16x128xf32>
    %c0_114 = arith.constant 0 : index
    %c4 = arith.constant 4 : index
    %c0_115 = arith.constant 0 : index
    %c0_116 = arith.constant 0 : index
    %195 = vector.load %arg2[%c0_114, %c4, %c0_115, %c0_116] : memref<1x8x16x256xf32, #tpu.memory_space<vmem>>, vector<1x1x16x128xf32>
    %196 = vector.shape_cast %195 : vector<1x1x16x128xf32> to vector<16x128xf32>
    %197 = vector.extract_strided_slice %0 {offsets = [6, 0, 0], sizes = [1, 16, 1], strides = [1, 1, 1]} : vector<9x16x1xf32> to vector<1x16x1xf32>
    %198 = vector.shape_cast %197 : vector<1x16x1xf32> to vector<16x1xf32>
    %199 = vector.broadcast %198 : vector<16x1xf32> to vector<16x128xf32>
    %200 = arith.mulf %196, %199 : vector<16x128xf32>
    %201 = arith.addf %194, %200 : vector<16x128xf32>
    %c0_117 = arith.constant 0 : index
    %c4_118 = arith.constant 4 : index
    %c0_119 = arith.constant 0 : index
    %c1_120 = arith.constant 1 : index
    %202 = vector.load %arg2[%c0_117, %c4_118, %c0_119, %c1_120] : memref<1x8x16x256xf32, #tpu.memory_space<vmem>>, vector<1x1x16x128xf32>
    %203 = vector.shape_cast %202 : vector<1x1x16x128xf32> to vector<16x128xf32>
    %204 = vector.extract_strided_slice %0 {offsets = [7, 0, 0], sizes = [1, 16, 1], strides = [1, 1, 1]} : vector<9x16x1xf32> to vector<1x16x1xf32>
    %205 = vector.shape_cast %204 : vector<1x16x1xf32> to vector<16x1xf32>
    %206 = vector.broadcast %205 : vector<16x1xf32> to vector<16x128xf32>
    %207 = arith.mulf %203, %206 : vector<16x128xf32>
    %208 = arith.addf %201, %207 : vector<16x128xf32>
    %c0_121 = arith.constant 0 : index
    %c4_122 = arith.constant 4 : index
    %c0_123 = arith.constant 0 : index
    %c2_124 = arith.constant 2 : index
    %209 = vector.load %arg2[%c0_121, %c4_122, %c0_123, %c2_124] : memref<1x8x16x256xf32, #tpu.memory_space<vmem>>, vector<1x1x16x128xf32>
    %210 = vector.shape_cast %209 : vector<1x1x16x128xf32> to vector<16x128xf32>
    %211 = vector.extract_strided_slice %0 {offsets = [8, 0, 0], sizes = [1, 16, 1], strides = [1, 1, 1]} : vector<9x16x1xf32> to vector<1x16x1xf32>
    %212 = vector.shape_cast %211 : vector<1x16x1xf32> to vector<16x1xf32>
    %213 = vector.broadcast %212 : vector<16x1xf32> to vector<16x128xf32>
    %214 = arith.mulf %210, %213 : vector<16x128xf32>
    %215 = arith.addf %208, %214 : vector<16x128xf32>
    %216 = vector.broadcast %1 : vector<16x1xf32> to vector<16x128xf32>
    %217 = arith.addf %215, %216 : vector<16x128xf32>
    %cst_125 = arith.constant 0.000000e+00 : f32
    %cst_126 = arith.constant 6.000000e+00 : f32
    %218 = vector.broadcast %cst_125 : f32 to vector<16x128xf32>
    %219 = arith.maximumf %218, %217 : vector<16x128xf32>
    %220 = vector.broadcast %cst_126 : f32 to vector<16x128xf32>
    %221 = arith.minimumf %220, %219 : vector<16x128xf32>
    %222 = arith.truncf %221 : vector<16x128xf32> to vector<16x128xbf16>
    %cst_127 = arith.constant dense<0.000000e+00> : vector<16x128xf32>
    %223 = tpu.matmul %2, %222, %cst_127 {dimension_numbers = #tpu.dot_dimension_numbers<[1], [0], [0], [1], [0, 0, 1, 1], [], []>} : vector<16x16xbf16>, vector<16x128xbf16>, vector<16x128xf32> -> vector<16x128xf32>
    %224 = vector.broadcast %3 : vector<16x1xf32> to vector<16x128xf32>
    %225 = arith.addf %223, %224 : vector<16x128xf32>
    %c0_128 = arith.constant 0 : index
    %c2_129 = arith.constant 2 : index
    %c0_130 = arith.constant 0 : index
    %c0_131 = arith.constant 0 : index
    %226 = vector.load %arg8[%c0_128, %c2_129, %c0_130, %c0_131] : memref<1x8x16x128xf32, #tpu.memory_space<vmem>>, vector<1x1x16x128xf32>
    %227 = vector.shape_cast %226 : vector<1x1x16x128xf32> to vector<16x128xf32>
    %228 = vector.shape_cast %225 : vector<16x128xf32> to vector<1x1x16x128xf32>
    tpu.vector_store %arg8[%c0_128, %c2_129, %c0_130, %c0_131], %228 {strides = array<i32>} : memref<1x8x16x128xf32, #tpu.memory_space<vmem>>, vector<1x1x16x128xf32>,
    %c0_132 = arith.constant 0 : index
    %c3_133 = arith.constant 3 : index
    %c0_134 = arith.constant 0 : index
    %c0_135 = arith.constant 0 : index
    %229 = vector.load %arg2[%c0_132, %c3_133, %c0_134, %c0_135] : memref<1x8x16x256xf32, #tpu.memory_space<vmem>>, vector<1x1x16x128xf32>
    %230 = vector.shape_cast %229 : vector<1x1x16x128xf32> to vector<16x128xf32>
    %231 = vector.extract_strided_slice %0 {offsets = [0, 0, 0], sizes = [1, 16, 1], strides = [1, 1, 1]} : vector<9x16x1xf32> to vector<1x16x1xf32>
    %232 = vector.shape_cast %231 : vector<1x16x1xf32> to vector<16x1xf32>
    %233 = vector.broadcast %232 : vector<16x1xf32> to vector<16x128xf32>
    %234 = arith.mulf %230, %233 : vector<16x128xf32>
    %c0_136 = arith.constant 0 : index
    %c3_137 = arith.constant 3 : index
    %c0_138 = arith.constant 0 : index
    %c1_139 = arith.constant 1 : index
    %235 = vector.load %arg2[%c0_136, %c3_137, %c0_138, %c1_139] : memref<1x8x16x256xf32, #tpu.memory_space<vmem>>, vector<1x1x16x128xf32>
    %236 = vector.shape_cast %235 : vector<1x1x16x128xf32> to vector<16x128xf32>
    %237 = vector.extract_strided_slice %0 {offsets = [1, 0, 0], sizes = [1, 16, 1], strides = [1, 1, 1]} : vector<9x16x1xf32> to vector<1x16x1xf32>
    %238 = vector.shape_cast %237 : vector<1x16x1xf32> to vector<16x1xf32>
    %239 = vector.broadcast %238 : vector<16x1xf32> to vector<16x128xf32>
    %240 = arith.mulf %236, %239 : vector<16x128xf32>
    %241 = arith.addf %234, %240 : vector<16x128xf32>
    %c0_140 = arith.constant 0 : index
    %c3_141 = arith.constant 3 : index
    %c0_142 = arith.constant 0 : index
    %c2_143 = arith.constant 2 : index
    %242 = vector.load %arg2[%c0_140, %c3_141, %c0_142, %c2_143] : memref<1x8x16x256xf32, #tpu.memory_space<vmem>>, vector<1x1x16x128xf32>
    %243 = vector.shape_cast %242 : vector<1x1x16x128xf32> to vector<16x128xf32>
    %244 = vector.extract_strided_slice %0 {offsets = [2, 0, 0], sizes = [1, 16, 1], strides = [1, 1, 1]} : vector<9x16x1xf32> to vector<1x16x1xf32>
    %245 = vector.shape_cast %244 : vector<1x16x1xf32> to vector<16x1xf32>
    %246 = vector.broadcast %245 : vector<16x1xf32> to vector<16x128xf32>
    %247 = arith.mulf %243, %246 : vector<16x128xf32>
    %248 = arith.addf %241, %247 : vector<16x128xf32>
    %c0_144 = arith.constant 0 : index
    %c4_145 = arith.constant 4 : index
    %c0_146 = arith.constant 0 : index
    %c0_147 = arith.constant 0 : index
    %249 = vector.load %arg2[%c0_144, %c4_145, %c0_146, %c0_147] : memref<1x8x16x256xf32, #tpu.memory_space<vmem>>, vector<1x1x16x128xf32>
    %250 = vector.shape_cast %249 : vector<1x1x16x128xf32> to vector<16x128xf32>
    %251 = vector.extract_strided_slice %0 {offsets = [3, 0, 0], sizes = [1, 16, 1], strides = [1, 1, 1]} : vector<9x16x1xf32> to vector<1x16x1xf32>
    %252 = vector.shape_cast %251 : vector<1x16x1xf32> to vector<16x1xf32>
    %253 = vector.broadcast %252 : vector<16x1xf32> to vector<16x128xf32>
    %254 = arith.mulf %250, %253 : vector<16x128xf32>
    %255 = arith.addf %248, %254 : vector<16x128xf32>
    %c0_148 = arith.constant 0 : index
    %c4_149 = arith.constant 4 : index
    %c0_150 = arith.constant 0 : index
    %c1_151 = arith.constant 1 : index
    %256 = vector.load %arg2[%c0_148, %c4_149, %c0_150, %c1_151] : memref<1x8x16x256xf32, #tpu.memory_space<vmem>>, vector<1x1x16x128xf32>
    %257 = vector.shape_cast %256 : vector<1x1x16x128xf32> to vector<16x128xf32>
    %258 = vector.extract_strided_slice %0 {offsets = [4, 0, 0], sizes = [1, 16, 1], strides = [1, 1, 1]} : vector<9x16x1xf32> to vector<1x16x1xf32>
    %259 = vector.shape_cast %258 : vector<1x16x1xf32> to vector<16x1xf32>
    %260 = vector.broadcast %259 : vector<16x1xf32> to vector<16x128xf32>
    %261 = arith.mulf %257, %260 : vector<16x128xf32>
    %262 = arith.addf %255, %261 : vector<16x128xf32>
    %c0_152 = arith.constant 0 : index
    %c4_153 = arith.constant 4 : index
    %c0_154 = arith.constant 0 : index
    %c2_155 = arith.constant 2 : index
    %263 = vector.load %arg2[%c0_152, %c4_153, %c0_154, %c2_155] : memref<1x8x16x256xf32, #tpu.memory_space<vmem>>, vector<1x1x16x128xf32>
    %264 = vector.shape_cast %263 : vector<1x1x16x128xf32> to vector<16x128xf32>
    %265 = vector.extract_strided_slice %0 {offsets = [5, 0, 0], sizes = [1, 16, 1], strides = [1, 1, 1]} : vector<9x16x1xf32> to vector<1x16x1xf32>
    %266 = vector.shape_cast %265 : vector<1x16x1xf32> to vector<16x1xf32>
    %267 = vector.broadcast %266 : vector<16x1xf32> to vector<16x128xf32>
    %268 = arith.mulf %264, %267 : vector<16x128xf32>
    %269 = arith.addf %262, %268 : vector<16x128xf32>
    %c0_156 = arith.constant 0 : index
    %c5 = arith.constant 5 : index
    %c0_157 = arith.constant 0 : index
    %c0_158 = arith.constant 0 : index
    %270 = vector.load %arg2[%c0_156, %c5, %c0_157, %c0_158] : memref<1x8x16x256xf32, #tpu.memory_space<vmem>>, vector<1x1x16x128xf32>
    %271 = vector.shape_cast %270 : vector<1x1x16x128xf32> to vector<16x128xf32>
    %272 = vector.extract_strided_slice %0 {offsets = [6, 0, 0], sizes = [1, 16, 1], strides = [1, 1, 1]} : vector<9x16x1xf32> to vector<1x16x1xf32>
    %273 = vector.shape_cast %272 : vector<1x16x1xf32> to vector<16x1xf32>
    %274 = vector.broadcast %273 : vector<16x1xf32> to vector<16x128xf32>
    %275 = arith.mulf %271, %274 : vector<16x128xf32>
    %276 = arith.addf %269, %275 : vector<16x128xf32>
    %c0_159 = arith.constant 0 : index
    %c5_160 = arith.constant 5 : index
    %c0_161 = arith.constant 0 : index
    %c1_162 = arith.constant 1 : index
    %277 = vector.load %arg2[%c0_159, %c5_160, %c0_161, %c1_162] : memref<1x8x16x256xf32, #tpu.memory_space<vmem>>, vector<1x1x16x128xf32>
    %278 = vector.shape_cast %277 : vector<1x1x16x128xf32> to vector<16x128xf32>
    %279 = vector.extract_strided_slice %0 {offsets = [7, 0, 0], sizes = [1, 16, 1], strides = [1, 1, 1]} : vector<9x16x1xf32> to vector<1x16x1xf32>
    %280 = vector.shape_cast %279 : vector<1x16x1xf32> to vector<16x1xf32>
    %281 = vector.broadcast %280 : vector<16x1xf32> to vector<16x128xf32>
    %282 = arith.mulf %278, %281 : vector<16x128xf32>
    %283 = arith.addf %276, %282 : vector<16x128xf32>
    %c0_163 = arith.constant 0 : index
    %c5_164 = arith.constant 5 : index
    %c0_165 = arith.constant 0 : index
    %c2_166 = arith.constant 2 : index
    %284 = vector.load %arg2[%c0_163, %c5_164, %c0_165, %c2_166] : memref<1x8x16x256xf32, #tpu.memory_space<vmem>>, vector<1x1x16x128xf32>
    %285 = vector.shape_cast %284 : vector<1x1x16x128xf32> to vector<16x128xf32>
    %286 = vector.extract_strided_slice %0 {offsets = [8, 0, 0], sizes = [1, 16, 1], strides = [1, 1, 1]} : vector<9x16x1xf32> to vector<1x16x1xf32>
    %287 = vector.shape_cast %286 : vector<1x16x1xf32> to vector<16x1xf32>
    %288 = vector.broadcast %287 : vector<16x1xf32> to vector<16x128xf32>
    %289 = arith.mulf %285, %288 : vector<16x128xf32>
    %290 = arith.addf %283, %289 : vector<16x128xf32>
    %291 = vector.broadcast %1 : vector<16x1xf32> to vector<16x128xf32>
    %292 = arith.addf %290, %291 : vector<16x128xf32>
    %cst_167 = arith.constant 0.000000e+00 : f32
    %cst_168 = arith.constant 6.000000e+00 : f32
    %293 = vector.broadcast %cst_167 : f32 to vector<16x128xf32>
    %294 = arith.maximumf %293, %292 : vector<16x128xf32>
    %295 = vector.broadcast %cst_168 : f32 to vector<16x128xf32>
    %296 = arith.minimumf %295, %294 : vector<16x128xf32>
    %297 = arith.truncf %296 : vector<16x128xf32> to vector<16x128xbf16>
    %cst_169 = arith.constant dense<0.000000e+00> : vector<16x128xf32>
    %298 = tpu.matmul %2, %297, %cst_169 {dimension_numbers = #tpu.dot_dimension_numbers<[1], [0], [0], [1], [0, 0, 1, 1], [], []>} : vector<16x16xbf16>, vector<16x128xbf16>, vector<16x128xf32> -> vector<16x128xf32>
    %299 = vector.broadcast %3 : vector<16x1xf32> to vector<16x128xf32>
    %300 = arith.addf %298, %299 : vector<16x128xf32>
    %c0_170 = arith.constant 0 : index
    %c3_171 = arith.constant 3 : index
    %c0_172 = arith.constant 0 : index
    %c0_173 = arith.constant 0 : index
    %301 = vector.load %arg8[%c0_170, %c3_171, %c0_172, %c0_173] : memref<1x8x16x128xf32, #tpu.memory_space<vmem>>, vector<1x1x16x128xf32>
    %302 = vector.shape_cast %301 : vector<1x1x16x128xf32> to vector<16x128xf32>
    %303 = vector.shape_cast %300 : vector<16x128xf32> to vector<1x1x16x128xf32>
    tpu.vector_store %arg8[%c0_170, %c3_171, %c0_172, %c0_173], %303 {strides = array<i32>} : memref<1x8x16x128xf32, #tpu.memory_space<vmem>>, vector<1x1x16x128xf32>,
    %c0_174 = arith.constant 0 : index
    %c4_175 = arith.constant 4 : index
    %c0_176 = arith.constant 0 : index
    %c0_177 = arith.constant 0 : index
    %304 = vector.load %arg2[%c0_174, %c4_175, %c0_176, %c0_177] : memref<1x8x16x256xf32, #tpu.memory_space<vmem>>, vector<1x1x16x128xf32>
    %305 = vector.shape_cast %304 : vector<1x1x16x128xf32> to vector<16x128xf32>
    %306 = vector.extract_strided_slice %0 {offsets = [0, 0, 0], sizes = [1, 16, 1], strides = [1, 1, 1]} : vector<9x16x1xf32> to vector<1x16x1xf32>
    %307 = vector.shape_cast %306 : vector<1x16x1xf32> to vector<16x1xf32>
    %308 = vector.broadcast %307 : vector<16x1xf32> to vector<16x128xf32>
    %309 = arith.mulf %305, %308 : vector<16x128xf32>
    %c0_178 = arith.constant 0 : index
    %c4_179 = arith.constant 4 : index
    %c0_180 = arith.constant 0 : index
    %c1_181 = arith.constant 1 : index
    %310 = vector.load %arg2[%c0_178, %c4_179, %c0_180, %c1_181] : memref<1x8x16x256xf32, #tpu.memory_space<vmem>>, vector<1x1x16x128xf32>
    %311 = vector.shape_cast %310 : vector<1x1x16x128xf32> to vector<16x128xf32>
    %312 = vector.extract_strided_slice %0 {offsets = [1, 0, 0], sizes = [1, 16, 1], strides = [1, 1, 1]} : vector<9x16x1xf32> to vector<1x16x1xf32>
    %313 = vector.shape_cast %312 : vector<1x16x1xf32> to vector<16x1xf32>
    %314 = vector.broadcast %313 : vector<16x1xf32> to vector<16x128xf32>
    %315 = arith.mulf %311, %314 : vector<16x128xf32>
    %316 = arith.addf %309, %315 : vector<16x128xf32>
    %c0_182 = arith.constant 0 : index
    %c4_183 = arith.constant 4 : index
    %c0_184 = arith.constant 0 : index
    %c2_185 = arith.constant 2 : index
    %317 = vector.load %arg2[%c0_182, %c4_183, %c0_184, %c2_185] : memref<1x8x16x256xf32, #tpu.memory_space<vmem>>, vector<1x1x16x128xf32>
    %318 = vector.shape_cast %317 : vector<1x1x16x128xf32> to vector<16x128xf32>
    %319 = vector.extract_strided_slice %0 {offsets = [2, 0, 0], sizes = [1, 16, 1], strides = [1, 1, 1]} : vector<9x16x1xf32> to vector<1x16x1xf32>
    %320 = vector.shape_cast %319 : vector<1x16x1xf32> to vector<16x1xf32>
    %321 = vector.broadcast %320 : vector<16x1xf32> to vector<16x128xf32>
    %322 = arith.mulf %318, %321 : vector<16x128xf32>
    %323 = arith.addf %316, %322 : vector<16x128xf32>
    %c0_186 = arith.constant 0 : index
    %c5_187 = arith.constant 5 : index
    %c0_188 = arith.constant 0 : index
    %c0_189 = arith.constant 0 : index
    %324 = vector.load %arg2[%c0_186, %c5_187, %c0_188, %c0_189] : memref<1x8x16x256xf32, #tpu.memory_space<vmem>>, vector<1x1x16x128xf32>
    %325 = vector.shape_cast %324 : vector<1x1x16x128xf32> to vector<16x128xf32>
    %326 = vector.extract_strided_slice %0 {offsets = [3, 0, 0], sizes = [1, 16, 1], strides = [1, 1, 1]} : vector<9x16x1xf32> to vector<1x16x1xf32>
    %327 = vector.shape_cast %326 : vector<1x16x1xf32> to vector<16x1xf32>
    %328 = vector.broadcast %327 : vector<16x1xf32> to vector<16x128xf32>
    %329 = arith.mulf %325, %328 : vector<16x128xf32>
    %330 = arith.addf %323, %329 : vector<16x128xf32>
    %c0_190 = arith.constant 0 : index
    %c5_191 = arith.constant 5 : index
    %c0_192 = arith.constant 0 : index
    %c1_193 = arith.constant 1 : index
    %331 = vector.load %arg2[%c0_190, %c5_191, %c0_192, %c1_193] : memref<1x8x16x256xf32, #tpu.memory_space<vmem>>, vector<1x1x16x128xf32>
    %332 = vector.shape_cast %331 : vector<1x1x16x128xf32> to vector<16x128xf32>
    %333 = vector.extract_strided_slice %0 {offsets = [4, 0, 0], sizes = [1, 16, 1], strides = [1, 1, 1]} : vector<9x16x1xf32> to vector<1x16x1xf32>
    %334 = vector.shape_cast %333 : vector<1x16x1xf32> to vector<16x1xf32>
    %335 = vector.broadcast %334 : vector<16x1xf32> to vector<16x128xf32>
    %336 = arith.mulf %332, %335 : vector<16x128xf32>
    %337 = arith.addf %330, %336 : vector<16x128xf32>
    %c0_194 = arith.constant 0 : index
    %c5_195 = arith.constant 5 : index
    %c0_196 = arith.constant 0 : index
    %c2_197 = arith.constant 2 : index
    %338 = vector.load %arg2[%c0_194, %c5_195, %c0_196, %c2_197] : memref<1x8x16x256xf32, #tpu.memory_space<vmem>>, vector<1x1x16x128xf32>
    %339 = vector.shape_cast %338 : vector<1x1x16x128xf32> to vector<16x128xf32>
    %340 = vector.extract_strided_slice %0 {offsets = [5, 0, 0], sizes = [1, 16, 1], strides = [1, 1, 1]} : vector<9x16x1xf32> to vector<1x16x1xf32>
    %341 = vector.shape_cast %340 : vector<1x16x1xf32> to vector<16x1xf32>
    %342 = vector.broadcast %341 : vector<16x1xf32> to vector<16x128xf32>
    %343 = arith.mulf %339, %342 : vector<16x128xf32>
    %344 = arith.addf %337, %343 : vector<16x128xf32>
    %c0_198 = arith.constant 0 : index
    %c6 = arith.constant 6 : index
    %c0_199 = arith.constant 0 : index
    %c0_200 = arith.constant 0 : index
    %345 = vector.load %arg2[%c0_198, %c6, %c0_199, %c0_200] : memref<1x8x16x256xf32, #tpu.memory_space<vmem>>, vector<1x1x16x128xf32>
    %346 = vector.shape_cast %345 : vector<1x1x16x128xf32> to vector<16x128xf32>
    %347 = vector.extract_strided_slice %0 {offsets = [6, 0, 0], sizes = [1, 16, 1], strides = [1, 1, 1]} : vector<9x16x1xf32> to vector<1x16x1xf32>
    %348 = vector.shape_cast %347 : vector<1x16x1xf32> to vector<16x1xf32>
    %349 = vector.broadcast %348 : vector<16x1xf32> to vector<16x128xf32>
    %350 = arith.mulf %346, %349 : vector<16x128xf32>
    %351 = arith.addf %344, %350 : vector<16x128xf32>
    %c0_201 = arith.constant 0 : index
    %c6_202 = arith.constant 6 : index
    %c0_203 = arith.constant 0 : index
    %c1_204 = arith.constant 1 : index
    %352 = vector.load %arg2[%c0_201, %c6_202, %c0_203, %c1_204] : memref<1x8x16x256xf32, #tpu.memory_space<vmem>>, vector<1x1x16x128xf32>
    %353 = vector.shape_cast %352 : vector<1x1x16x128xf32> to vector<16x128xf32>
    %354 = vector.extract_strided_slice %0 {offsets = [7, 0, 0], sizes = [1, 16, 1], strides = [1, 1, 1]} : vector<9x16x1xf32> to vector<1x16x1xf32>
    %355 = vector.shape_cast %354 : vector<1x16x1xf32> to vector<16x1xf32>
    %356 = vector.broadcast %355 : vector<16x1xf32> to vector<16x128xf32>
    %357 = arith.mulf %353, %356 : vector<16x128xf32>
    %358 = arith.addf %351, %357 : vector<16x128xf32>
    %c0_205 = arith.constant 0 : index
    %c6_206 = arith.constant 6 : index
    %c0_207 = arith.constant 0 : index
    %c2_208 = arith.constant 2 : index
    %359 = vector.load %arg2[%c0_205, %c6_206, %c0_207, %c2_208] : memref<1x8x16x256xf32, #tpu.memory_space<vmem>>, vector<1x1x16x128xf32>
    %360 = vector.shape_cast %359 : vector<1x1x16x128xf32> to vector<16x128xf32>
    %361 = vector.extract_strided_slice %0 {offsets = [8, 0, 0], sizes = [1, 16, 1], strides = [1, 1, 1]} : vector<9x16x1xf32> to vector<1x16x1xf32>
    %362 = vector.shape_cast %361 : vector<1x16x1xf32> to vector<16x1xf32>
    %363 = vector.broadcast %362 : vector<16x1xf32> to vector<16x128xf32>
    %364 = arith.mulf %360, %363 : vector<16x128xf32>
    %365 = arith.addf %358, %364 : vector<16x128xf32>
    %366 = vector.broadcast %1 : vector<16x1xf32> to vector<16x128xf32>
    %367 = arith.addf %365, %366 : vector<16x128xf32>
    %cst_209 = arith.constant 0.000000e+00 : f32
    %cst_210 = arith.constant 6.000000e+00 : f32
    %368 = vector.broadcast %cst_209 : f32 to vector<16x128xf32>
    %369 = arith.maximumf %368, %367 : vector<16x128xf32>
    %370 = vector.broadcast %cst_210 : f32 to vector<16x128xf32>
    %371 = arith.minimumf %370, %369 : vector<16x128xf32>
    %372 = arith.truncf %371 : vector<16x128xf32> to vector<16x128xbf16>
    %cst_211 = arith.constant dense<0.000000e+00> : vector<16x128xf32>
    %373 = tpu.matmul %2, %372, %cst_211 {dimension_numbers = #tpu.dot_dimension_numbers<[1], [0], [0], [1], [0, 0, 1, 1], [], []>} : vector<16x16xbf16>, vector<16x128xbf16>, vector<16x128xf32> -> vector<16x128xf32>
    %374 = vector.broadcast %3 : vector<16x1xf32> to vector<16x128xf32>
    %375 = arith.addf %373, %374 : vector<16x128xf32>
    %c0_212 = arith.constant 0 : index
    %c4_213 = arith.constant 4 : index
    %c0_214 = arith.constant 0 : index
    %c0_215 = arith.constant 0 : index
    %376 = vector.load %arg8[%c0_212, %c4_213, %c0_214, %c0_215] : memref<1x8x16x128xf32, #tpu.memory_space<vmem>>, vector<1x1x16x128xf32>
    %377 = vector.shape_cast %376 : vector<1x1x16x128xf32> to vector<16x128xf32>
    %378 = vector.shape_cast %375 : vector<16x128xf32> to vector<1x1x16x128xf32>
    tpu.vector_store %arg8[%c0_212, %c4_213, %c0_214, %c0_215], %378 {strides = array<i32>} : memref<1x8x16x128xf32, #tpu.memory_space<vmem>>, vector<1x1x16x128xf32>,
    %c0_216 = arith.constant 0 : index
    %c5_217 = arith.constant 5 : index
    %c0_218 = arith.constant 0 : index
    %c0_219 = arith.constant 0 : index
    %379 = vector.load %arg2[%c0_216, %c5_217, %c0_218, %c0_219] : memref<1x8x16x256xf32, #tpu.memory_space<vmem>>, vector<1x1x16x128xf32>
    %380 = vector.shape_cast %379 : vector<1x1x16x128xf32> to vector<16x128xf32>
    %381 = vector.extract_strided_slice %0 {offsets = [0, 0, 0], sizes = [1, 16, 1], strides = [1, 1, 1]} : vector<9x16x1xf32> to vector<1x16x1xf32>
    %382 = vector.shape_cast %381 : vector<1x16x1xf32> to vector<16x1xf32>
    %383 = vector.broadcast %382 : vector<16x1xf32> to vector<16x128xf32>
    %384 = arith.mulf %380, %383 : vector<16x128xf32>
    %c0_220 = arith.constant 0 : index
    %c5_221 = arith.constant 5 : index
    %c0_222 = arith.constant 0 : index
    %c1_223 = arith.constant 1 : index
    %385 = vector.load %arg2[%c0_220, %c5_221, %c0_222, %c1_223] : memref<1x8x16x256xf32, #tpu.memory_space<vmem>>, vector<1x1x16x128xf32>
    %386 = vector.shape_cast %385 : vector<1x1x16x128xf32> to vector<16x128xf32>
    %387 = vector.extract_strided_slice %0 {offsets = [1, 0, 0], sizes = [1, 16, 1], strides = [1, 1, 1]} : vector<9x16x1xf32> to vector<1x16x1xf32>
    %388 = vector.shape_cast %387 : vector<1x16x1xf32> to vector<16x1xf32>
    %389 = vector.broadcast %388 : vector<16x1xf32> to vector<16x128xf32>
    %390 = arith.mulf %386, %389 : vector<16x128xf32>
    %391 = arith.addf %384, %390 : vector<16x128xf32>
    %c0_224 = arith.constant 0 : index
    %c5_225 = arith.constant 5 : index
    %c0_226 = arith.constant 0 : index
    %c2_227 = arith.constant 2 : index
    %392 = vector.load %arg2[%c0_224, %c5_225, %c0_226, %c2_227] : memref<1x8x16x256xf32, #tpu.memory_space<vmem>>, vector<1x1x16x128xf32>
    %393 = vector.shape_cast %392 : vector<1x1x16x128xf32> to vector<16x128xf32>
    %394 = vector.extract_strided_slice %0 {offsets = [2, 0, 0], sizes = [1, 16, 1], strides = [1, 1, 1]} : vector<9x16x1xf32> to vector<1x16x1xf32>
    %395 = vector.shape_cast %394 : vector<1x16x1xf32> to vector<16x1xf32>
    %396 = vector.broadcast %395 : vector<16x1xf32> to vector<16x128xf32>
    %397 = arith.mulf %393, %396 : vector<16x128xf32>
    %398 = arith.addf %391, %397 : vector<16x128xf32>
    %c0_228 = arith.constant 0 : index
    %c6_229 = arith.constant 6 : index
    %c0_230 = arith.constant 0 : index
    %c0_231 = arith.constant 0 : index
    %399 = vector.load %arg2[%c0_228, %c6_229, %c0_230, %c0_231] : memref<1x8x16x256xf32, #tpu.memory_space<vmem>>, vector<1x1x16x128xf32>
    %400 = vector.shape_cast %399 : vector<1x1x16x128xf32> to vector<16x128xf32>
    %401 = vector.extract_strided_slice %0 {offsets = [3, 0, 0], sizes = [1, 16, 1], strides = [1, 1, 1]} : vector<9x16x1xf32> to vector<1x16x1xf32>
    %402 = vector.shape_cast %401 : vector<1x16x1xf32> to vector<16x1xf32>
    %403 = vector.broadcast %402 : vector<16x1xf32> to vector<16x128xf32>
    %404 = arith.mulf %400, %403 : vector<16x128xf32>
    %405 = arith.addf %398, %404 : vector<16x128xf32>
    %c0_232 = arith.constant 0 : index
    %c6_233 = arith.constant 6 : index
    %c0_234 = arith.constant 0 : index
    %c1_235 = arith.constant 1 : index
    %406 = vector.load %arg2[%c0_232, %c6_233, %c0_234, %c1_235] : memref<1x8x16x256xf32, #tpu.memory_space<vmem>>, vector<1x1x16x128xf32>
    %407 = vector.shape_cast %406 : vector<1x1x16x128xf32> to vector<16x128xf32>
    %408 = vector.extract_strided_slice %0 {offsets = [4, 0, 0], sizes = [1, 16, 1], strides = [1, 1, 1]} : vector<9x16x1xf32> to vector<1x16x1xf32>
    %409 = vector.shape_cast %408 : vector<1x16x1xf32> to vector<16x1xf32>
    %410 = vector.broadcast %409 : vector<16x1xf32> to vector<16x128xf32>
    %411 = arith.mulf %407, %410 : vector<16x128xf32>
    %412 = arith.addf %405, %411 : vector<16x128xf32>
    %c0_236 = arith.constant 0 : index
    %c6_237 = arith.constant 6 : index
    %c0_238 = arith.constant 0 : index
    %c2_239 = arith.constant 2 : index
    %413 = vector.load %arg2[%c0_236, %c6_237, %c0_238, %c2_239] : memref<1x8x16x256xf32, #tpu.memory_space<vmem>>, vector<1x1x16x128xf32>
    %414 = vector.shape_cast %413 : vector<1x1x16x128xf32> to vector<16x128xf32>
    %415 = vector.extract_strided_slice %0 {offsets = [5, 0, 0], sizes = [1, 16, 1], strides = [1, 1, 1]} : vector<9x16x1xf32> to vector<1x16x1xf32>
    %416 = vector.shape_cast %415 : vector<1x16x1xf32> to vector<16x1xf32>
    %417 = vector.broadcast %416 : vector<16x1xf32> to vector<16x128xf32>
    %418 = arith.mulf %414, %417 : vector<16x128xf32>
    %419 = arith.addf %412, %418 : vector<16x128xf32>
    %c0_240 = arith.constant 0 : index
    %c7 = arith.constant 7 : index
    %c0_241 = arith.constant 0 : index
    %c0_242 = arith.constant 0 : index
    %420 = vector.load %arg2[%c0_240, %c7, %c0_241, %c0_242] : memref<1x8x16x256xf32, #tpu.memory_space<vmem>>, vector<1x1x16x128xf32>
    %421 = vector.shape_cast %420 : vector<1x1x16x128xf32> to vector<16x128xf32>
    %422 = vector.extract_strided_slice %0 {offsets = [6, 0, 0], sizes = [1, 16, 1], strides = [1, 1, 1]} : vector<9x16x1xf32> to vector<1x16x1xf32>
    %423 = vector.shape_cast %422 : vector<1x16x1xf32> to vector<16x1xf32>
    %424 = vector.broadcast %423 : vector<16x1xf32> to vector<16x128xf32>
    %425 = arith.mulf %421, %424 : vector<16x128xf32>
    %426 = arith.addf %419, %425 : vector<16x128xf32>
    %c0_243 = arith.constant 0 : index
    %c7_244 = arith.constant 7 : index
    %c0_245 = arith.constant 0 : index
    %c1_246 = arith.constant 1 : index
    %427 = vector.load %arg2[%c0_243, %c7_244, %c0_245, %c1_246] : memref<1x8x16x256xf32, #tpu.memory_space<vmem>>, vector<1x1x16x128xf32>
    %428 = vector.shape_cast %427 : vector<1x1x16x128xf32> to vector<16x128xf32>
    %429 = vector.extract_strided_slice %0 {offsets = [7, 0, 0], sizes = [1, 16, 1], strides = [1, 1, 1]} : vector<9x16x1xf32> to vector<1x16x1xf32>
    %430 = vector.shape_cast %429 : vector<1x16x1xf32> to vector<16x1xf32>
    %431 = vector.broadcast %430 : vector<16x1xf32> to vector<16x128xf32>
    %432 = arith.mulf %428, %431 : vector<16x128xf32>
    %433 = arith.addf %426, %432 : vector<16x128xf32>
    %c0_247 = arith.constant 0 : index
    %c7_248 = arith.constant 7 : index
    %c0_249 = arith.constant 0 : index
    %c2_250 = arith.constant 2 : index
    %434 = vector.load %arg2[%c0_247, %c7_248, %c0_249, %c2_250] : memref<1x8x16x256xf32, #tpu.memory_space<vmem>>, vector<1x1x16x128xf32>
    %435 = vector.shape_cast %434 : vector<1x1x16x128xf32> to vector<16x128xf32>
    %436 = vector.extract_strided_slice %0 {offsets = [8, 0, 0], sizes = [1, 16, 1], strides = [1, 1, 1]} : vector<9x16x1xf32> to vector<1x16x1xf32>
    %437 = vector.shape_cast %436 : vector<1x16x1xf32> to vector<16x1xf32>
    %438 = vector.broadcast %437 : vector<16x1xf32> to vector<16x128xf32>
    %439 = arith.mulf %435, %438 : vector<16x128xf32>
    %440 = arith.addf %433, %439 : vector<16x128xf32>
    %441 = vector.broadcast %1 : vector<16x1xf32> to vector<16x128xf32>
    %442 = arith.addf %440, %441 : vector<16x128xf32>
    %cst_251 = arith.constant 0.000000e+00 : f32
    %cst_252 = arith.constant 6.000000e+00 : f32
    %443 = vector.broadcast %cst_251 : f32 to vector<16x128xf32>
    %444 = arith.maximumf %443, %442 : vector<16x128xf32>
    %445 = vector.broadcast %cst_252 : f32 to vector<16x128xf32>
    %446 = arith.minimumf %445, %444 : vector<16x128xf32>
    %447 = arith.truncf %446 : vector<16x128xf32> to vector<16x128xbf16>
    %cst_253 = arith.constant dense<0.000000e+00> : vector<16x128xf32>
    %448 = tpu.matmul %2, %447, %cst_253 {dimension_numbers = #tpu.dot_dimension_numbers<[1], [0], [0], [1], [0, 0, 1, 1], [], []>} : vector<16x16xbf16>, vector<16x128xbf16>, vector<16x128xf32> -> vector<16x128xf32>
    %449 = vector.broadcast %3 : vector<16x1xf32> to vector<16x128xf32>
    %450 = arith.addf %448, %449 : vector<16x128xf32>
    %c0_254 = arith.constant 0 : index
    %c5_255 = arith.constant 5 : index
    %c0_256 = arith.constant 0 : index
    %c0_257 = arith.constant 0 : index
    %451 = vector.load %arg8[%c0_254, %c5_255, %c0_256, %c0_257] : memref<1x8x16x128xf32, #tpu.memory_space<vmem>>, vector<1x1x16x128xf32>
    %452 = vector.shape_cast %451 : vector<1x1x16x128xf32> to vector<16x128xf32>
    %453 = vector.shape_cast %450 : vector<16x128xf32> to vector<1x1x16x128xf32>
    tpu.vector_store %arg8[%c0_254, %c5_255, %c0_256, %c0_257], %453 {strides = array<i32>} : memref<1x8x16x128xf32, #tpu.memory_space<vmem>>, vector<1x1x16x128xf32>,
    %c0_258 = arith.constant 0 : index
    %c6_259 = arith.constant 6 : index
    %c0_260 = arith.constant 0 : index
    %c0_261 = arith.constant 0 : index
    %454 = vector.load %arg2[%c0_258, %c6_259, %c0_260, %c0_261] : memref<1x8x16x256xf32, #tpu.memory_space<vmem>>, vector<1x1x16x128xf32>
    %455 = vector.shape_cast %454 : vector<1x1x16x128xf32> to vector<16x128xf32>
    %456 = vector.extract_strided_slice %0 {offsets = [0, 0, 0], sizes = [1, 16, 1], strides = [1, 1, 1]} : vector<9x16x1xf32> to vector<1x16x1xf32>
    %457 = vector.shape_cast %456 : vector<1x16x1xf32> to vector<16x1xf32>
    %458 = vector.broadcast %457 : vector<16x1xf32> to vector<16x128xf32>
    %459 = arith.mulf %455, %458 : vector<16x128xf32>
    %c0_262 = arith.constant 0 : index
    %c6_263 = arith.constant 6 : index
    %c0_264 = arith.constant 0 : index
    %c1_265 = arith.constant 1 : index
    %460 = vector.load %arg2[%c0_262, %c6_263, %c0_264, %c1_265] : memref<1x8x16x256xf32, #tpu.memory_space<vmem>>, vector<1x1x16x128xf32>
    %461 = vector.shape_cast %460 : vector<1x1x16x128xf32> to vector<16x128xf32>
    %462 = vector.extract_strided_slice %0 {offsets = [1, 0, 0], sizes = [1, 16, 1], strides = [1, 1, 1]} : vector<9x16x1xf32> to vector<1x16x1xf32>
    %463 = vector.shape_cast %462 : vector<1x16x1xf32> to vector<16x1xf32>
    %464 = vector.broadcast %463 : vector<16x1xf32> to vector<16x128xf32>
    %465 = arith.mulf %461, %464 : vector<16x128xf32>
    %466 = arith.addf %459, %465 : vector<16x128xf32>
    %c0_266 = arith.constant 0 : index
    %c6_267 = arith.constant 6 : index
    %c0_268 = arith.constant 0 : index
    %c2_269 = arith.constant 2 : index
    %467 = vector.load %arg2[%c0_266, %c6_267, %c0_268, %c2_269] : memref<1x8x16x256xf32, #tpu.memory_space<vmem>>, vector<1x1x16x128xf32>
    %468 = vector.shape_cast %467 : vector<1x1x16x128xf32> to vector<16x128xf32>
    %469 = vector.extract_strided_slice %0 {offsets = [2, 0, 0], sizes = [1, 16, 1], strides = [1, 1, 1]} : vector<9x16x1xf32> to vector<1x16x1xf32>
    %470 = vector.shape_cast %469 : vector<1x16x1xf32> to vector<16x1xf32>
    %471 = vector.broadcast %470 : vector<16x1xf32> to vector<16x128xf32>
    %472 = arith.mulf %468, %471 : vector<16x128xf32>
    %473 = arith.addf %466, %472 : vector<16x128xf32>
    %c0_270 = arith.constant 0 : index
    %c7_271 = arith.constant 7 : index
    %c0_272 = arith.constant 0 : index
    %c0_273 = arith.constant 0 : index
    %474 = vector.load %arg2[%c0_270, %c7_271, %c0_272, %c0_273] : memref<1x8x16x256xf32, #tpu.memory_space<vmem>>, vector<1x1x16x128xf32>
    %475 = vector.shape_cast %474 : vector<1x1x16x128xf32> to vector<16x128xf32>
    %476 = vector.extract_strided_slice %0 {offsets = [3, 0, 0], sizes = [1, 16, 1], strides = [1, 1, 1]} : vector<9x16x1xf32> to vector<1x16x1xf32>
    %477 = vector.shape_cast %476 : vector<1x16x1xf32> to vector<16x1xf32>
    %478 = vector.broadcast %477 : vector<16x1xf32> to vector<16x128xf32>
    %479 = arith.mulf %475, %478 : vector<16x128xf32>
    %480 = arith.addf %473, %479 : vector<16x128xf32>
    %c0_274 = arith.constant 0 : index
    %c7_275 = arith.constant 7 : index
    %c0_276 = arith.constant 0 : index
    %c1_277 = arith.constant 1 : index
    %481 = vector.load %arg2[%c0_274, %c7_275, %c0_276, %c1_277] : memref<1x8x16x256xf32, #tpu.memory_space<vmem>>, vector<1x1x16x128xf32>
    %482 = vector.shape_cast %481 : vector<1x1x16x128xf32> to vector<16x128xf32>
    %483 = vector.extract_strided_slice %0 {offsets = [4, 0, 0], sizes = [1, 16, 1], strides = [1, 1, 1]} : vector<9x16x1xf32> to vector<1x16x1xf32>
    %484 = vector.shape_cast %483 : vector<1x16x1xf32> to vector<16x1xf32>
    %485 = vector.broadcast %484 : vector<16x1xf32> to vector<16x128xf32>
    %486 = arith.mulf %482, %485 : vector<16x128xf32>
    %487 = arith.addf %480, %486 : vector<16x128xf32>
    %c0_278 = arith.constant 0 : index
    %c7_279 = arith.constant 7 : index
    %c0_280 = arith.constant 0 : index
    %c2_281 = arith.constant 2 : index
    %488 = vector.load %arg2[%c0_278, %c7_279, %c0_280, %c2_281] : memref<1x8x16x256xf32, #tpu.memory_space<vmem>>, vector<1x1x16x128xf32>
    %489 = vector.shape_cast %488 : vector<1x1x16x128xf32> to vector<16x128xf32>
    %490 = vector.extract_strided_slice %0 {offsets = [5, 0, 0], sizes = [1, 16, 1], strides = [1, 1, 1]} : vector<9x16x1xf32> to vector<1x16x1xf32>
    %491 = vector.shape_cast %490 : vector<1x16x1xf32> to vector<16x1xf32>
    %492 = vector.broadcast %491 : vector<16x1xf32> to vector<16x128xf32>
    %493 = arith.mulf %489, %492 : vector<16x128xf32>
    %494 = arith.addf %487, %493 : vector<16x128xf32>
    %c0_282 = arith.constant 0 : index
    %c0_283 = arith.constant 0 : index
    %c0_284 = arith.constant 0 : index
    %c0_285 = arith.constant 0 : index
    %495 = vector.load %arg3[%c0_282, %c0_283, %c0_284, %c0_285] : memref<1x2x16x256xf32, #tpu.memory_space<vmem>>, vector<1x1x16x128xf32>
    %496 = vector.shape_cast %495 : vector<1x1x16x128xf32> to vector<16x128xf32>
    %497 = vector.extract_strided_slice %0 {offsets = [6, 0, 0], sizes = [1, 16, 1], strides = [1, 1, 1]} : vector<9x16x1xf32> to vector<1x16x1xf32>
    %498 = vector.shape_cast %497 : vector<1x16x1xf32> to vector<16x1xf32>
    %499 = vector.broadcast %498 : vector<16x1xf32> to vector<16x128xf32>
    %500 = arith.mulf %496, %499 : vector<16x128xf32>
    %501 = arith.addf %494, %500 : vector<16x128xf32>
    %c0_286 = arith.constant 0 : index
    %c0_287 = arith.constant 0 : index
    %c0_288 = arith.constant 0 : index
    %c1_289 = arith.constant 1 : index
    %502 = vector.load %arg3[%c0_286, %c0_287, %c0_288, %c1_289] : memref<1x2x16x256xf32, #tpu.memory_space<vmem>>, vector<1x1x16x128xf32>
    %503 = vector.shape_cast %502 : vector<1x1x16x128xf32> to vector<16x128xf32>
    %504 = vector.extract_strided_slice %0 {offsets = [7, 0, 0], sizes = [1, 16, 1], strides = [1, 1, 1]} : vector<9x16x1xf32> to vector<1x16x1xf32>
    %505 = vector.shape_cast %504 : vector<1x16x1xf32> to vector<16x1xf32>
    %506 = vector.broadcast %505 : vector<16x1xf32> to vector<16x128xf32>
    %507 = arith.mulf %503, %506 : vector<16x128xf32>
    %508 = arith.addf %501, %507 : vector<16x128xf32>
    %c0_290 = arith.constant 0 : index
    %c0_291 = arith.constant 0 : index
    %c0_292 = arith.constant 0 : index
    %c2_293 = arith.constant 2 : index
    %509 = vector.load %arg3[%c0_290, %c0_291, %c0_292, %c2_293] : memref<1x2x16x256xf32, #tpu.memory_space<vmem>>, vector<1x1x16x128xf32>
    %510 = vector.shape_cast %509 : vector<1x1x16x128xf32> to vector<16x128xf32>
    %511 = vector.extract_strided_slice %0 {offsets = [8, 0, 0], sizes = [1, 16, 1], strides = [1, 1, 1]} : vector<9x16x1xf32> to vector<1x16x1xf32>
    %512 = vector.shape_cast %511 : vector<1x16x1xf32> to vector<16x1xf32>
    %513 = vector.broadcast %512 : vector<16x1xf32> to vector<16x128xf32>
    %514 = arith.mulf %510, %513 : vector<16x128xf32>
    %515 = arith.addf %508, %514 : vector<16x128xf32>
    %516 = vector.broadcast %1 : vector<16x1xf32> to vector<16x128xf32>
    %517 = arith.addf %515, %516 : vector<16x128xf32>
    %cst_294 = arith.constant 0.000000e+00 : f32
    %cst_295 = arith.constant 6.000000e+00 : f32
    %518 = vector.broadcast %cst_294 : f32 to vector<16x128xf32>
    %519 = arith.maximumf %518, %517 : vector<16x128xf32>
    %520 = vector.broadcast %cst_295 : f32 to vector<16x128xf32>
    %521 = arith.minimumf %520, %519 : vector<16x128xf32>
    %522 = arith.truncf %521 : vector<16x128xf32> to vector<16x128xbf16>
    %cst_296 = arith.constant dense<0.000000e+00> : vector<16x128xf32>
    %523 = tpu.matmul %2, %522, %cst_296 {dimension_numbers = #tpu.dot_dimension_numbers<[1], [0], [0], [1], [0, 0, 1, 1], [], []>} : vector<16x16xbf16>, vector<16x128xbf16>, vector<16x128xf32> -> vector<16x128xf32>
    %524 = vector.broadcast %3 : vector<16x1xf32> to vector<16x128xf32>
    %525 = arith.addf %523, %524 : vector<16x128xf32>
    %c0_297 = arith.constant 0 : index
    %c6_298 = arith.constant 6 : index
    %c0_299 = arith.constant 0 : index
    %c0_300 = arith.constant 0 : index
    %526 = vector.load %arg8[%c0_297, %c6_298, %c0_299, %c0_300] : memref<1x8x16x128xf32, #tpu.memory_space<vmem>>, vector<1x1x16x128xf32>
    %527 = vector.shape_cast %526 : vector<1x1x16x128xf32> to vector<16x128xf32>
    %528 = vector.shape_cast %525 : vector<16x128xf32> to vector<1x1x16x128xf32>
    tpu.vector_store %arg8[%c0_297, %c6_298, %c0_299, %c0_300], %528 {strides = array<i32>} : memref<1x8x16x128xf32, #tpu.memory_space<vmem>>, vector<1x1x16x128xf32>,
    %c0_301 = arith.constant 0 : index
    %c7_302 = arith.constant 7 : index
    %c0_303 = arith.constant 0 : index
    %c0_304 = arith.constant 0 : index
    %529 = vector.load %arg2[%c0_301, %c7_302, %c0_303, %c0_304] : memref<1x8x16x256xf32, #tpu.memory_space<vmem>>, vector<1x1x16x128xf32>
    %530 = vector.shape_cast %529 : vector<1x1x16x128xf32> to vector<16x128xf32>
    %531 = vector.extract_strided_slice %0 {offsets = [0, 0, 0], sizes = [1, 16, 1], strides = [1, 1, 1]} : vector<9x16x1xf32> to vector<1x16x1xf32>
    %532 = vector.shape_cast %531 : vector<1x16x1xf32> to vector<16x1xf32>
    %533 = vector.broadcast %532 : vector<16x1xf32> to vector<16x128xf32>
    %534 = arith.mulf %530, %533 : vector<16x128xf32>
    %c0_305 = arith.constant 0 : index
    %c7_306 = arith.constant 7 : index
    %c0_307 = arith.constant 0 : index
    %c1_308 = arith.constant 1 : index
    %535 = vector.load %arg2[%c0_305, %c7_306, %c0_307, %c1_308] : memref<1x8x16x256xf32, #tpu.memory_space<vmem>>, vector<1x1x16x128xf32>
    %536 = vector.shape_cast %535 : vector<1x1x16x128xf32> to vector<16x128xf32>
    %537 = vector.extract_strided_slice %0 {offsets = [1, 0, 0], sizes = [1, 16, 1], strides = [1, 1, 1]} : vector<9x16x1xf32> to vector<1x16x1xf32>
    %538 = vector.shape_cast %537 : vector<1x16x1xf32> to vector<16x1xf32>
    %539 = vector.broadcast %538 : vector<16x1xf32> to vector<16x128xf32>
    %540 = arith.mulf %536, %539 : vector<16x128xf32>
    %541 = arith.addf %534, %540 : vector<16x128xf32>
    %c0_309 = arith.constant 0 : index
    %c7_310 = arith.constant 7 : index
    %c0_311 = arith.constant 0 : index
    %c2_312 = arith.constant 2 : index
    %542 = vector.load %arg2[%c0_309, %c7_310, %c0_311, %c2_312] : memref<1x8x16x256xf32, #tpu.memory_space<vmem>>, vector<1x1x16x128xf32>
    %543 = vector.shape_cast %542 : vector<1x1x16x128xf32> to vector<16x128xf32>
    %544 = vector.extract_strided_slice %0 {offsets = [2, 0, 0], sizes = [1, 16, 1], strides = [1, 1, 1]} : vector<9x16x1xf32> to vector<1x16x1xf32>
    %545 = vector.shape_cast %544 : vector<1x16x1xf32> to vector<16x1xf32>
    %546 = vector.broadcast %545 : vector<16x1xf32> to vector<16x128xf32>
    %547 = arith.mulf %543, %546 : vector<16x128xf32>
    %548 = arith.addf %541, %547 : vector<16x128xf32>
    %c0_313 = arith.constant 0 : index
    %c0_314 = arith.constant 0 : index
    %c0_315 = arith.constant 0 : index
    %c0_316 = arith.constant 0 : index
    %549 = vector.load %arg3[%c0_313, %c0_314, %c0_315, %c0_316] : memref<1x2x16x256xf32, #tpu.memory_space<vmem>>, vector<1x1x16x128xf32>
    %550 = vector.shape_cast %549 : vector<1x1x16x128xf32> to vector<16x128xf32>
    %551 = vector.extract_strided_slice %0 {offsets = [3, 0, 0], sizes = [1, 16, 1], strides = [1, 1, 1]} : vector<9x16x1xf32> to vector<1x16x1xf32>
    %552 = vector.shape_cast %551 : vector<1x16x1xf32> to vector<16x1xf32>
    %553 = vector.broadcast %552 : vector<16x1xf32> to vector<16x128xf32>
    %554 = arith.mulf %550, %553 : vector<16x128xf32>
    %555 = arith.addf %548, %554 : vector<16x128xf32>
    %c0_317 = arith.constant 0 : index
    %c0_318 = arith.constant 0 : index
    %c0_319 = arith.constant 0 : index
    %c1_320 = arith.constant 1 : index
    %556 = vector.load %arg3[%c0_317, %c0_318, %c0_319, %c1_320] : memref<1x2x16x256xf32, #tpu.memory_space<vmem>>, vector<1x1x16x128xf32>
    %557 = vector.shape_cast %556 : vector<1x1x16x128xf32> to vector<16x128xf32>
    %558 = vector.extract_strided_slice %0 {offsets = [4, 0, 0], sizes = [1, 16, 1], strides = [1, 1, 1]} : vector<9x16x1xf32> to vector<1x16x1xf32>
    %559 = vector.shape_cast %558 : vector<1x16x1xf32> to vector<16x1xf32>
    %560 = vector.broadcast %559 : vector<16x1xf32> to vector<16x128xf32>
    %561 = arith.mulf %557, %560 : vector<16x128xf32>
    %562 = arith.addf %555, %561 : vector<16x128xf32>
    %c0_321 = arith.constant 0 : index
    %c0_322 = arith.constant 0 : index
    %c0_323 = arith.constant 0 : index
    %c2_324 = arith.constant 2 : index
    %563 = vector.load %arg3[%c0_321, %c0_322, %c0_323, %c2_324] : memref<1x2x16x256xf32, #tpu.memory_space<vmem>>, vector<1x1x16x128xf32>
    %564 = vector.shape_cast %563 : vector<1x1x16x128xf32> to vector<16x128xf32>
    %565 = vector.extract_strided_slice %0 {offsets = [5, 0, 0], sizes = [1, 16, 1], strides = [1, 1, 1]} : vector<9x16x1xf32> to vector<1x16x1xf32>
    %566 = vector.shape_cast %565 : vector<1x16x1xf32> to vector<16x1xf32>
    %567 = vector.broadcast %566 : vector<16x1xf32> to vector<16x128xf32>
    %568 = arith.mulf %564, %567 : vector<16x128xf32>
    %569 = arith.addf %562, %568 : vector<16x128xf32>
    %c0_325 = arith.constant 0 : index
    %c1_326 = arith.constant 1 : index
    %c0_327 = arith.constant 0 : index
    %c0_328 = arith.constant 0 : index
    %570 = vector.load %arg3[%c0_325, %c1_326, %c0_327, %c0_328] : memref<1x2x16x256xf32, #tpu.memory_space<vmem>>, vector<1x1x16x128xf32>
    %571 = vector.shape_cast %570 : vector<1x1x16x128xf32> to vector<16x128xf32>
    %572 = vector.extract_strided_slice %0 {offsets = [6, 0, 0], sizes = [1, 16, 1], strides = [1, 1, 1]} : vector<9x16x1xf32> to vector<1x16x1xf32>
    %573 = vector.shape_cast %572 : vector<1x16x1xf32> to vector<16x1xf32>
    %574 = vector.broadcast %573 : vector<16x1xf32> to vector<16x128xf32>
    %575 = arith.mulf %571, %574 : vector<16x128xf32>
    %576 = arith.addf %569, %575 : vector<16x128xf32>
    %c0_329 = arith.constant 0 : index
    %c1_330 = arith.constant 1 : index
    %c0_331 = arith.constant 0 : index
    %c1_332 = arith.constant 1 : index
    %577 = vector.load %arg3[%c0_329, %c1_330, %c0_331, %c1_332] : memref<1x2x16x256xf32, #tpu.memory_space<vmem>>, vector<1x1x16x128xf32>
    %578 = vector.shape_cast %577 : vector<1x1x16x128xf32> to vector<16x128xf32>
    %579 = vector.extract_strided_slice %0 {offsets = [7, 0, 0], sizes = [1, 16, 1], strides = [1, 1, 1]} : vector<9x16x1xf32> to vector<1x16x1xf32>
    %580 = vector.shape_cast %579 : vector<1x16x1xf32> to vector<16x1xf32>
    %581 = vector.broadcast %580 : vector<16x1xf32> to vector<16x128xf32>
    %582 = arith.mulf %578, %581 : vector<16x128xf32>
    %583 = arith.addf %576, %582 : vector<16x128xf32>
    %c0_333 = arith.constant 0 : index
    %c1_334 = arith.constant 1 : index
    %c0_335 = arith.constant 0 : index
    %c2_336 = arith.constant 2 : index
    %584 = vector.load %arg3[%c0_333, %c1_334, %c0_335, %c2_336] : memref<1x2x16x256xf32, #tpu.memory_space<vmem>>, vector<1x1x16x128xf32>
    %585 = vector.shape_cast %584 : vector<1x1x16x128xf32> to vector<16x128xf32>
    %586 = vector.extract_strided_slice %0 {offsets = [8, 0, 0], sizes = [1, 16, 1], strides = [1, 1, 1]} : vector<9x16x1xf32> to vector<1x16x1xf32>
    %587 = vector.shape_cast %586 : vector<1x16x1xf32> to vector<16x1xf32>
    %588 = vector.broadcast %587 : vector<16x1xf32> to vector<16x128xf32>
    %589 = arith.mulf %585, %588 : vector<16x128xf32>
    %590 = arith.addf %583, %589 : vector<16x128xf32>
    %591 = vector.broadcast %1 : vector<16x1xf32> to vector<16x128xf32>
    %592 = arith.addf %590, %591 : vector<16x128xf32>
    %cst_337 = arith.constant 0.000000e+00 : f32
    %cst_338 = arith.constant 6.000000e+00 : f32
    %593 = vector.broadcast %cst_337 : f32 to vector<16x128xf32>
    %594 = arith.maximumf %593, %592 : vector<16x128xf32>
    %595 = vector.broadcast %cst_338 : f32 to vector<16x128xf32>
    %596 = arith.minimumf %595, %594 : vector<16x128xf32>
    %597 = arith.truncf %596 : vector<16x128xf32> to vector<16x128xbf16>
    %cst_339 = arith.constant dense<0.000000e+00> : vector<16x128xf32>
    %598 = tpu.matmul %2, %597, %cst_339 {dimension_numbers = #tpu.dot_dimension_numbers<[1], [0], [0], [1], [0, 0, 1, 1], [], []>} : vector<16x16xbf16>, vector<16x128xbf16>, vector<16x128xf32> -> vector<16x128xf32>
    %599 = vector.broadcast %3 : vector<16x1xf32> to vector<16x128xf32>
    %600 = arith.addf %598, %599 : vector<16x128xf32>
    %c0_340 = arith.constant 0 : index
    %c7_341 = arith.constant 7 : index
    %c0_342 = arith.constant 0 : index
    %c0_343 = arith.constant 0 : index
    %601 = vector.load %arg8[%c0_340, %c7_341, %c0_342, %c0_343] : memref<1x8x16x128xf32, #tpu.memory_space<vmem>>, vector<1x1x16x128xf32>
    %602 = vector.shape_cast %601 : vector<1x1x16x128xf32> to vector<16x128xf32>
    %603 = vector.shape_cast %600 : vector<16x128xf32> to vector<1x1x16x128xf32>
    tpu.vector_store %arg8[%c0_340, %c7_341, %c0_342, %c0_343], %603 {strides = array<i32>} : memref<1x8x16x128xf32, #tpu.memory_space<vmem>>, vector<1x1x16x128xf32>,
    return
  }
  func.func @transform_0(%arg0: i32, %arg1: i32) -> (i32, i32, i32, i32) {
    %c0_i32 = arith.constant 0 : i32
    %c0_i32_0 = arith.constant 0 : i32
    %c0_i32_1 = arith.constant 0 : i32
    return %arg0, %arg1, %c0_i32, %c0_i32_0 : i32, i32, i32, i32
  }
  func.func @transform_1(%arg0: i32, %arg1: i32) -> (i32, i32, i32, i32) {
    %c1_i32 = arith.constant 1 : i32
    %0 = arith.addi %arg1, %c1_i32 : i32
    %c4_i32 = arith.constant 4 : i32
    %1 = arith.muli %0, %c4_i32 : i32
    %c0_i32 = arith.constant 0 : i32
    %c0_i32_0 = arith.constant 0 : i32
    %c0_i32_1 = arith.constant 0 : i32
    return %arg0, %1, %c0_i32, %c0_i32_0 : i32, i32, i32, i32
  }
  func.func @transform_2(%arg0: i32, %arg1: i32) -> (i32, i32, i32) {
    %c0_i32 = arith.constant 0 : i32
    %c0_i32_0 = arith.constant 0 : i32
    %c0_i32_1 = arith.constant 0 : i32
    %c0_i32_2 = arith.constant 0 : i32
    return %c0_i32, %c0_i32_0, %c0_i32_1 : i32, i32, i32
  }
  func.func @transform_3(%arg0: i32, %arg1: i32) -> (i32, i32) {
    %c0_i32 = arith.constant 0 : i32
    %c0_i32_0 = arith.constant 0 : i32
    %c0_i32_1 = arith.constant 0 : i32
    return %c0_i32, %c0_i32_0 : i32, i32
  }
  func.func @transform_4(%arg0: i32, %arg1: i32) -> (i32, i32) {
    %c0_i32 = arith.constant 0 : i32
    %c0_i32_0 = arith.constant 0 : i32
    %c0_i32_1 = arith.constant 0 : i32
    return %c0_i32, %c0_i32_0 : i32, i32
  }
  func.func @transform_5(%arg0: i32, %arg1: i32) -> (i32, i32) {
    %c0_i32 = arith.constant 0 : i32
    %c0_i32_0 = arith.constant 0 : i32
    %c0_i32_1 = arith.constant 0 : i32
    return %c0_i32, %c0_i32_0 : i32, i32
  }
  func.func @transform_6(%arg0: i32, %arg1: i32) -> (i32, i32, i32, i32) {
    %c0_i32 = arith.constant 0 : i32
    %c0_i32_0 = arith.constant 0 : i32
    %c0_i32_1 = arith.constant 0 : i32
    return %arg0, %arg1, %c0_i32, %c0_i32_0 : i32, i32, i32, i32
  }
}

</mosaic_0001>

<bundles_post_ra>
// kernel: dsconv_forward.1
= control target key start
LH: loop header
LB: loop body
LE: loop exit
PB: predicated region body
PF: predicated region fallthrough
CT: control target
= control target key end

     0   :  { %s2632_s21 = smov 0   ;;  %s2634_s22 = smov 0   ;;  %s3858_s0 = inlined_call_operand.vmem [shape: f32[2,18,16,256], index: 0, kind: input, shape index: {}, may-alias: {0,1}]   ;;  %s3859_s1 = inlined_call_operand.vmem [shape: f32[2,18,16,256], index: 1, kind: input, shape index: {}, may-alias: {0,1}]   ;;  %s3860_s2 = inlined_call_operand.vmem [shape: f32[9,16,1], index: 2, kind: input, shape index: {}]   ;;  %s3861_s3 = inlined_call_operand.vmem [shape: f32[16,1], index: 3, kind: input, shape index: {}]   ;;  %s3862_s4 = inlined_call_operand.vmem [shape: bf16[16,16], index: 4, kind: input, shape index: {}]   ;;  %s3863_s5 = inlined_call_operand.vmem [shape: f32[16,1], index: 5, kind: input, shape index: {}]   ;;  %s3864_s6 = inlined_call_operand.vmem [shape: f32[2,16,16,128], index: 6, kind: output, shape index: {}]  }
   0x1   :  { %s2636_s23 = smov 0   ;;  %s2638_s24 = smov 0  }
   0x2   :  { %s2640_s25 = smov 0  }
   0x3 LB: > { %s25_s26 = sadd.s32 1, %s2582_s23  ;;  %s28_s27 = sadd.s32 1, %s2586_s24  ;;  %s2590_s25 = sphi %s2640_s25, %s16_s25   ;;  %s2586_s24 = sphi %s2638_s24, %s3868_s24   ;;  %s2582_s23 = sphi %s2636_s23, %s3867_s23   ;;  %s2578_s22 = sphi %s2634_s22, %s3866_s22   ;;  %s2574_s21 = sphi %s2632_s21, %s3865_s21  }
   0x4   : > { %p26_p0 = scmp.ge.s32.totalorder %s25_s26, 2  ;;  %p2304_p1 = scmp.ge.s32.totalorder %s2590_s25, 1 }
   0x5   : > { %p272_p2 = scmp.lt.s32.totalorder %s2590_s25, 5 }
   0x6   : > { %s3870_s26 = smov (%p26_p0, %s25_s26), 0  ;;  %s3872_s27 = smov (!%p26_p0, %s28_s27), %s2586_s24 }
   0x7   : > { %p273_p3 = pnand %p2304_p1, %p272_p2  ;;  %p30_p4 = scmp.ge.s32.totalorder %s3872_s27, 2 }
   0x8   : > { %s2733_s14 = sshll.u32 (!%p273_p3), %s2574_s21, 3  ;;  %p337_p5 = scmp.lt.s32.totalorder (!%p273_p3), %s2578_s22, 1 }
   0x9   : > { %s3874_s27 = smov (%p30_p4, %s3872_s27), 0  ;;  %276 = sbr.rel (%p273_p3) target bundleno = 851 (0x353), region = 44 }
   0xa   : > { %p339_p6 = scmp.lt.s32.totalorder (!%p273_p3), %s2733_s14, 17  ;;  %s2593_s21 = smov (!%p273_p3), 127  }
   0xb   : > { %s2594_s30 = smov (!%p273_p3), 126   ;;  %s2437_s9 = sadd.s32 (!%p273_p3), 8, %s2733_s14 }
   0xc   : > { %p358_p7 = scmp.lt.s32.totalorder (!%p273_p3), %s2437_s9, 17  ;;  %p371_p8 = scmp.lt.s32.totalorder (!%p273_p3), %s2733_s14, 15 }
   0xe   : > { %v382_v0 = vld [vmem:[%s3860_s2 + $0x10] sm:$0xff]  ;;  %v380_v1 = vld [vmem:[%s3860_s2] sm:$0xff]  ;;  %v2592_v2 = vmov 0   ;;  %v383_v3 = vld [vmem:[%s3860_s2 + $0x18] sm:$0xff]  ;;  %s3876_s22 = smov (!%p337_p5, %s2578_s22), 1  ;;  %vm2596_vm0 = vmmov 0  }
   0xf   : > { %2549 = vset.pattern.permute.xlu1 %v2592_v2  ;;  %2548 = vset.pattern.permute.xlu0 %v2592_v2  ;;  %v381_v4 = vld [vmem:[%s3860_s2 + $0x8] sm:$0xff]  ;;  %v384_v6 = vld [vmem:[%s3860_s2 + $0x20] sm:$0xff]  ;;  %v387_v7 = vld [vmem:[%s3860_s2 + $0x38] sm:$0xff]  ;;  %s340_s15 = scalar_select %p339_p6, %s2733_s14, 17  ;;  %vm448_vm1 = vcmask 1039360   ;;  %vm481_vm2 = vcmask 1031168  }
  0x10   : > { %424 = vperm.xlu1 %2549, %v382_v0   ;;  %408 = vperm.xlu0 %2548, %v380_v1   ;;  %v385_v5 = vld [vmem:[%s3860_s2 + $0x28] sm:$0xff]  ;;  %v386_v8 = vld [vmem:[%s3860_s2 + $0x30] sm:$0xff]  ;;  %v388_v10 = vld [vmem:[%s3860_s2 + $0x40] sm:$0xff]  ;;  %s2502_s16 = smul.u32 72, %s3876_s22  ;;  %vm690_vm3 = vcmask 130048   ;;  %s3878_s9 = smov (!%p358_p7, %s2437_s9), 17 }
  0x11   : > { %v389_v9 = vld [vmem:[%s3860_s2 + $0x48] sm:$0xff]  ;;  %v391_v11 = vld [vmem:[%s3860_s2 + $0x58] sm:$0xff]  ;;  %v390_v12 = vld [vmem:[%s3860_s2 + $0x50] sm:$0xff]  ;;  %s2306_s17 = sshll.u32 %s340_s15, 2  ;;  %s2310_s10 = sshll.u32 %s3878_s9, 2 }
  0x12   : > { %v393_v13 = vld [vmem:[%s3860_s2 + $0x68] sm:$0xff]  ;;  %v392_v14 = vld [vmem:[%s3860_s2 + $0x60] sm:$0xff]  ;;  %v395_v15 = vld [vmem:[%s3860_s2 + $0x78] sm:$0xff]  ;;  %s343_s18 = sadd.s32 %s2502_s16, %s2306_s17  ;;  %s362_s11 = sadd.s32 %s2502_s16, %s2310_s10 }
  0x13   : > { %v394_v16 = vld [vmem:[%s3860_s2 + $0x70] sm:$0xff]  ;;  %v397_v17 = vld [vmem:[%s3860_s2 + $0x88] sm:$0xff]  ;;  %v396_v18 = vld [vmem:[%s3860_s2 + $0x80] sm:$0xff]  ;;  %s2307_s19 = sshll.u32 %s343_s18, 3  ;;  %s2311_s12 = sshll.u32 %s362_s11, 3 }
  0x14   : > { %429 = vperm.xlu1 %2549, %v383_v3   ;;  %413 = vperm.xlu0 %2548, %v381_v4   ;;  %v399_v19 = vld [vmem:[%s3861_s3 + $0x8] sm:$0xff]  ;;  %v398_v20 = vld [vmem:[%s3861_s3] sm:$0xff]  ;;  %s2747_s29 = scalar_lea.vmem %s3858_s0, %s2307_s19  ;;  %s3544_s16 = scalar_lea.vmem %s3859_s1, %s2311_s12 }
  0x15   : > { %v403_v21 = vld [vmem:[%s3863_s5 + $0x8] sm:$0xff]  ;;  %v402_v22 = vld [vmem:[%s3863_s5] sm:$0xff]  ;;  %v421_v29 = vld [vmem:[%s2747_s29 + $0x18] sm:$0xff]  ;;  %s3880_s14 = smov (!%p371_p8, %s2733_s14), 15  ;;  %s2314_s18 = sshll.u32 %s3876_s22, 5 }
  0x16   : > { %v419_v23 = vld [vmem:[%s2747_s29 + $0x8] sm:$0xff]  ;;  %v2751_v24 = vld [vmem:[%s2747_s29] sm:$0xff]  ;;  %v2762_v30 = vld [vmem:[%s2747_s29 + $0x10] sm:$0xff]  ;;  %s2313_s17 = sshll.u32 %s3880_s14, 1 }
  0x17   : > { %v2319_v45 = vld [vmem:[%s2747_s29 + $0x28] sm:$0xff]  ;;  %v2799_v46 = vld [vmem:[%s2747_s29 + $0x20] sm:$0xff]  ;;  %v2321_v50 = vld [vmem:[%s2747_s29 + $0x38] sm:$0xff]  ;;  %s375_s14 = sadd.s32 %s2314_s18, %s2313_s17 }
  0x18   : > { %462 = vperm.xlu1 %2549, %v385_v5   ;;  %457 = vperm.xlu0 %2548, %v384_v6   ;;  %v2810_v51 = vld [vmem:[%s2747_s29 + $0x30] sm:$0xff]  ;;  %v2836_v62 = vld [vmem:[%s2747_s29 + $0x48] sm:$0xff]  ;;  %v2839_v63 = vld [vmem:[%s2747_s29 + $0x40] sm:$0xff]  ;;  %s2315_s22 = sshll.u32 %s375_s14, 3 }
  0x19   : > { %v2850_v3 = vld [vmem:[%s2747_s29 + $0x58] sm:$0xff]  ;;  %v2853_v4 = vld [vmem:[%s2747_s29 + $0x50] sm:$0xff]  ;;  %s3680_s28 = scalar_lea.vmem %s3864_s6, %s2315_s22 }
  0x1c   : > { %498 = vperm.xlu1 %2549, %v387_v7   ;;  %493 = vperm.xlu0 %2548, %v386_v8  }
  0x20   : > { %516 = vperm.xlu1 %2549, %v389_v9   ;;  %511 = vperm.xlu0 %2548, %v388_v10  }
  0x24   : > { %548 = vperm.xlu1 %2549, %v391_v11   ;;  %543 = vperm.xlu0 %2548, %v390_v12   ;;  %v2595_v11 = vmov 0.0  }
  0x25   : > { %2454 = vmatprep.subr.bf16.mxu0 %v2595_v11  ;;  %2460 = vmatprep.subr.bf16.mxu1 %v2595_v11 }
  0x26   : > { %2456 = vmatprep.mubr.msk.bf16.mxu0 %vm2596_vm0, %v2595_v11  ;;  %2462 = vmatprep.mubr.msk.bf16.mxu1 %vm2596_vm0, %v2595_v11 }
  0x28   : > { %583 = vperm.xlu1 %2549, %v393_v13   ;;  %578 = vperm.xlu0 %2548, %v392_v14  }
  0x2c   : > { %601 = vperm.xlu1 %2549, %v395_v15   ;;  %596 = vperm.xlu0 %2548, %v394_v16  }
  0x30   : > { %633 = vperm.xlu1 %2549, %v397_v17   ;;  %628 = vperm.xlu0 %2548, %v396_v18  }
  0x34   : > { %665 = vperm.xlu1 %2549, %v399_v19   ;;  %660 = vperm.xlu0 %2548, %v398_v20  }
  0x38   : > { %682 = vperm.xlu1 %2549, %v403_v21   ;;  %677 = vperm.xlu0 %2548, %v402_v22  }
  0x8b   : > { %v2753_v25 = vpop.permute.xlu1 %424  ;;  %v2755_v26 = vpop.permute.xlu0 %408 }
  0x8c   : > { %v433_v27 = vmul.f32 %v2753_v25, %v419_v23  ;;  %v432_v28 = vmul.f32 %v2753_v25, %v2751_v24  ;;  %v744_v14 = vmul.f32 %v2319_v45, %v2753_v25  ;;  %v743_v15 = vmul.f32 %v2799_v46, %v2753_v25 }
  0x8e   : > { %442 = vrot.lane.b32.xlu1 %v433_v27, %s2593_s21  ;;  %440 = vrot.lane.b32.xlu0 %v432_v28, %s2593_s21 }
  0x8f   : > { %v2766_v31 = vpop.permute.xlu1 %429  ;;  %v2768_v32 = vpop.permute.xlu0 %413 }
  0x90   : > { %v435_v33 = vmul.f32 %v2766_v31, %v421_v29  ;;  %v434_v34 = vmul.f32 %v2766_v31, %v2762_v30  ;;  %v746_v16 = vmul.f32 %v2321_v50, %v2766_v31  ;;  %v745_v17 = vmul.f32 %v2810_v51, %v2766_v31 }
  0x92   : > { %446 = vrot.lane.b32.xlu1 %v435_v33, %s2593_s21  ;;  %444 = vrot.lane.b32.xlu0 %v434_v34, %s2593_s21 }
  0x93   : > { %v2775_v35 = vpop.permute.xlu1 %462  ;;  %v2777_v36 = vpop.permute.xlu0 %457 }
  0x94   : > { %v466_v37 = vmul.f32 %v2777_v36, %v419_v23  ;;  %v465_v38 = vmul.f32 %v2777_v36, %v2751_v24  ;;  %v468_v41 = vmul.f32 %v2775_v35, %v421_v29  ;;  %v467_v42 = vmul.f32 %v2775_v35, %v2762_v30 }
  0x95   : > { %v766_v18 = vmul.f32 %v2319_v45, %v2777_v36  ;;  %v765_v19 = vmul.f32 %v2799_v46, %v2777_v36  ;;  %v768_v20 = vmul.f32 %v2321_v50, %v2775_v35  ;;  %v767_v21 = vmul.f32 %v2810_v51, %v2775_v35 }
  0x96   : > { %475 = vrot.lane.b32.xlu1 %v466_v37, %s2594_s30  ;;  %473 = vrot.lane.b32.xlu0 %v465_v38, %s2594_s30  ;;  %v2928_v38 = vld [vmem:[%s2747_s29 + $0x68] sm:$0xff] }
  0x97   : > { %v2784_v39 = vpop.permute.xlu1 %498  ;;  %v2786_v40 = vpop.permute.xlu0 %493 }
  0x9a   : > { %479 = vrot.lane.b32.xlu1 %v468_v41, %s2594_s30  ;;  %477 = vrot.lane.b32.xlu0 %v467_v42, %s2594_s30  ;;  %v2931_v41 = vld [vmem:[%s2747_s29 + $0x60] sm:$0xff] }
  0x9b   : > { %v2793_v43 = vpop.permute.xlu1 %516  ;;  %v2795_v44 = vpop.permute.xlu0 %511 }
  0x9c   : > { %v520_v47 = vmul.f32 %v2319_v45, %v2795_v44  ;;  %v519_v48 = vmul.f32 %v2799_v46, %v2795_v44  ;;  %v522_v52 = vmul.f32 %v2321_v50, %v2793_v43  ;;  %v521_v53 = vmul.f32 %v2810_v51, %v2793_v43 }
  0x9d   : > { %v796_v22 = vmul.f32 %v2836_v62, %v2795_v44  ;;  %v795_v23 = vmul.f32 %v2839_v63, %v2795_v44  ;;  %v798_v27 = vmul.f32 %v2850_v3, %v2793_v43  ;;  %v797_v28 = vmul.f32 %v2853_v4, %v2793_v43 }
  0x9e   : > { %529 = vrot.lane.b32.xlu1 %v520_v47, %s2593_s21  ;;  %527 = vrot.lane.b32.xlu0 %v519_v48, %s2593_s21  ;;  %v950_v47 = vmul.f32 %v2836_v62, %v2753_v25  ;;  %v949_v48 = vmul.f32 %v2839_v63, %v2753_v25 }
  0x9f   : > { %v2806_v49 = vpop.permute.xlu0 %543  ;;  %v2815_v54 = vpop.permute.xlu1 %548 }
  0xa0   : > { %v552_v56 = vmul.f32 %v2319_v45, %v2806_v49  ;;  %v551_v57 = vmul.f32 %v2799_v46, %v2806_v49  ;;  %v554_v59 = vmul.f32 %v2321_v50, %v2815_v54  ;;  %v553_v60 = vmul.f32 %v2810_v51, %v2815_v54 }
  0xa1   : > { %v818_v29 = vmul.f32 %v2836_v62, %v2806_v49  ;;  %v817_v33 = vmul.f32 %v2839_v63, %v2806_v49  ;;  %v820_v34 = vmul.f32 %v2850_v3, %v2815_v54  ;;  %v819_v37 = vmul.f32 %v2853_v4, %v2815_v54 }
  0xa2   : > { %533 = vrot.lane.b32.xlu1 %v522_v52, %s2593_s21  ;;  %531 = vrot.lane.b32.xlu0 %v521_v53, %s2593_s21  ;;  %v952_v50 = vmul.f32 %v2850_v3, %v2766_v31  ;;  %v951_v52 = vmul.f32 %v2853_v4, %v2766_v31  ;;  %v1156_v53 = vmul.f32 %v2928_v38, %v2753_v25 }
  0xa3   : > { %v2819_v55 = vpop.permute.xlu0 %578  ;;  %v2826_v58 = vpop.permute.xlu1 %583 }
  0xa6   : > { %561 = vrot.lane.b32.xlu1 %v552_v56, %s2594_s30  ;;  %559 = vrot.lane.b32.xlu0 %v551_v57, %s2594_s30  ;;  %v1155_v56 = vmul.f32 %v2931_v41, %v2753_v25  ;;  %v2956_v57 = vld [vmem:[%s2747_s29 + $0x78] sm:$0xff] }
  0xa7   : > { %v2831_v61 = vpop.permute.xlu0 %596  ;;  %v2845_v2 = vpop.permute.xlu1 %601 }
  0xa8   : > { %v605_v0 = vmul.f32 %v2836_v62, %v2831_v61  ;;  %v604_v1 = vmul.f32 %v2839_v63, %v2831_v61  ;;  %v607_v5 = vmul.f32 %v2850_v3, %v2845_v2  ;;  %v606_v6 = vmul.f32 %v2853_v4, %v2845_v2 }
  0xa9   : > { %v849_v42 = vmul.f32 %v2928_v38, %v2831_v61  ;;  %v848_v45 = vmul.f32 %v2931_v41, %v2831_v61 }
  0xaa   : > { %565 = vrot.lane.b32.xlu1 %v554_v59, %s2594_s30  ;;  %563 = vrot.lane.b32.xlu0 %v553_v60, %s2594_s30  ;;  %v2959_v59 = vld [vmem:[%s2747_s29 + $0x70] sm:$0xff]  ;;  %v1158_v60 = vmul.f32 %v2956_v57, %v2766_v31 }
  0xab   : > { %v2859_v7 = vpop.permute.xlu0 %628  ;;  %v2867_v10 = vpop.permute.xlu1 %633 }
  0xac   : > { %v637_v8 = vmul.f32 %v2836_v62, %v2859_v7  ;;  %v636_v9 = vmul.f32 %v2839_v63, %v2859_v7  ;;  %v639_v12 = vmul.f32 %v2850_v3, %v2867_v10  ;;  %v638_v13 = vmul.f32 %v2853_v4, %v2867_v10 }
  0xae   : > { %614 = vrot.lane.b32.xlu1 %v605_v0, %s2593_s21  ;;  %612 = vrot.lane.b32.xlu0 %v604_v1, %s2593_s21  ;;  %v1157_v0 = vmul.f32 %v2959_v59, %v2766_v31  ;;  %v972_v1 = vmul.f32 %v2836_v62, %v2777_v36  ;;  %v1178_v62 = vmul.f32 %v2928_v38, %v2777_v36 }
  0xb2   : > { %618 = vrot.lane.b32.xlu1 %v607_v5, %s2593_s21  ;;  %616 = vrot.lane.b32.xlu0 %v606_v6, %s2593_s21  ;;  %v971_v5 = vmul.f32 %v2839_v63, %v2777_v36  ;;  %v974_v6 = vmul.f32 %v2850_v3, %v2775_v35 }
  0xb6   : > { %646 = vrot.lane.b32.xlu1 %v637_v8, %s2594_s30  ;;  %644 = vrot.lane.b32.xlu0 %v636_v9, %s2594_s30  ;;  %v973_v8 = vmul.f32 %v2853_v4, %v2775_v35  ;;  %v2979_v9 = vpop.permute.xlu1 %665 }
  0xba   : > { %650 = vrot.lane.b32.xlu1 %v639_v12, %s2594_s30  ;;  %648 = vrot.lane.b32.xlu0 %v638_v13, %s2594_s30  ;;  %v2981_v12 = vpop.permute.xlu0 %660  ;;  %v1177_v13 = vmul.f32 %v2931_v41, %v2777_v36  ;;  %v2991_v3 = vpop.permute.xlu1 %682 }
  0xbe   : > { %753 = vrot.lane.b32.xlu1 %v744_v14, %s2593_s21  ;;  %751 = vrot.lane.b32.xlu0 %v743_v15, %s2593_s21  ;;  %v2993_v14 = vpop.permute.xlu0 %677  ;;  %v1180_v15 = vmul.f32 %v2956_v57, %v2775_v35 }
  0xc2   : > { %757 = vrot.lane.b32.xlu1 %v746_v16, %s2593_s21  ;;  %755 = vrot.lane.b32.xlu0 %v745_v17, %s2593_s21  ;;  %v1179_v16 = vmul.f32 %v2959_v59, %v2775_v35 }
  0xc6   : > { %775 = vrot.lane.b32.xlu1 %v766_v18, %s2594_s30  ;;  %773 = vrot.lane.b32.xlu0 %v765_v19, %s2594_s30  ;;  %v851_v19 = vmul.f32 %v2956_v57, %v2845_v2 }
  0xca   : > { %779 = vrot.lane.b32.xlu1 %v768_v20, %s2594_s30  ;;  %777 = vrot.lane.b32.xlu0 %v767_v21, %s2594_s30  ;;  %v850_v20 = vmul.f32 %v2959_v59, %v2845_v2 }
  0xce   : > { %805 = vrot.lane.b32.xlu1 %v796_v22, %s2593_s21  ;;  %803 = vrot.lane.b32.xlu0 %v795_v23, %s2593_s21  ;;  %v871_v23 = vmul.f32 %v2928_v38, %v2859_v7 }
  0xd2   : > { %809 = vrot.lane.b32.xlu1 %v798_v27, %s2593_s21  ;;  %807 = vrot.lane.b32.xlu0 %v797_v28, %s2593_s21  ;;  %v870_v27 = vmul.f32 %v2931_v41, %v2859_v7 }
  0xd6   : > { %827 = vrot.lane.b32.xlu1 %v818_v29, %s2594_s30  ;;  %825 = vrot.lane.b32.xlu0 %v817_v33, %s2594_s30  ;;  %v416_v29 = vmul.f32 %v2751_v24, %v2755_v26  ;;  %v417_v24 = vmul.f32 %v2762_v30, %v2768_v32 }
  0xda   : > { %831 = vrot.lane.b32.xlu1 %v820_v34, %s2594_s30  ;;  %829 = vrot.lane.b32.xlu0 %v819_v37, %s2594_s30 }
  0xde   : > { %858 = vrot.lane.b32.xlu1 %v849_v42, %s2593_s21  ;;  %856 = vrot.lane.b32.xlu0 %v848_v45, %s2593_s21  ;;  %v873_v42 = vmul.f32 %v2956_v57, %v2867_v10  ;;  %v872_v45 = vmul.f32 %v2959_v59, %v2867_v10 }
  0xe2   : > { %959 = vrot.lane.b32.xlu1 %v950_v47, %s2593_s21  ;;  %957 = vrot.lane.b32.xlu0 %v949_v48, %s2593_s21 }
  0xe6   : > { %963 = vrot.lane.b32.xlu1 %v952_v50, %s2593_s21  ;;  %961 = vrot.lane.b32.xlu0 %v951_v52, %s2593_s21  ;;  %v501_v52 = vmul.f32 %v2799_v46, %v2786_v40 }
  0xea   : > { %1165 = vrot.lane.b32.xlu1 %v1156_v53, %s2593_s21  ;;  %1163 = vrot.lane.b32.xlu0 %v1155_v56, %s2593_s21 }
  0xee   : > { %1169 = vrot.lane.b32.xlu1 %v1158_v60, %s2593_s21  ;;  %1167 = vrot.lane.b32.xlu0 %v1157_v0, %s2593_s21  ;;  %v1002_v0 = vmul.f32 %v2928_v38, %v2795_v44 }
  0xf2   : > { %981 = vrot.lane.b32.xlu1 %v972_v1, %s2594_s30  ;;  %979 = vrot.lane.b32.xlu0 %v971_v5, %s2594_s30  ;;  %v1001_v1 = vmul.f32 %v2931_v41, %v2795_v44 }
  0xf6   : > { %985 = vrot.lane.b32.xlu1 %v974_v6, %s2594_s30  ;;  %983 = vrot.lane.b32.xlu0 %v973_v8, %s2594_s30  ;;  %v502_v8 = vmul.f32 %v2810_v51, %v2784_v39 }
  0xfa   : > { %1187 = vrot.lane.b32.xlu1 %v1178_v62, %s2594_s30  ;;  %1185 = vrot.lane.b32.xlu0 %v1177_v13, %s2594_s30 }
  0xfe   : > { %1191 = vrot.lane.b32.xlu1 %v1180_v15, %s2594_s30  ;;  %1189 = vrot.lane.b32.xlu0 %v1179_v16, %s2594_s30  ;;  %v1004_v15 = vmul.f32 %v2956_v57, %v2793_v43  ;;  %v1003_v16 = vmul.f32 %v2959_v59, %v2793_v43 }
 0x100   : > { %v443_v17 = vpop.permute.xlu1 %442  ;;  %v441_v18 = vpop.permute.xlu0 %440 }
 0x101   : > { %v449_v28 = vsel %vm448_vm1, %v441_v18, %v443_v17  ;;  %v3044_v18 = vld [vmem:[%s2747_s29 + $0x88] sm:$0xff] }
 0x102   : > { %862 = vrot.lane.b32.xlu1 %v851_v19, %s2593_s21  ;;  %860 = vrot.lane.b32.xlu0 %v850_v20, %s2593_s21  ;;  %v453_v33 = vadd.f32 %v449_v28, %v416_v29  ;;  %v3047_v19 = vld [vmem:[%s2747_s29 + $0x80] sm:$0xff]  ;;  %v3057_v28 = vld [vmem:[%s2747_s29 + $0x98] sm:$0xff] }
 0x103   : > { %v3060_v29 = vld [vmem:[%s2747_s29 + $0x90] sm:$0xff] }
 0x104   : > { %v447_v21 = vpop.permute.xlu1 %446  ;;  %v445_v22 = vpop.permute.xlu0 %444 }
 0x105   : > { %v450_v47 = vsel %vm448_vm1, %v445_v22, %v447_v21  ;;  %v1208_v22 = vmul.f32 %v3044_v18, %v2795_v44 }
 0x106   : > { %880 = vrot.lane.b32.xlu1 %v871_v23, %s2594_s30  ;;  %878 = vrot.lane.b32.xlu0 %v870_v27, %s2594_s30  ;;  %v454_v53 = vadd.f32 %v450_v47, %v417_v24  ;;  %v1207_v23 = vmul.f32 %v3047_v19, %v2795_v44 }
 0x108   : > { %v476_v34 = vpop.permute.xlu1 %475  ;;  %v474_v37 = vpop.permute.xlu0 %473 }
 0x109   : > { %v482_v48 = vsel %vm481_vm2, %v474_v37, %v476_v34 }
 0x10a   : > { %v486_v50 = vadd.f32 %v482_v48, %v453_v33  ;;  %884 = vrot.lane.b32.xlu1 %v873_v42, %s2594_s30  ;;  %882 = vrot.lane.b32.xlu0 %v872_v45, %s2594_s30  ;;  %v1210_v42 = vmul.f32 %v3057_v28, %v2793_v43  ;;  %v1209_v45 = vmul.f32 %v3060_v29, %v2793_v43 }
 0x10c   : > { %v480_v56 = vpop.permute.xlu1 %479  ;;  %v478_v60 = vpop.permute.xlu0 %477  ;;  %v503_v30 = vadd.f32 %v501_v52, %v486_v50  ;;  %v586_v50 = vmul.f32 %v2839_v63, %v2819_v55 }
 0x10d   : > { %v483_v5 = vsel %vm481_vm2, %v478_v60, %v480_v56  ;;  %v1024_v60 = vmul.f32 %v2928_v38, %v2806_v49  ;;  %v1025_v38 = vmul.f32 %v2959_v59, %v2815_v54 }
 0x10e   : > { %v487_v6 = vadd.f32 %v483_v5, %v454_v53  ;;  %1011 = vrot.lane.b32.xlu1 %v1002_v0, %s2593_s21  ;;  %1009 = vrot.lane.b32.xlu0 %v1001_v1, %s2593_s21  ;;  %v1023_v0 = vmul.f32 %v2931_v41, %v2806_v49 }
 0x110   : > { %v530_v62 = vpop.permute.xlu1 %529  ;;  %v528_v13 = vpop.permute.xlu0 %527  ;;  %v504_v17 = vadd.f32 %v502_v8, %v487_v6  ;;  %v587_v6 = vmul.f32 %v2853_v4, %v2826_v58 }
 0x111   : > { %v535_v27 = vsel %vm448_vm1, %v528_v13, %v530_v62  ;;  %v1026_v13 = vmul.f32 %v2956_v57, %v2815_v54  ;;  %v1232_v57 = vmul.f32 %v3057_v28, %v2815_v54 }
 0x112   : > { %1015 = vrot.lane.b32.xlu1 %v1004_v15, %s2593_s21  ;;  %1013 = vrot.lane.b32.xlu0 %v1003_v16, %s2593_s21  ;;  %v539_v33 = vadd.f32 %v535_v27, %v503_v30  ;;  %v1230_v16 = vmul.f32 %v3044_v18, %v2806_v49 }
 0x114   : > { %v534_v20 = vpop.permute.xlu1 %533  ;;  %v532_v21 = vpop.permute.xlu0 %531 }
 0x115   : > { %v536_v47 = vsel %vm448_vm1, %v532_v21, %v534_v20  ;;  %v1229_v21 = vmul.f32 %v3047_v19, %v2806_v49 }
 0x116   : > { %1217 = vrot.lane.b32.xlu1 %v1208_v22, %s2593_s21  ;;  %1215 = vrot.lane.b32.xlu0 %v1207_v23, %s2593_s21  ;;  %v540_v52 = vadd.f32 %v536_v47, %v504_v17 }
 0x118   : > { %v562_v34 = vpop.permute.xlu1 %561  ;;  %v560_v37 = vpop.permute.xlu0 %559 }
 0x119   : > { %v567_v48 = vsel %vm481_vm2, %v560_v37, %v562_v34  ;;  %v1231_v34 = vmul.f32 %v3060_v29, %v2815_v54 }
 0x11a   : > { %v571_v24 = vadd.f32 %v567_v48, %v539_v33  ;;  %1221 = vrot.lane.b32.xlu1 %v1210_v42, %s2593_s21  ;;  %1219 = vrot.lane.b32.xlu0 %v1209_v45, %s2593_s21 }
 0x11c   : > { %v566_v53 = vpop.permute.xlu1 %565  ;;  %v564_v56 = vpop.permute.xlu0 %563  ;;  %v588_v1 = vadd.f32 %v586_v50, %v571_v24  ;;  %v1362_v50 = vmul.f32 %v3044_v18, %v2753_v25 }
 0x11d   : > { %v568_v30 = vsel %vm481_vm2, %v564_v56, %v566_v53 }
 0x11e   : > { %v572_v5 = vadd.f32 %v568_v30, %v540_v52  ;;  %1033 = vrot.lane.b32.xlu1 %v1024_v60, %s2594_s30  ;;  %1031 = vrot.lane.b32.xlu0 %v1023_v0, %s2594_s30  ;;  %v1361_v52 = vmul.f32 %v3047_v19, %v2753_v25  ;;  %v1364_v30 = vmul.f32 %v3057_v28, %v2766_v31 }
 0x120   : > { %v615_v8 = vpop.permute.xlu1 %614  ;;  %v613_v62 = vpop.permute.xlu0 %612  ;;  %v589_v15 = vadd.f32 %v587_v6, %v572_v5  ;;  %v1363_v5 = vmul.f32 %v3060_v29, %v2766_v31 }
 0x121   : > { %v620_v22 = vsel %vm448_vm1, %v613_v62, %v615_v8  ;;  %v3116_v62 = vld [vmem:[%s2747_s29 + $0xa8] sm:$0xff] }
 0x122   : > { %1037 = vrot.lane.b32.xlu1 %v1026_v13, %s2594_s30  ;;  %1035 = vrot.lane.b32.xlu0 %v1025_v38, %s2594_s30  ;;  %v624_v23 = vadd.f32 %v620_v22, %v588_v1  ;;  %v3119_v13 = vld [vmem:[%s2747_s29 + $0xa0] sm:$0xff] }
 0x124   : > { %v619_v17 = vpop.permute.xlu1 %618  ;;  %v617_v20 = vpop.permute.xlu0 %616 }
 0x125   : > { %v621_v37 = vsel %vm448_vm1, %v617_v20, %v619_v17  ;;  %v1568_v17 = vmul.f32 %v3116_v62, %v2753_v25  ;;  %v1567_v20 = vmul.f32 %v3119_v13, %v2753_v25 }
 0x126   : > { %1239 = vrot.lane.b32.xlu1 %v1230_v16, %s2594_s30  ;;  %1237 = vrot.lane.b32.xlu0 %v1229_v21, %s2594_s30  ;;  %v625_v47 = vadd.f32 %v621_v37, %v589_v15  ;;  %v3141_v37 = vld [vmem:[%s3862_s4] sm:$0xff]  }
 0x128   : > { %v647_v27 = vpop.permute.xlu1 %646  ;;  %v645_v33 = vpop.permute.xlu0 %644 }
 0x129   : > { %v652_v42 = vsel %vm481_vm2, %v645_v33, %v647_v27  ;;  %v3132_v27 = vld [vmem:[%s2747_s29 + $0xb0] sm:$0xff]  ;;  %v739_v33 = vmul.f32 %v2799_v46, %v2755_v26 }
 0x12a   : > { %v656_v45 = vadd.f32 %v652_v42, %v624_v23  ;;  %1243 = vrot.lane.b32.xlu1 %v1232_v57, %s2594_s30  ;;  %1241 = vrot.lane.b32.xlu0 %v1231_v34, %s2594_s30  ;;  %v3129_v23 = vld [vmem:[%s2747_s29 + $0xb8] sm:$0xff]  ;;  %v1569_v46 = vmul.f32 %v3132_v27, %v2766_v31 }
 0x12c   : > { %v651_v48 = vpop.permute.xlu1 %650  ;;  %v649_v24 = vpop.permute.xlu0 %648  ;;  %v668_v53 = vadd.f32 %v2981_v12, %v656_v45 }
 0x12d   : > { %v653_v56 = vsel %vm481_vm2, %v649_v24, %v651_v48  ;;  %v1570_v48 = vmul.f32 %v3129_v23, %v2766_v31 }
 0x12e   : > { %v657_v60 = vadd.f32 %v653_v56, %v625_v47  ;;  %1371 = vrot.lane.b32.xlu1 %v1362_v50, %s2593_s21  ;;  %1369 = vrot.lane.b32.xlu0 %v1361_v52, %s2593_s21  ;;  %v670_v8 = vmax.f32 %v668_v53, 0.0  ;;  %v740_v52 = vmul.f32 %v2810_v51, %v2768_v32  ;;  %v789_v56 = vmul.f32 %v2839_v63, %v2786_v40 }
 0x12f   : > { %v1383_v51 = vmul.f32 %v3047_v19, %v2777_v36 }
 0x130   : > { %v754_v0 = vpop.permute.xlu1 %753  ;;  %v752_v1 = vpop.permute.xlu0 %751  ;;  %v669_v6 = vadd.f32 %v2979_v9, %v657_v60  ;;  %v672_v21 = vmin.f32 %v670_v8, 6.0 }
 0x131   : > { %v759_v57 = vsel %vm448_vm1, %v752_v1, %v754_v0 }
 0x132   : > { %1375 = vrot.lane.b32.xlu1 %v1364_v30, %s2593_s21  ;;  %1373 = vrot.lane.b32.xlu0 %v1363_v5, %s2593_s21  ;;  %v671_v38 = vmax.f32 %v669_v6, 0.0  ;;  %v763_v42 = vadd.f32 %v759_v57, %v739_v33  ;;  %v1384_v30 = vmul.f32 %v3044_v18, %v2777_v36  ;;  %v1590_v33 = vmul.f32 %v3116_v62, %v2777_v36 }
 0x134   : > { %v758_v15 = vpop.permute.xlu1 %757  ;;  %v756_v16 = vpop.permute.xlu0 %755  ;;  %v673_v22 = vmin.f32 %v671_v38, 6.0  ;;  %v790_v38 = vmul.f32 %v2853_v4, %v2784_v39 }
 0x135   : > { %v760_v24 = vsel %vm448_vm1, %v756_v16, %v758_v15 }
 0x136   : > { %1577 = vrot.lane.b32.xlu1 %v1568_v17, %s2593_s21  ;;  %1575 = vrot.lane.b32.xlu0 %v1567_v20, %s2593_s21  ;;  %v674_v34 = vpack.c.bf16 %v673_v22, %v672_v21  ;;  %v764_v60 = vadd.f32 %v760_v24, %v740_v52  ;;  %v1386_v17 = vmul.f32 %v3057_v28, %v2775_v35 }
 0x137   : > { %v1385_v20 = vmul.f32 %v3060_v29, %v2775_v35  ;;  %v1591_v24 = vmul.f32 %v3132_v27, %v2775_v35 }
 0x138   : > { %v776_v45 = vpop.permute.xlu1 %775  ;;  %v774_v47 = vpop.permute.xlu0 %773  ;;  %2455 = vmatpush3.bf16.msra.mxu0 %v674_v34  ;;  %v1589_v34 = vmul.f32 %v3119_v13, %v2777_v36 }
 0x139   : > { %v781_v50 = vsel %vm481_vm2, %v774_v47, %v776_v45  ;;  %2466 = vmatprep.subr.bf16.mxu0 %v2595_v11 }
 0x13a   : > { %v785_v53 = vadd.f32 %v781_v50, %v763_v42  ;;  %1581 = vrot.lane.b32.xlu1 %v1570_v48, %s2593_s21  ;;  %1579 = vrot.lane.b32.xlu0 %v1569_v46, %s2593_s21  ;;  %v1592_v46 = vmul.f32 %v3129_v23, %v2775_v35 }
 0x13b   : > { %2457 = vmatmul.mubr.msk.bf16.vlgmr.msra.gmra.mxu0 %vm690_vm3, %v3141_v37 }
 0x13c   : > { %v780_v0 = vpop.permute.xlu1 %779  ;;  %v778_v1 = vpop.permute.xlu0 %777  ;;  %v791_v5 = vadd.f32 %v789_v56, %v785_v53  ;;  %2468 = vmatprep.mubr.msk.bf16.mxu0 %vm2596_vm0, %v2595_v11  ;;  %v842_v56 = vmul.f32 %v2931_v41, %v2819_v55 }
 0x13d   : > { %v782_v6 = vsel %vm481_vm2, %v778_v1, %v780_v0 }
 0x13e   : > { %v786_v8 = vadd.f32 %v782_v6, %v764_v60  ;;  %1393 = vrot.lane.b32.xlu1 %v1384_v30, %s2594_s30  ;;  %1391 = vrot.lane.b32.xlu0 %v1383_v51, %s2594_s30  ;;  %v1055_v30 = vmul.f32 %v3044_v18, %v2831_v61  ;;  %v1054_v51 = vmul.f32 %v3047_v19, %v2831_v61 }
 0x140   : > { %v806_v15 = vpop.permute.xlu1 %805  ;;  %v804_v16 = vpop.permute.xlu0 %803  ;;  %v792_v21 = vadd.f32 %v790_v38, %v786_v8  ;;  %v843_v38 = vmul.f32 %v2959_v59, %v2826_v58 }
 0x141   : > { %v811_v42 = vsel %vm448_vm1, %v804_v16, %v806_v15 }
 0x142   : > { %1397 = vrot.lane.b32.xlu1 %v1386_v17, %s2594_s30  ;;  %1395 = vrot.lane.b32.xlu0 %v1385_v20, %s2594_s30  ;;  %v815_v45 = vadd.f32 %v811_v42, %v791_v5  ;;  %v1057_v17 = vmul.f32 %v3057_v28, %v2845_v2  ;;  %v1056_v20 = vmul.f32 %v3060_v29, %v2845_v2 }
 0x144   : > { %v810_v22 = vpop.permute.xlu1 %809  ;;  %v808_v57 = vpop.permute.xlu0 %807 }
 0x145   : > { %v812_v50 = vsel %vm448_vm1, %v808_v57, %v810_v22 }
 0x146   : > { %1599 = vrot.lane.b32.xlu1 %v1590_v33, %s2594_s30  ;;  %1597 = vrot.lane.b32.xlu0 %v1589_v34, %s2594_s30  ;;  %v816_v60 = vadd.f32 %v812_v50, %v792_v21  ;;  %v1261_v33 = vmul.f32 %v3116_v62, %v2831_v61  ;;  %v1260_v34 = vmul.f32 %v3119_v13, %v2831_v61 }
 0x147   : > { %v1077_v50 = vmul.f32 %v3044_v18, %v2859_v7  ;;  %v945_v18 = vmul.f32 %v2839_v63, %v2755_v26  ;;  %v946_v63 = vmul.f32 %v2853_v4, %v2768_v32 }
 0x148   : > { %v828_v47 = vpop.permute.xlu1 %827  ;;  %v826_v48 = vpop.permute.xlu0 %825 }
 0x149   : > { %v833_v52 = vsel %vm481_vm2, %v826_v48, %v828_v47  ;;  %v1263_v47 = vmul.f32 %v3129_v23, %v2845_v2  ;;  %v1262_v48 = vmul.f32 %v3132_v27, %v2845_v2 }
 0x14a   : > { %v837_v53 = vadd.f32 %v833_v52, %v815_v45  ;;  %1603 = vrot.lane.b32.xlu1 %v1592_v46, %s2594_s30  ;;  %1601 = vrot.lane.b32.xlu0 %v1591_v24, %s2594_s30  ;;  %v1076_v52 = vmul.f32 %v3047_v19, %v2859_v7 }
 0x14c   : > { %v832_v0 = vpop.permute.xlu1 %831  ;;  %v830_v1 = vpop.permute.xlu0 %829  ;;  %v3196_v5 = vadd.f32 %v842_v56, %v837_v53 }
 0x14d   : > { %v834_v6 = vsel %vm481_vm2, %v830_v1, %v832_v0  ;;  %v1078_v0 = vmul.f32 %v3060_v29, %v2867_v10 }
 0x14e   : > { %v838_v8 = vadd.f32 %v834_v6, %v816_v60  ;;  %1064 = vrot.lane.b32.xlu1 %v1055_v30, %s2593_s21  ;;  %1062 = vrot.lane.b32.xlu0 %v1054_v51, %s2593_s21  ;;  %v1079_v60 = vmul.f32 %v3057_v28, %v2867_v10  ;;  %v1282_v28 = vmul.f32 %v3119_v13, %v2859_v7 }
 0x150   : > { %v3203_v15 = vpop.permute.xlu1 %858  ;;  %v3205_v16 = vpop.permute.xlu0 %856  ;;  %v3211_v21 = vadd.f32 %v843_v38, %v838_v8  ;;  %v1283_v8 = vmul.f32 %v3116_v62, %v2859_v7 }
 0x152   : > { %1068 = vrot.lane.b32.xlu1 %v1057_v17, %s2593_s21  ;;  %1066 = vrot.lane.b32.xlu0 %v1056_v20, %s2593_s21 }
 0x154   : > { %v960_v22 = vpop.permute.xlu1 %959  ;;  %v958_v57 = vpop.permute.xlu0 %957 }
 0x155   : > { %v965_v1 = vsel %vm448_vm1, %v958_v57, %v960_v22  ;;  %v995_v22 = vmul.f32 %v2931_v41, %v2786_v40 }
 0x156   : > { %1270 = vrot.lane.b32.xlu1 %v1261_v33, %s2593_s21  ;;  %1268 = vrot.lane.b32.xlu0 %v1260_v34, %s2593_s21  ;;  %v969_v30 = vadd.f32 %v965_v1, %v945_v18 }
 0x158   : > { %v964_v42 = vpop.permute.xlu1 %963  ;;  %v962_v45 = vpop.permute.xlu0 %961 }
 0x159   : > { %v966_v38 = vsel %vm448_vm1, %v962_v45, %v964_v42  ;;  %v1284_v42 = vmul.f32 %v3132_v27, %v2867_v10 }
 0x15a   : > { %1274 = vrot.lane.b32.xlu1 %v1263_v47, %s2593_s21  ;;  %1272 = vrot.lane.b32.xlu0 %v1262_v48, %s2593_s21  ;;  %v970_v57 = vadd.f32 %v966_v38, %v946_v63  ;;  %v1285_v47 = vmul.f32 %v3129_v23, %v2867_v10 }
 0x15c   : > { %v1166_v46 = vpop.permute.xlu1 %1165  ;;  %v1164_v24 = vpop.permute.xlu0 %1163 }
 0x15d   : > { %v1171_v4 = vsel %vm448_vm1, %v1164_v24, %v1166_v46  ;;  %v1413_v46 = vmul.f32 %v3119_v13, %v2795_v44 }
 0x15e   : > { %1086 = vrot.lane.b32.xlu1 %v1077_v50, %s2594_s30  ;;  %1084 = vrot.lane.b32.xlu0 %v1076_v52, %s2594_s30  ;;  %v1151_v50 = vmul.f32 %v2931_v41, %v2755_v26 }
 0x160   : > { %v1170_v53 = vpop.permute.xlu1 %1169  ;;  %v1168_v56 = vpop.permute.xlu0 %1167 }
 0x161   : > { %v1172_v41 = vsel %vm448_vm1, %v1168_v56, %v1170_v53  ;;  %v1416_v53 = vmul.f32 %v3129_v23, %v2793_v43  ;;  %v1415_v56 = vmul.f32 %v3132_v27, %v2793_v43 }
 0x162   : > { %1090 = vrot.lane.b32.xlu1 %v1079_v60, %s2594_s30  ;;  %1088 = vrot.lane.b32.xlu0 %v1078_v0, %s2594_s30  ;;  %v996_v60 = vmul.f32 %v2959_v59, %v2784_v39  ;;  %v1175_v0 = vadd.f32 %v1171_v4, %v1151_v50 }
 0x164   : > { %v982_v51 = vpop.permute.xlu1 %981  ;;  %v980_v6 = vpop.permute.xlu0 %979 }
 0x165   : > { %v987_v17 = vsel %vm481_vm2, %v980_v6, %v982_v51  ;;  %v1152_v6 = vmul.f32 %v2959_v59, %v2768_v32 }
 0x166   : > { %v991_v20 = vadd.f32 %v987_v17, %v969_v30  ;;  %1292 = vrot.lane.b32.xlu1 %v1283_v8, %s2594_s30  ;;  %1290 = vrot.lane.b32.xlu0 %v1282_v28, %s2594_s30  ;;  %v1414_v30 = vmul.f32 %v3116_v62, %v2795_v44  ;;  %v1201_v28 = vmul.f32 %v3047_v19, %v2786_v40 }
 0x167   : > { %v1176_v38 = vadd.f32 %v1172_v41, %v1152_v6 }
 0x168   : > { %v986_v33 = vpop.permute.xlu1 %985  ;;  %v984_v34 = vpop.permute.xlu0 %983  ;;  %v3258_v45 = vadd.f32 %v995_v22, %v991_v20 }
 0x169   : > { %v988_v48 = vsel %vm481_vm2, %v984_v34, %v986_v33  ;;  %v3294_v33 = vld [vmem:[%s2747_s29 + $0xc8] sm:$0xff]  ;;  %v3297_v34 = vld [vmem:[%s2747_s29 + $0xc0] sm:$0xff] }
 0x16a   : > { %v992_v52 = vadd.f32 %v988_v48, %v970_v57  ;;  %1296 = vrot.lane.b32.xlu1 %v1285_v47, %s2594_s30  ;;  %1294 = vrot.lane.b32.xlu0 %v1284_v42, %s2594_s30  ;;  %v1202_v57 = vmul.f32 %v3060_v29, %v2784_v39  ;;  %v1620_v4 = vmul.f32 %v3294_v33, %v2795_v44 }
 0x16b   : > { %v1619_v48 = vmul.f32 %v3297_v34, %v2795_v44 }
 0x16c   : > { %v1188_v1 = vpop.permute.xlu1 %1187  ;;  %v1186_v18 = vpop.permute.xlu0 %1185  ;;  %v3272_v24 = vadd.f32 %v996_v60, %v992_v52  ;;  %v864_v52 = vsel %vm448_vm1, %v3205_v16, %v3203_v15  ;;  %v3311_v60 = vld [vmem:[%s2747_s29 + $0xd8] sm:$0xff] }
 0x16d   : > { %v1193_v51 = vsel %vm481_vm2, %v1186_v18, %v1188_v1  ;;  %v868_v1 = vadd.f32 %v864_v52, %v3196_v5  ;;  %v1641_v52 = vmul.f32 %v3297_v34, %v2806_v49 }
 0x16e   : > { %v1197_v8 = vadd.f32 %v1193_v51, %v1175_v0  ;;  %1423 = vrot.lane.b32.xlu1 %v1414_v30, %s2593_s21  ;;  %1421 = vrot.lane.b32.xlu0 %v1413_v46, %s2593_s21  ;;  %v3314_v0 = vld [vmem:[%s2747_s29 + $0xd0] sm:$0xff]  ;;  %v1622_v46 = vmul.f32 %v3311_v60, %v2793_v43 }
 0x16f   : > { %v1621_v41 = vmul.f32 %v3314_v0, %v2793_v43 }
 0x170   : > { %v1192_v17 = vpop.permute.xlu1 %1191  ;;  %v1190_v63 = vpop.permute.xlu0 %1189  ;;  %v3286_v59 = vadd.f32 %v1201_v28, %v1197_v8  ;;  %v1436_v28 = vmul.f32 %v3116_v62, %v2806_v49  ;;  %v1437_v62 = vmul.f32 %v3132_v27, %v2815_v54 }
 0x171   : > { %v1194_v20 = vsel %vm481_vm2, %v1190_v63, %v1192_v17 }
 0x172   : > { %v1198_v22 = vadd.f32 %v1194_v20, %v1176_v38  ;;  %1427 = vrot.lane.b32.xlu1 %v1416_v53, %s2593_s21  ;;  %1425 = vrot.lane.b32.xlu0 %v1415_v56, %s2593_s21  ;;  %v1435_v38 = vmul.f32 %v3119_v13, %v2806_v49 }
 0x174   : > { %v863_v47 = vpop.permute.xlu1 %862  ;;  %v861_v42 = vpop.permute.xlu0 %860  ;;  %v3303_v50 = vadd.f32 %v1202_v57, %v1198_v22 }
 0x175   : > { %v865_v15 = vsel %vm448_vm1, %v861_v42, %v863_v47 }
 0x176   : > { %1629 = vrot.lane.b32.xlu1 %v1620_v4, %s2593_s21  ;;  %1627 = vrot.lane.b32.xlu0 %v1619_v48, %s2593_s21  ;;  %v869_v6 = vadd.f32 %v865_v15, %v3211_v21  ;;  %v1438_v21 = vmul.f32 %v3129_v23, %v2815_v54  ;;  %v1642_v48 = vmul.f32 %v3294_v33, %v2806_v49 }
 0x177   : > { %v1643_v15 = vmul.f32 %v3314_v0, %v2815_v54 }
 0x178   : > { %v881_v18 = vpop.permute.xlu1 %880  ;;  %v879_v30 = vpop.permute.xlu0 %878 }
 0x179   : > { %v886_v16 = vsel %vm481_vm2, %v879_v30, %v881_v18 }
 0x17a   : > { %v890_v51 = vadd.f32 %v886_v16, %v868_v1  ;;  %1633 = vrot.lane.b32.xlu1 %v1622_v46, %s2593_s21  ;;  %1631 = vrot.lane.b32.xlu0 %v1621_v41, %s2593_s21  ;;  %v1644_v41 = vmul.f32 %v3311_v60, %v2815_v54 }
 0x17c   : > { %v885_v5 = vpop.permute.xlu1 %884  ;;  %v883_v8 = vpop.permute.xlu0 %882  ;;  %v892_v17 = vadd.f32 %v890_v51, %v2981_v12 }
 0x17d   : > { %v887_v63 = vsel %vm481_vm2, %v883_v8, %v885_v5  ;;  %v1773_v5 = vmul.f32 %v3297_v34, %v2753_v25 }
 0x17e   : > { %v891_v53 = vadd.f32 %v887_v63, %v869_v6  ;;  %1445 = vrot.lane.b32.xlu1 %v1436_v28, %s2594_s30  ;;  %1443 = vrot.lane.b32.xlu0 %v1435_v38, %s2594_s30  ;;  %v894_v57 = vmax.f32 %v892_v17, 0.0  ;;  %v1774_v6 = vmul.f32 %v3294_v33, %v2753_v25  ;;  %v1776_v63 = vmul.f32 %v3311_v60, %v2766_v31 }
 0x180   : > { %v1012_v56 = vpop.permute.xlu1 %1011  ;;  %v1010_v20 = vpop.permute.xlu0 %1009  ;;  %v893_v22 = vadd.f32 %v891_v53, %v2979_v9  ;;  %v896_v23 = vmin.f32 %v894_v57, 6.0  ;;  %v1775_v53 = vmul.f32 %v3314_v0, %v2766_v31 }
 0x181   : > { %v1017_v8 = vsel %vm448_vm1, %v1010_v20, %v1012_v56  ;;  %v3373_v56 = vld [vmem:[%s2747_s29 + $0xe8] sm:$0xff]  ;;  %v3376_v20 = vld [vmem:[%s2747_s29 + $0xe0] sm:$0xff] }
 0x182   : > { %1449 = vrot.lane.b32.xlu1 %v1438_v21, %s2594_s30  ;;  %1447 = vrot.lane.b32.xlu0 %v1437_v62, %s2594_s30  ;;  %v895_v47 = vmax.f32 %v893_v22, 0.0  ;;  %v1021_v28 = vadd.f32 %v1017_v8, %v3258_v45  ;;  %v1048_v45 = vmul.f32 %v3047_v19, %v2819_v55 }
 0x184   : > { %v1016_v42 = vpop.permute.xlu1 %1015  ;;  %v1014_v4 = vpop.permute.xlu0 %1013  ;;  %v897_v1 = vmin.f32 %v895_v47, 6.0 }
 0x185   : > { %v1018_v21 = vsel %vm448_vm1, %v1014_v4, %v1016_v42  ;;  %v1979_v4 = vmul.f32 %v3373_v56, %v2753_v25 }
 0x186   : > { %1651 = vrot.lane.b32.xlu1 %v1642_v48, %s2594_s30  ;;  %1649 = vrot.lane.b32.xlu0 %v1641_v52, %s2594_s30  ;;  %v898_v18 = vpack.c.bf16 %v897_v1, %v896_v23  ;;  %v1022_v57 = vadd.f32 %v1018_v21, %v3272_v24  ;;  %v1978_v48 = vmul.f32 %v3376_v20, %v2753_v25 }
 0x187   : > { %v1049_v24 = vmul.f32 %v3060_v29, %v2826_v58 }
 0x188   : > { %v1218_v30 = vpop.permute.xlu1 %1217  ;;  %2461 = vmatpush3.bf16.msra.mxu1 %v898_v18  ;;  %v1216_v46 = vpop.permute.xlu0 %1215  ;;  %v3392_v18 = vld [vmem:[%s2747_s29 + $0xf8] sm:$0xff] }
 0x189   : > { %2472 = vmatprep.subr.bf16.mxu1 %v2595_v11  ;;  %v1223_v23 = vsel %vm448_vm1, %v1216_v46, %v1218_v30  ;;  %v1981_v30 = vmul.f32 %v3392_v18, %v2766_v31 }
 0x18a   : > { %1655 = vrot.lane.b32.xlu1 %v1644_v41, %s2594_s30  ;;  %1653 = vrot.lane.b32.xlu0 %v1643_v15, %s2594_s30  ;;  %v3395_v41 = vld [vmem:[%s2747_s29 + $0xf0] sm:$0xff]  ;;  %v1227_v25 = vadd.f32 %v1223_v23, %v3286_v59  ;;  %v1254_v59 = vmul.f32 %v3119_v13, %v2819_v55 }
 0x18b   : > { %2463 = vmatmul.mubr.msk.bf16.vlgmr.msra.gmra.mxu1 %vm690_vm3, %v3141_v37  ;;  %v1980_v46 = vmul.f32 %v3395_v41, %v2766_v31  ;;  %v1796_v31 = vmul.f32 %v3294_v33, %v2777_v36 }
 0x18c   : > { %v1222_v16 = vpop.permute.xlu1 %1221  ;;  %v1220_v51 = vpop.permute.xlu0 %1219  ;;  %2474 = vmatprep.mubr.msk.bf16.mxu1 %vm2596_vm0, %v2595_v11 }
 0x18e   : > { %1783 = vrot.lane.b32.xlu1 %v1774_v6, %s2593_s21  ;;  %1781 = vrot.lane.b32.xlu0 %v1773_v5, %s2593_s21 }
 0x190   : > { %v1034_v38 = vpop.permute.xlu1 %1033  ;;  %v1032_v17 = vpop.permute.xlu0 %1031 }
 0x191   : > { %v1039_v62 = vsel %vm481_vm2, %v1032_v17, %v1034_v38 }
 0x192   : > { %v1043_v22 = vadd.f32 %v1039_v62, %v1021_v28  ;;  %1787 = vrot.lane.b32.xlu1 %v1776_v63, %s2593_s21  ;;  %1785 = vrot.lane.b32.xlu0 %v1775_v53, %s2593_s21  ;;  %v1224_v28 = vsel %vm448_vm1, %v1220_v51, %v1222_v16  ;;  %v1795_v16 = vmul.f32 %v3297_v34, %v2777_v36 }
 0x193   : > { %v1228_v63 = vadd.f32 %v1224_v28, %v3303_v50  ;;  %v1255_v50 = vmul.f32 %v3132_v27, %v2826_v58  ;;  %v1466_v28 = vmul.f32 %v3297_v34, %v2831_v61 }
 0x194   : > { %v1038_v47 = vpop.permute.xlu1 %1037  ;;  %v1036_v42 = vpop.permute.xlu0 %1035  ;;  %v3387_v52 = vadd.f32 %v1048_v45, %v1043_v22 }
 0x195   : > { %v1040_v1 = vsel %vm481_vm2, %v1036_v42, %v1038_v47  ;;  %v1798_v47 = vmul.f32 %v3311_v60, %v2775_v35  ;;  %v1797_v42 = vmul.f32 %v3314_v0, %v2775_v35 }
 0x196   : > { %v1044_v15 = vadd.f32 %v1040_v1, %v1022_v57  ;;  %1988 = vrot.lane.b32.xlu1 %v1979_v4, %s2593_s21  ;;  %1986 = vrot.lane.b32.xlu0 %v1978_v48, %s2593_s21  ;;  %v2001_v1 = vmul.f32 %v3373_v56, %v2777_v36 }
 0x198   : > { %v1240_v6 = vpop.permute.xlu1 %1239  ;;  %v1238_v5 = vpop.permute.xlu0 %1237  ;;  %v3406_v8 = vadd.f32 %v1049_v24, %v1044_v15  ;;  %v2000_v15 = vmul.f32 %v3376_v20, %v2777_v36  ;;  %v1467_v36 = vmul.f32 %v3294_v33, %v2831_v61 }
 0x199   : > { %v1245_v38 = vsel %vm481_vm2, %v1238_v5, %v1240_v6  ;;  %v2003_v6 = vmul.f32 %v3392_v18, %v2775_v35  ;;  %v2002_v5 = vmul.f32 %v3395_v41, %v2775_v35 }
 0x19a   : > { %v1249_v17 = vadd.f32 %v1245_v38, %v1227_v25  ;;  %1992 = vrot.lane.b32.xlu1 %v1981_v30, %s2593_s21  ;;  %1990 = vrot.lane.b32.xlu0 %v1980_v46, %s2593_s21 }
 0x19c   : > { %v1244_v53 = vpop.permute.xlu1 %1243  ;;  %v1242_v21 = vpop.permute.xlu0 %1241  ;;  %v3419_v51 = vadd.f32 %v1254_v59, %v1249_v17  ;;  %v1357_v17 = vmul.f32 %v3047_v19, %v2755_v26  ;;  %v1358_v19 = vmul.f32 %v3060_v29, %v2768_v32 }
 0x19d   : > { %v1246_v62 = vsel %vm481_vm2, %v1242_v21, %v1244_v53  ;;  %v1469_v53 = vmul.f32 %v3311_v60, %v2845_v2  ;;  %v1468_v21 = vmul.f32 %v3314_v0, %v2845_v2 }
 0x19e   : > { %v1250_v22 = vadd.f32 %v1246_v62, %v1228_v63  ;;  %1805 = vrot.lane.b32.xlu1 %v1796_v31, %s2594_s30  ;;  %1803 = vrot.lane.b32.xlu0 %v1795_v16, %s2594_s30 }
 0x1a0   : > { %v1372_v45 = vpop.permute.xlu1 %1371  ;;  %v1370_v57 = vpop.permute.xlu0 %1369  ;;  %v3430_v4 = vadd.f32 %v1255_v50, %v1250_v22  ;;  %v1407_v22 = vmul.f32 %v3119_v13, %v2786_v40 }
 0x1a1   : > { %v1377_v38 = vsel %vm448_vm1, %v1370_v57, %v1372_v45 }
 0x1a2   : > { %1809 = vrot.lane.b32.xlu1 %v1798_v47, %s2594_s30  ;;  %1807 = vrot.lane.b32.xlu0 %v1797_v42, %s2594_s30  ;;  %v1381_v35 = vadd.f32 %v1377_v38, %v1357_v17  ;;  %v1673_v47 = vmul.f32 %v3373_v56, %v2831_v61  ;;  %v1672_v42 = vmul.f32 %v3376_v20, %v2831_v61 }
 0x1a4   : > { %v1376_v48 = vpop.permute.xlu1 %1375  ;;  %v1374_v23 = vpop.permute.xlu0 %1373 }
 0x1a5   : > { %v1378_v31 = vsel %vm448_vm1, %v1374_v23, %v1376_v48 }
 0x1a6   : > { %2010 = vrot.lane.b32.xlu1 %v2001_v1, %s2594_s30  ;;  %2008 = vrot.lane.b32.xlu0 %v2000_v15, %s2594_s30  ;;  %v1382_v50 = vadd.f32 %v1378_v31, %v1358_v19  ;;  %v1563_v1 = vmul.f32 %v3119_v13, %v2755_v26 }
 0x1a8   : > { %v1578_v24 = vpop.permute.xlu1 %1577  ;;  %v1576_v25 = vpop.permute.xlu0 %1575 }
 0x1a9   : > { %v1583_v29 = vsel %vm448_vm1, %v1576_v25, %v1578_v24  ;;  %v1675_v24 = vmul.f32 %v3392_v18, %v2845_v2  ;;  %v1674_v25 = vmul.f32 %v3395_v41, %v2845_v2 }
 0x1aa   : > { %2014 = vrot.lane.b32.xlu1 %v2003_v6, %s2594_s30  ;;  %2012 = vrot.lane.b32.xlu0 %v2002_v5, %s2594_s30  ;;  %v1408_v6 = vmul.f32 %v3132_v27, %v2784_v39  ;;  %v1587_v5 = vadd.f32 %v1583_v29, %v1563_v1  ;;  %v1695_v29 = vmul.f32 %v3373_v56, %v2859_v7 }
 0x1ac   : > { %v1582_v30 = vpop.permute.xlu1 %1581  ;;  %v1580_v46 = vpop.permute.xlu0 %1579 }
 0x1ad   : > { %v1584_v13 = vsel %vm448_vm1, %v1580_v46, %v1582_v30  ;;  %v1488_v30 = vmul.f32 %v3297_v34, %v2859_v7 }
 0x1ae   : > { %1476 = vrot.lane.b32.xlu1 %v1467_v36, %s2593_s21  ;;  %1474 = vrot.lane.b32.xlu0 %v1466_v28, %s2593_s21 }
 0x1b0   : > { %v1394_v59 = vpop.permute.xlu1 %1393  ;;  %v1392_v63 = vpop.permute.xlu0 %1391 }
 0x1b1   : > { %v1399_v16 = vsel %vm481_vm2, %v1392_v63, %v1394_v59  ;;  %v1613_v63 = vmul.f32 %v3297_v34, %v2786_v40 }
 0x1b2   : > { %v1403_v62 = vadd.f32 %v1399_v16, %v1381_v35  ;;  %1480 = vrot.lane.b32.xlu1 %v1469_v53, %s2593_s21  ;;  %1478 = vrot.lane.b32.xlu0 %v1468_v21, %s2593_s21  ;;  %v1564_v35 = vmul.f32 %v3132_v27, %v2768_v32  ;;  %v1489_v16 = vmul.f32 %v3294_v33, %v2859_v7 }
 0x1b3   : > { %v1491_v33 = vmul.f32 %v3311_v60, %v2867_v10 }
 0x1b4   : > { %v1398_v45 = vpop.permute.xlu1 %1397  ;;  %v1396_v57 = vpop.permute.xlu0 %1395  ;;  %v3471_v48 = vadd.f32 %v1407_v22, %v1403_v62  ;;  %v1588_v53 = vadd.f32 %v1584_v13, %v1564_v35  ;;  %v1614_v62 = vmul.f32 %v3314_v0, %v2784_v39 }
 0x1b5   : > { %v1400_v23 = vsel %vm481_vm2, %v1396_v57, %v1398_v45  ;;  %v1490_v45 = vmul.f32 %v3314_v0, %v2867_v10 }
 0x1b6   : > { %v1404_v15 = vadd.f32 %v1400_v23, %v1382_v50  ;;  %1682 = vrot.lane.b32.xlu1 %v1673_v47, %s2593_s21  ;;  %1680 = vrot.lane.b32.xlu0 %v1672_v42, %s2593_s21  ;;  %v1694_v23 = vmul.f32 %v3376_v20, %v2859_v7 }
 0x1b8   : > { %v1600_v36 = vpop.permute.xlu1 %1599  ;;  %v1598_v28 = vpop.permute.xlu0 %1597  ;;  %v3485_v38 = vadd.f32 %v1408_v6, %v1404_v15  ;;  %v1697_v15 = vmul.f32 %v3392_v18, %v2867_v10  ;;  %v1696_v6 = vmul.f32 %v3395_v41, %v2867_v10 }
 0x1b9   : > { %v1605_v17 = vsel %vm481_vm2, %v1598_v28, %v1600_v36  ;;  %v1826_v28 = vmul.f32 %v3373_v56, %v2795_v44 }
 0x1ba   : > { %v1609_v59 = vadd.f32 %v1605_v17, %v1587_v5  ;;  %1686 = vrot.lane.b32.xlu1 %v1675_v24, %s2593_s21  ;;  %1684 = vrot.lane.b32.xlu0 %v1674_v25, %s2593_s21  ;;  %v1825_v24 = vmul.f32 %v3376_v20, %v2795_v44 }
 0x1bc   : > { %v1604_v21 = vpop.permute.xlu1 %1603  ;;  %v1602_v31 = vpop.permute.xlu0 %1601  ;;  %v3500_v46 = vadd.f32 %v1613_v63, %v1609_v59  ;;  %v1828_v59 = vmul.f32 %v3392_v18, %v2793_v43  ;;  %v1827_v63 = vmul.f32 %v3395_v41, %v2793_v43 }
 0x1bd   : > { %v1606_v27 = vsel %vm481_vm2, %v1602_v31, %v1604_v21  ;;  %v3549_v21 = vld [vmem:[%s3544_s16 + $0x8] sm:$0xff] }
 0x1be   : > { %v1610_v19 = vadd.f32 %v1606_v27, %v1588_v53  ;;  %1498 = vrot.lane.b32.xlu1 %v1489_v16, %s2594_s30  ;;  %1496 = vrot.lane.b32.xlu0 %v1488_v30, %s2594_s30  ;;  %v3554_v16 = vld [vmem:[%s3544_s16] sm:$0xff] }
 0x1c0   : > { %v1065_v22 = vpop.permute.xlu1 %1064  ;;  %v1063_v50 = vpop.permute.xlu0 %1062  ;;  %v3511_v57 = vadd.f32 %v1614_v62, %v1610_v19 }
 0x1c1   : > { %v1070_v25 = vsel %vm448_vm1, %v1063_v50, %v1065_v22  ;;  %v2031_v22 = vmul.f32 %v3549_v21, %v2795_v44  ;;  %v2030_v50 = vmul.f32 %v3554_v16, %v2795_v44 }
 0x1c2   : > { %1502 = vrot.lane.b32.xlu1 %v1491_v33, %s2594_s30  ;;  %1500 = vrot.lane.b32.xlu0 %v1490_v45, %s2594_s30  ;;  %v1074_v13 = vadd.f32 %v1070_v25, %v3387_v52  ;;  %v3563_v33 = vld [vmem:[%s3544_s16 + $0x18] sm:$0xff] }
 0x1c4   : > { %v1069_v47 = vpop.permute.xlu1 %1068  ;;  %v1067_v42 = vpop.permute.xlu0 %1066 }
 0x1c5   : > { %v1071_v53 = vsel %vm448_vm1, %v1067_v42, %v1069_v47 }
 0x1c6   : > { %1704 = vrot.lane.b32.xlu1 %v1695_v29, %s2594_s30  ;;  %1702 = vrot.lane.b32.xlu0 %v1694_v23, %s2594_s30  ;;  %v1075_v30 = vadd.f32 %v1071_v53, %v3406_v8  ;;  %v2033_v8 = vmul.f32 %v3563_v33, %v2793_v43  ;;  %v3572_v29 = vld [vmem:[%s3544_s16 + $0x10] sm:$0xff] }
 0x1c8   : > { %v1271_v60 = vpop.permute.xlu1 %1270  ;;  %v1269_v1 = vpop.permute.xlu0 %1268 }
 0x1c9   : > { %v1276_v45 = vsel %vm448_vm1, %v1269_v1, %v1271_v60  ;;  %v2032_v60 = vmul.f32 %v3572_v29, %v2793_v43 }
 0x1ca   : > { %1708 = vrot.lane.b32.xlu1 %v1697_v15, %s2594_s30  ;;  %1706 = vrot.lane.b32.xlu0 %v1696_v6, %s2594_s30  ;;  %v1280_v23 = vadd.f32 %v1276_v45, %v3419_v51  ;;  %v1848_v51 = vmul.f32 %v3373_v56, %v2806_v49 }
 0x1cc   : > { %v1275_v5 = vpop.permute.xlu1 %1274  ;;  %v1273_v36 = vpop.permute.xlu0 %1272 }
 0x1cd   : > { %v1277_v1 = vsel %vm448_vm1, %v1273_v36, %v1275_v5 }
 0x1ce   : > { %1835 = vrot.lane.b32.xlu1 %v1826_v28, %s2593_s21  ;;  %1833 = vrot.lane.b32.xlu0 %v1825_v24, %s2593_s21 }
 0x1d0   : > { %v1087_v17 = vpop.permute.xlu1 %1086  ;;  %v1085_v35 = vpop.permute.xlu0 %1084 }
 0x1d1   : > { %v1092_v52 = vsel %vm481_vm2, %v1085_v35, %v1087_v17  ;;  %v1847_v17 = vmul.f32 %v3376_v20, %v2806_v49  ;;  %v1281_v35 = vadd.f32 %v1277_v1, %v3430_v4  ;;  %v1850_v4 = vmul.f32 %v3392_v18, %v2815_v54 }
 0x1d2   : > { %v1096_v31 = vadd.f32 %v1092_v52, %v1074_v13  ;;  %1839 = vrot.lane.b32.xlu1 %v1828_v59, %s2593_s21  ;;  %1837 = vrot.lane.b32.xlu0 %v1827_v63, %s2593_s21  ;;  %v2055_v1 = vmul.f32 %v3563_v33, %v2815_v54 }
 0x1d4   : > { %v1098_v27 = vadd.f32 %v1096_v31, %v2981_v12  ;;  %v1091_v19 = vpop.permute.xlu1 %1090  ;;  %v1089_v62 = vpop.permute.xlu0 %1088 }
 0x1d5   : > { %v1093_v47 = vsel %vm481_vm2, %v1089_v62, %v1091_v19  ;;  %v1849_v62 = vmul.f32 %v3395_v41, %v2815_v54 }
 0x1d6   : > { %v1097_v42 = vadd.f32 %v1093_v47, %v1075_v30  ;;  %2040 = vrot.lane.b32.xlu1 %v2031_v22, %s2593_s21  ;;  %2038 = vrot.lane.b32.xlu0 %v2030_v50, %s2593_s21  ;;  %v1100_v15 = vmax.f32 %v1098_v27, 0.0 }
 0x1d8   : > { %v1099_v44 = vadd.f32 %v1097_v42, %v2979_v9  ;;  %v1293_v6 = vpop.permute.xlu1 %1292  ;;  %v1291_v28 = vpop.permute.xlu0 %1290  ;;  %v1102_v59 = vmin.f32 %v1100_v15, 6.0  ;;  %v2052_v15 = vmul.f32 %v3554_v16, %v2806_v49 }
 0x1d9   : > { %v1298_v24 = vsel %vm481_vm2, %v1291_v28, %v1293_v6 }
 0x1da   : > { %v1101_v25 = vmax.f32 %v1099_v44, 0.0  ;;  %v1302_v13 = vadd.f32 %v1298_v24, %v1280_v23  ;;  %2044 = vrot.lane.b32.xlu1 %v2033_v8, %s2593_s21  ;;  %2042 = vrot.lane.b32.xlu0 %v2032_v60, %s2593_s21  ;;  %v2053_v23 = vmul.f32 %v3549_v21, %v2806_v49  ;;  %v2054_v49 = vmul.f32 %v3572_v29, %v2815_v54 }
 0x1db   : > { %v1878_v54 = vmul.f32 %v3549_v21, %v2831_v61 }
 0x1dc   : > { %v1103_v43 = vmin.f32 %v1101_v25, 6.0  ;;  %v1304_v5 = vadd.f32 %v1302_v13, %v2981_v12  ;;  %v1297_v36 = vpop.permute.xlu1 %1296  ;;  %v1295_v63 = vpop.permute.xlu0 %1294 }
 0x1dd   : > { %v1299_v53 = vsel %vm481_vm2, %v1295_v63, %v1297_v36  ;;  %v3642_v36 = vld [vmem:[%s3544_s16 + $0x28] sm:$0xff]  ;;  %v1460_v63 = vmul.f32 %v3297_v34, %v2819_v55 }
 0x1de   : > { %v1303_v52 = vadd.f32 %v1299_v53, %v1281_v35  ;;  %1857 = vrot.lane.b32.xlu1 %v1848_v51, %s2594_s30  ;;  %1855 = vrot.lane.b32.xlu0 %v1847_v17, %s2594_s30  ;;  %v1104_v31 = vpack.c.bf16 %v1103_v43, %v1102_v59  ;;  %v1306_v56 = vmax.f32 %v1304_v5, 0.0  ;;  %v1877_v51 = vmul.f32 %v3554_v16, %v2831_v61  ;;  %v3650_v53 = vld [vmem:[%s3544_s16 + $0x20] sm:$0xff] }
 0x1df   : > { %v1880_v59 = vmul.f32 %v3563_v33, %v2845_v2  ;;  %v1879_v43 = vmul.f32 %v3572_v29, %v2845_v2 }
 0x1e0   : > { %v1305_v30 = vadd.f32 %v1303_v52, %v2979_v9  ;;  %v1424_v27 = vpop.permute.xlu1 %1423  ;;  %v1422_v19 = vpop.permute.xlu0 %1421  ;;  %2467 = vmatpush3.bf16.msra.mxu0 %v1104_v31  ;;  %v1308_v47 = vmin.f32 %v1306_v56, 6.0  ;;  %v2084_v56 = vmul.f32 %v3642_v36, %v2831_v61 }
 0x1e1   : > { %v1429_v22 = vsel %vm448_vm1, %v1422_v19, %v1424_v27  ;;  %2478 = vmatprep.subr.bf16.mxu0 %v2595_v11 }
 0x1e2   : > { %v1307_v50 = vmax.f32 %v1305_v30, 0.0  ;;  %v1433_v45 = vadd.f32 %v1429_v22, %v3471_v48  ;;  %1861 = vrot.lane.b32.xlu1 %v1850_v4, %s2594_s30  ;;  %1859 = vrot.lane.b32.xlu0 %v1849_v62, %s2594_s30  ;;  %v2083_v30 = vmul.f32 %v3650_v53, %v2831_v61  ;;  %v2423_v4 = vld [vmem:[%s3544_s16 + $0x38] sm:$0xff]  ;;  %v1461_v22 = vmul.f32 %v3314_v0, %v2826_v58 }
 0x1e3   : > { %2469 = vmatmul.mubr.msk.bf16.vlgmr.msra.gmra.mxu0 %vm690_vm3, %v3141_v37  ;;  %v2086_v61 = vmul.f32 %v2423_v4, %v2845_v2 }
 0x1e4   : > { %v1309_v42 = vmin.f32 %v1307_v50, 6.0  ;;  %v1428_v18 = vpop.permute.xlu1 %1427  ;;  %v1426_v8 = vpop.permute.xlu0 %1425  ;;  %2480 = vmatprep.mubr.msk.bf16.mxu0 %vm2596_vm0, %v2595_v11  ;;  %v3665_v50 = vld [vmem:[%s3544_s16 + $0x30] sm:$0xff] }
 0x1e5   : > { %v1430_v48 = vsel %vm448_vm1, %v1426_v8, %v1428_v18 }
 0x1e6   : > { %v1434_v44 = vadd.f32 %v1430_v48, %v3485_v38  ;;  %2062 = vrot.lane.b32.xlu1 %v2053_v23, %s2594_s30  ;;  %2060 = vrot.lane.b32.xlu0 %v2052_v15, %s2594_s30  ;;  %v1310_v6 = vpack.c.bf16 %v1309_v42, %v1308_v47  ;;  %v2085_v42 = vmul.f32 %v3665_v50, %v2845_v2 }
 0x1e7   : > { %v1666_v15 = vmul.f32 %v3376_v20, %v2819_v55 }
 0x1e8   : > { %v1630_v28 = vpop.permute.xlu1 %1629  ;;  %2473 = vmatpush3.bf16.msra.mxu1 %v1310_v6  ;;  %v1628_v60 = vpop.permute.xlu0 %1627 }
 0x1e9   : > { %v1635_v24 = vsel %vm448_vm1, %v1628_v60, %v1630_v28  ;;  %2484 = vmatprep.subr.bf16.mxu1 %v2595_v11  ;;  %v1900_v28 = vmul.f32 %v3549_v21, %v2859_v7  ;;  %v1899_v60 = vmul.f32 %v3554_v16, %v2859_v7  ;;  %v1769_v21 = vmul.f32 %v3297_v34, %v2755_v26 }
 0x1ea   : > { %v1639_v38 = vadd.f32 %v1635_v24, %v3500_v46  ;;  %2066 = vrot.lane.b32.xlu1 %v2055_v1, %s2594_s30  ;;  %2064 = vrot.lane.b32.xlu0 %v2054_v49, %s2594_s30 }
 0x1eb   : > { %2475 = vmatmul.mubr.msk.bf16.vlgmr.msra.gmra.mxu1 %vm690_vm3, %v3141_v37 }
 0x1ec   : > { %v1634_v25 = vpop.permute.xlu1 %1633  ;;  %v1632_v13 = vpop.permute.xlu0 %1631  ;;  %2486 = vmatprep.mubr.msk.bf16.mxu1 %vm2596_vm0, %v2595_v11 }
 0x1ed   : > { %v1636_v46 = vsel %vm448_vm1, %v1632_v13, %v1634_v25  ;;  %v1667_v25 = vmul.f32 %v3395_v41, %v2826_v58 }
 0x1ee   : > { %v1640_v17 = vadd.f32 %v1636_v46, %v3511_v57  ;;  %1887 = vrot.lane.b32.xlu1 %v1878_v54, %s2593_s21  ;;  %1885 = vrot.lane.b32.xlu0 %v1877_v51, %s2593_s21 }
 0x1f0   : > { %v1446_v37 = vpop.permute.xlu1 %1445  ;;  %v1444_v35 = vpop.permute.xlu0 %1443 }
 0x1f1   : > { %v1451_v5 = vsel %vm481_vm2, %v1444_v35, %v1446_v37  ;;  %v1902_v37 = vmul.f32 %v3563_v33, %v2867_v10  ;;  %v2106_v33 = vmul.f32 %v3642_v36, %v2859_v7  ;;  %v2107_v36 = vmul.f32 %v3665_v50, %v2867_v10 }
 0x1f2   : > { %v1455_v57 = vadd.f32 %v1451_v5, %v1433_v45  ;;  %1891 = vrot.lane.b32.xlu1 %v1880_v59, %s2593_s21  ;;  %1889 = vrot.lane.b32.xlu0 %v1879_v43, %s2593_s21 }
 0x1f4   : > { %v1450_v52 = vpop.permute.xlu1 %1449  ;;  %v1448_v31 = vpop.permute.xlu0 %1447  ;;  %v3656_v27 = vadd.f32 %v1460_v63, %v1455_v57  ;;  %v1770_v57 = vmul.f32 %v3314_v0, %v2768_v32  ;;  %v2108_v0 = vmul.f32 %v2423_v4, %v2867_v10 }
 0x1f5   : > { %v1452_v19 = vsel %vm481_vm2, %v1448_v31, %v1450_v52  ;;  %v2105_v52 = vmul.f32 %v3650_v53, %v2859_v7 }
 0x1f6   : > { %v1456_v62 = vadd.f32 %v1452_v19, %v1434_v44  ;;  %2093 = vrot.lane.b32.xlu1 %v2084_v56, %s2593_s21  ;;  %2091 = vrot.lane.b32.xlu0 %v2083_v30, %s2593_s21  ;;  %v1974_v19 = vmul.f32 %v3376_v20, %v2755_v26 }
 0x1f8   : > { %v1652_v45 = vpop.permute.xlu1 %1651  ;;  %v1650_v47 = vpop.permute.xlu0 %1649  ;;  %v3670_v18 = vadd.f32 %v1461_v22, %v1456_v62 }
 0x1f9   : > { %v1657_v8 = vsel %vm481_vm2, %v1650_v47, %v1652_v45  ;;  %v1975_v47 = vmul.f32 %v3395_v41, %v2768_v32  ;;  %v1820_v32 = vmul.f32 %v3395_v41, %v2784_v39  ;;  %v2025_v41 = vmul.f32 %v3572_v29, %v2784_v39 }
 0x1fa   : > { %v1661_v23 = vadd.f32 %v1657_v8, %v1639_v38  ;;  %2097 = vrot.lane.b32.xlu1 %v2086_v61, %s2593_s21  ;;  %2095 = vrot.lane.b32.xlu0 %v2085_v42, %s2593_s21 }
 0x1fb   : > { %v728_v2 = vpop.f32.mrf.mxu0 }
 0x1fc   : > { %v729_v48 = vadd.f32 %v728_v2, %v2993_v14  ;;  %v1656_v44 = vpop.permute.xlu1 %1655  ;;  %v1654_v6 = vpop.permute.xlu0 %1653  ;;  %v3687_v1 = vadd.f32 %v1666_v15, %v1661_v23  ;;  %v1819_v15 = vmul.f32 %v3376_v20, %v2786_v40  ;;  %v2024_v20 = vmul.f32 %v3554_v16, %v2786_v40 }
 0x1fd   : > { %v1658_v49 = vsel %vm481_vm2, %v1654_v6, %v1656_v44  ;;  %v2458_v24 = vpop.f32.mrf.mxu0 }
 0x1fe   : > { %735 = vst [vmem:[%s3680_s28] sm:$0xff] %v729_v48  ;;  %v1662_v38 = vadd.f32 %v1658_v49, %v1640_v17  ;;  %1909 = vrot.lane.b32.xlu1 %v1900_v28, %s2594_s30  ;;  %1907 = vrot.lane.b32.xlu0 %v1899_v60, %s2594_s30  ;;  %v1901_v17 = vmul.f32 %v3572_v29, %v2867_v10 }
 0x1ff   : > { %v731_v13 = vpop.f32.mrf.mxu0 }
 0x200   : > { %v732_v54 = vadd.f32 %v731_v13, %v2991_v3  ;;  %v1784_v51 = vpop.permute.xlu1 %1783  ;;  %v1782_v46 = vpop.permute.xlu0 %1781  ;;  %v3702_v35 = vadd.f32 %v1667_v25, %v1662_v38 }
 0x201   : > { %v1789_v59 = vsel %vm448_vm1, %v1782_v46, %v1784_v51  ;;  %v2459_v43 = vpop.f32.mrf.mxu0 }
 0x202   : > { %736 = vst [vmem:[%s3680_s28 + $0x8] sm:$0xff] %v732_v54  ;;  %v1793_v5 = vadd.f32 %v1789_v59, %v1769_v21  ;;  %1913 = vrot.lane.b32.xlu1 %v1902_v37, %s2594_s30  ;;  %1911 = vrot.lane.b32.xlu0 %v1901_v17, %s2594_s30 }
 0x204   : > { %v1788_v34 = vpop.permute.xlu1 %1787  ;;  %v1786_v63 = vpop.permute.xlu0 %1785 }
 0x205   : > { %v1790_v31 = vsel %vm448_vm1, %v1786_v63, %v1788_v34 }
 0x206   : > { %v1794_v56 = vadd.f32 %v1790_v31, %v1770_v57  ;;  %2115 = vrot.lane.b32.xlu1 %v2106_v33, %s2594_s30  ;;  %2113 = vrot.lane.b32.xlu0 %v2105_v52, %s2594_s30 }
 0x208   : > { %v1989_v30 = vpop.permute.xlu1 %1988  ;;  %v1987_v62 = vpop.permute.xlu0 %1986 }
 0x209   : > { %v1994_v22 = vsel %vm448_vm1, %v1987_v62, %v1989_v30 }
 0x20a   : > { %v1998_v7 = vadd.f32 %v1994_v22, %v1974_v19  ;;  %2119 = vrot.lane.b32.xlu1 %v2108_v0, %s2594_s30  ;;  %2117 = vrot.lane.b32.xlu0 %v2107_v36, %s2594_s30 }
 0x20c   : > { %v1993_v45 = vpop.permute.xlu1 %1992  ;;  %v1991_v61 = vpop.permute.xlu0 %1990 }
 0x20d   : > { %v1995_v26 = vsel %vm448_vm1, %v1991_v61, %v1993_v45 }
 0x20e   : > { %v1999_v42 = vadd.f32 %v1995_v26, %v1975_v47 }
 0x210   : > { %v1806_v8 = vpop.permute.xlu1 %1805  ;;  %v1804_v4 = vpop.permute.xlu0 %1803 }
 0x211   : > { %v1811_v23 = vsel %vm481_vm2, %v1804_v4, %v1806_v8 }
 0x212   : > { %v1815_v10 = vadd.f32 %v1811_v23, %v1793_v5 }
 0x214   : > { %v1810_v2 = vpop.permute.xlu1 %1809  ;;  %v1808_v48 = vpop.permute.xlu0 %1807  ;;  %v3731_v44 = vadd.f32 %v1819_v15, %v1815_v10 }
 0x215   : > { %v1812_v6 = vsel %vm481_vm2, %v1808_v48, %v1810_v2 }
 0x216   : > { %v1816_v28 = vadd.f32 %v1812_v6, %v1794_v56 }
 0x218   : > { %v2011_v60 = vpop.permute.xlu1 %2010  ;;  %v2009_v49 = vpop.permute.xlu0 %2008  ;;  %v3736_v24 = vadd.f32 %v1820_v32, %v1816_v28 }
 0x219   : > { %v2016_v38 = vsel %vm481_vm2, %v2009_v49, %v2011_v60 }
 0x21a   : > { %v2020_v25 = vadd.f32 %v2016_v38, %v1998_v7 }
 0x21c   : > { %v2015_v13 = vpop.permute.xlu1 %2014  ;;  %v2013_v21 = vpop.permute.xlu0 %2012  ;;  %v3741_v54 = vadd.f32 %v2024_v20, %v2020_v25 }
 0x21d   : > { %v2017_v51 = vsel %vm481_vm2, %v2013_v21, %v2015_v13 }
 0x21e   : > { %v2021_v46 = vadd.f32 %v2017_v51, %v1999_v42 }
 0x220   : > { %v1477_v37 = vpop.permute.xlu1 %1476  ;;  %v1475_v17 = vpop.permute.xlu0 %1474  ;;  %v3746_v59 = vadd.f32 %v2025_v41, %v2021_v46 }
 0x221   : > { %v1482_v33 = vsel %vm448_vm1, %v1475_v17, %v1477_v37 }
 0x222   : > { %v1486_v52 = vadd.f32 %v1482_v33, %v3656_v27 }
 0x224   : > { %v1481_v43 = vpop.permute.xlu1 %1480  ;;  %v1479_v5 = vpop.permute.xlu0 %1478 }
 0x225   : > { %v1483_v30 = vsel %vm448_vm1, %v1479_v5, %v1481_v43 }
 0x226   : > { %v1487_v62 = vadd.f32 %v1483_v30, %v3670_v18 }
 0x228   : > { %v1683_v34 = vpop.permute.xlu1 %1682  ;;  %v1681_v57 = vpop.permute.xlu0 %1680 }
 0x229   : > { %v1688_v7 = vsel %vm448_vm1, %v1681_v57, %v1683_v34 }
 0x22a   : > { %v1692_v27 = vadd.f32 %v1688_v7, %v3687_v1 }
 0x22c   : > { %v1687_v63 = vpop.permute.xlu1 %1686  ;;  %v1685_v40 = vpop.permute.xlu0 %1684 }
 0x22d   : > { %v1689_v4 = vsel %vm448_vm1, %v1685_v40, %v1687_v63 }
 0x22e   : > { %v1693_v15 = vadd.f32 %v1689_v4, %v3702_v35  ;;  %v3768_v35 = vld [vmem:[%s3862_s4] sm:$0xff]  }
 0x230   : > { %v1499_v31 = vpop.permute.xlu1 %1498  ;;  %v1497_v56 = vpop.permute.xlu0 %1496 }
 0x231   : > { %v1504_v39 = vsel %vm481_vm2, %v1497_v56, %v1499_v31 }
 0x232   : > { %v1508_v19 = vadd.f32 %v1504_v39, %v1486_v52 }
 0x234   : > { %v1510_v0 = vadd.f32 %v1508_v19, %v2981_v12  ;;  %v1503_v36 = vpop.permute.xlu1 %1502  ;;  %v1501_v22 = vpop.permute.xlu0 %1500 }
 0x235   : > { %v1505_v45 = vsel %vm481_vm2, %v1501_v22, %v1503_v36 }
 0x236   : > { %v1509_v47 = vadd.f32 %v1505_v45, %v1487_v62  ;;  %v1512_v61 = vmax.f32 %v1510_v0, 0.0 }
 0x238   : > { %v1511_v26 = vadd.f32 %v1509_v47, %v2979_v9  ;;  %v1705_v42 = vpop.permute.xlu1 %1704  ;;  %v1703_v8 = vpop.permute.xlu0 %1702  ;;  %v1514_v2 = vmin.f32 %v1512_v61, 6.0 }
 0x239   : > { %v1710_v18 = vsel %vm481_vm2, %v1703_v8, %v1705_v42  ;;  %v1872_v42 = vmul.f32 %v3572_v29, %v2826_v58 }
 0x23a   : > { %v1513_v23 = vmax.f32 %v1511_v26, 0.0  ;;  %v1714_v10 = vadd.f32 %v1710_v18, %v1692_v27 }
 0x23c   : > { %v1515_v48 = vmin.f32 %v1513_v23, 6.0  ;;  %v1716_v6 = vadd.f32 %v1714_v10, %v2981_v12  ;;  %v1709_v28 = vpop.permute.xlu1 %1708  ;;  %v1707_v32 = vpop.permute.xlu0 %1706 }
 0x23d   : > { %v1711_v1 = vsel %vm481_vm2, %v1707_v32, %v1709_v28 }
 0x23e   : > { %v1715_v60 = vadd.f32 %v1711_v1, %v1693_v15  ;;  %v1516_v49 = vpack.c.bf16 %v1515_v48, %v1514_v2  ;;  %v1718_v38 = vmax.f32 %v1716_v6, 0.0  ;;  %v2077_v15 = vmul.f32 %v3650_v53, %v2819_v55 }
 0x240   : > { %v1717_v25 = vadd.f32 %v1715_v60, %v2979_v9  ;;  %v1836_v20 = vpop.permute.xlu1 %1835  ;;  %v1834_v13 = vpop.permute.xlu0 %1833  ;;  %2479 = vmatpush3.bf16.msra.mxu0 %v1516_v49  ;;  %v1720_v51 = vmin.f32 %v1718_v38, 6.0 }
 0x241   : > { %2490 = vmatprep.subr.bf16.mxu0 %v2595_v11  ;;  %v1841_v33 = vsel %vm448_vm1, %v1834_v13, %v1836_v20 }
 0x242   : > { %v1719_v21 = vmax.f32 %v1717_v25, 0.0  ;;  %v1845_v56 = vadd.f32 %v1841_v33, %v3731_v44 }
 0x243   : > { %2481 = vmatmul.mubr.msk.bf16.vlgmr.msra.gmra.mxu0 %vm690_vm3, %v3768_v35 }
 0x244   : > { %v1721_v46 = vmin.f32 %v1719_v21, 6.0  ;;  %v1840_v41 = vpop.permute.xlu1 %1839  ;;  %v1838_v37 = vpop.permute.xlu0 %1837  ;;  %2492 = vmatprep.mubr.msk.bf16.mxu0 %vm2596_vm0, %v2595_v11 }
 0x245   : > { %v1842_v62 = vsel %vm448_vm1, %v1838_v37, %v1840_v41 }
 0x246   : > { %v1722_v17 = vpack.c.bf16 %v1721_v46, %v1720_v51  ;;  %v1846_v7 = vadd.f32 %v1842_v62, %v3736_v24 }
 0x248   : > { %v2041_v43 = vpop.permute.xlu1 %2040  ;;  %2485 = vmatpush3.bf16.msra.mxu1 %v1722_v17  ;;  %v2039_v5 = vpop.permute.xlu0 %2038 }
 0x249   : > { %2496 = vmatprep.subr.bf16.mxu1 %v2595_v11  ;;  %v2046_v44 = vsel %vm448_vm1, %v2039_v5, %v2041_v43 }
 0x24a   : > { %v2050_v8 = vadd.f32 %v2046_v44, %v3741_v54  ;;  %v2078_v54 = vmul.f32 %v3665_v50, %v2826_v58 }
 0x24b   : > { %v933_v34 = vpop.f32.mrf.mxu1  ;;  %2487 = vmatmul.mubr.msk.bf16.vlgmr.msra.gmra.mxu1 %vm690_vm3, %v3768_v35 }
 0x24c   : > { %v934_v57 = vadd.f32 %v933_v34, %v2993_v14  ;;  %v2045_v63 = vpop.permute.xlu1 %2044  ;;  %v2043_v40 = vpop.permute.xlu0 %2042  ;;  %2498 = vmatprep.mubr.msk.bf16.mxu1 %vm2596_vm0, %v2595_v11  ;;  %v1871_v11 = vmul.f32 %v3554_v16, %v2819_v55 }
 0x24d   : > { %v2464_v52 = vpop.f32.mrf.mxu1  ;;  %v2047_v16 = vsel %vm448_vm1, %v2043_v40, %v2045_v63 }
 0x24e   : > { %2343 = vst [vmem:[%s3680_s28 + $0x10] sm:$0xff] %v934_v57  ;;  %v2051_v2 = vadd.f32 %v2047_v16, %v3746_v59 }
 0x24f   : > { %v936_v31 = vpop.f32.mrf.mxu1 }
 0x250   : > { %v937_v30 = vadd.f32 %v936_v31, %v2991_v3  ;;  %v1858_v39 = vpop.permute.xlu1 %1857  ;;  %v1856_v19 = vpop.permute.xlu0 %1855 }
 0x251   : > { %v1863_v0 = vsel %vm481_vm2, %v1856_v19, %v1858_v39  ;;  %v2465_v36 = vpop.f32.mrf.mxu1 }
 0x252   : > { %2344 = vst [vmem:[%s3680_s28 + $0x18] sm:$0xff] %v937_v30  ;;  %v1867_v22 = vadd.f32 %v1863_v0, %v1845_v56 }
 0x254   : > { %v1862_v45 = vpop.permute.xlu1 %1861  ;;  %v1860_v47 = vpop.permute.xlu0 %1859  ;;  %v1873_v27 = vadd.f32 %v1871_v11, %v1867_v22 }
 0x255   : > { %v1864_v61 = vsel %vm481_vm2, %v1860_v47, %v1862_v45 }
 0x256   : > { %v1868_v26 = vadd.f32 %v1864_v61, %v1846_v7 }
 0x258   : > { %v2063_v4 = vpop.permute.xlu1 %2062  ;;  %v2061_v18 = vpop.permute.xlu0 %2060  ;;  %v1874_v23 = vadd.f32 %v1872_v42, %v1868_v26 }
 0x259   : > { %v2068_v24 = vsel %vm481_vm2, %v2061_v18, %v2063_v4 }
 0x25a   : > { %v2072_v10 = vadd.f32 %v2068_v24, %v2050_v8 }
 0x25c   : > { %v2067_v48 = vpop.permute.xlu1 %2066  ;;  %v2065_v6 = vpop.permute.xlu0 %2064  ;;  %v2079_v28 = vadd.f32 %v2077_v15, %v2072_v10 }
 0x25d   : > { %v2069_v29 = vsel %vm481_vm2, %v2065_v6, %v2067_v48 }
 0x25e   : > { %v2073_v32 = vadd.f32 %v2069_v29, %v2051_v2 }
 0x260   : > { %v1888_v1 = vpop.permute.xlu1 %1887  ;;  %v1886_v60 = vpop.permute.xlu0 %1885  ;;  %v2080_v49 = vadd.f32 %v2078_v54, %v2073_v32 }
 0x261   : > { %v1893_v53 = vsel %vm448_vm1, %v1886_v60, %v1888_v1 }
 0x262   : > { %v1897_v59 = vadd.f32 %v1893_v53, %v1873_v27 }
 0x264   : > { %v1892_v38 = vpop.permute.xlu1 %1891  ;;  %v1890_v25 = vpop.permute.xlu0 %1889 }
 0x265   : > { %v1894_v41 = vsel %vm448_vm1, %v1890_v25, %v1892_v38 }
 0x266   : > { %v1898_v58 = vadd.f32 %v1894_v41, %v1874_v23 }
 0x268   : > { %v2094_v20 = vpop.permute.xlu1 %2093  ;;  %v2092_v13 = vpop.permute.xlu0 %2091 }
 0x269   : > { %v2099_v34 = vsel %vm448_vm1, %v2092_v13, %v2094_v20 }
 0x26a   : > { %v2103_v40 = vadd.f32 %v2099_v34, %v2079_v28 }
 0x26c   : > { %v2098_v21 = vpop.permute.xlu1 %2097  ;;  %v2096_v55 = vpop.permute.xlu0 %2095 }
 0x26d   : > { %v2100_v30 = vsel %vm448_vm1, %v2096_v55, %v2098_v21 }
 0x26e   : > { %v2104_v0 = vadd.f32 %v2100_v30, %v2080_v49 }
 0x270   : > { %v1910_v51 = vpop.permute.xlu1 %1909  ;;  %v1908_v46 = vpop.permute.xlu0 %1907 }
 0x271   : > { %v1915_v37 = vsel %vm481_vm2, %v1908_v46, %v1910_v51 }
 0x272   : > { %v1919_v17 = vadd.f32 %v1915_v37, %v1897_v59 }
 0x274   : > { %v1921_v50 = vadd.f32 %v1919_v17, %v2981_v12  ;;  %v1914_v43 = vpop.permute.xlu1 %1913  ;;  %v1912_v5 = vpop.permute.xlu0 %1911 }
 0x275   : > { %v1916_v57 = vsel %vm481_vm2, %v1912_v5, %v1914_v43 }
 0x276   : > { %v1920_v63 = vadd.f32 %v1916_v57, %v1898_v58  ;;  %v1923_v33 = vmax.f32 %v1921_v50, 0.0 }
 0x278   : > { %v1922_v52 = vadd.f32 %v1920_v63, %v2979_v9  ;;  %v2116_v31 = vpop.permute.xlu1 %2115  ;;  %v2114_v56 = vpop.permute.xlu0 %2113  ;;  %v1925_v36 = vmin.f32 %v1923_v33, 6.0 }
 0x279   : > { %v2121_v39 = vsel %vm481_vm2, %v2114_v56, %v2116_v31 }
 0x27a   : > { %v1924_v19 = vmax.f32 %v1922_v52, 0.0  ;;  %v2125_v62 = vadd.f32 %v2121_v39, %v2103_v40 }
 0x27c   : > { %v1926_v22 = vmin.f32 %v1924_v19, 6.0  ;;  %v2127_v11 = vadd.f32 %v2125_v62, %v2981_v12  ;;  %v2120_v7 = vpop.permute.xlu1 %2119  ;;  %v2118_v45 = vpop.permute.xlu0 %2117 }
 0x27d   : > { %v2122_v47 = vsel %vm481_vm2, %v2118_v45, %v2120_v7 }
 0x27e   : > { %v2126_v27 = vadd.f32 %v2122_v47, %v2104_v0  ;;  %v1927_v44 = vpack.c.bf16 %v1926_v22, %v1925_v36  ;;  %v2129_v61 = vmax.f32 %v2127_v11, 0.0 }
 0x280   : > { %v2128_v26 = vadd.f32 %v2126_v27, %v2979_v9  ;;  %2491 = vmatpush3.bf16.msra.mxu0 %v1927_v44  ;;  %v2131_v8 = vmin.f32 %v2129_v61, 6.0 }
 0x282   : > { %v2130_v42 = vmax.f32 %v2128_v26, 0.0 }
 0x283   : > { %2493 = vmatmul.mubr.msk.bf16.vlgmr.msra.gmra.mxu0 %vm690_vm3, %v3768_v35 }
 0x284   : > { %v2132_v4 = vmin.f32 %v2130_v42, 6.0 }
 0x286   : > { %v2133_v12 = vpack.c.bf16 %v2132_v4, %v2131_v8 }
 0x288   : > { %2497 = vmatpush3.bf16.msra.mxu1 %v2133_v12 }
 0x28b   : > { %2499 = vmatmul.mubr.msk.bf16.vlgmr.msra.gmra.mxu1 %vm690_vm3, %v3768_v35 }
 0x2a3   : > { %v1139_v18 = vpop.f32.mrf.mxu0 }
 0x2a4   : > { %v1140_v23 = vadd.f32 %v1139_v18, %v2993_v14 }
 0x2a5   : > { %v2470_v16 = vpop.f32.mrf.mxu0 }
 0x2a6   : > { %2358 = vst [vmem:[%s3680_s28 + $0x20] sm:$0xff] %v1140_v23 }
 0x2a7   : > { %v1142_v9 = vpop.f32.mrf.mxu0 }
 0x2a8   : > { %v1143_v24 = vadd.f32 %v1142_v9, %v2991_v3 }
 0x2a9   : > { %v2471_v10 = vpop.f32.mrf.mxu0 }
 0x2aa   : > { %2359 = vst [vmem:[%s3680_s28 + $0x28] sm:$0xff] %v1143_v24 }
 0x2ab   : > { %v1345_v15 = vpop.f32.mrf.mxu1 }
 0x2ac   : > { %v1346_v2 = vadd.f32 %v1345_v15, %v2993_v14 }
 0x2ad   : > { %v2476_v48 = vpop.f32.mrf.mxu1 }
 0x2ae   : > { %2373 = vst [vmem:[%s3680_s28 + $0x30] sm:$0xff] %v1346_v2 }
 0x2af   : > { %v1348_v35 = vpop.f32.mrf.mxu1 }
 0x2b0   : > { %v1349_v6 = vadd.f32 %v1348_v35, %v2991_v3 }
 0x2b1   : > { %v2477_v28 = vpop.f32.mrf.mxu1 }
 0x2b2   : > { %2374 = vst [vmem:[%s3680_s28 + $0x38] sm:$0xff] %v1349_v6 }
 0x303   : > { %v1551_v29 = vpop.f32.mrf.mxu0 }
 0x304   : > { %v1552_v32 = vadd.f32 %v1551_v29, %v2993_v14 }
 0x305   : > { %v2482_v54 = vpop.f32.mrf.mxu0 }
 0x306   : > { %2388 = vst [vmem:[%s3680_s28 + $0x40] sm:$0xff] %v1552_v32 }
 0x307   : > { %v1554_v1 = vpop.f32.mrf.mxu0 }
 0x308   : > { %v1555_v60 = vadd.f32 %v1554_v1, %v2991_v3 }
 0x309   : > { %v2483_v49 = vpop.f32.mrf.mxu0 }
 0x30a   : > { %2389 = vst [vmem:[%s3680_s28 + $0x48] sm:$0xff] %v1555_v60 }
 0x30b   : > { %v1757_v38 = vpop.f32.mrf.mxu1 }
 0x30c   : > { %v1758_v25 = vadd.f32 %v1757_v38, %v2993_v14 }
 0x30d   : > { %v2488_v20 = vpop.f32.mrf.mxu1 }
 0x30e   : > { %2403 = vst [vmem:[%s3680_s28 + $0x50] sm:$0xff] %v1758_v25 }
 0x30f   : > { %v1760_v13 = vpop.f32.mrf.mxu1 }
 0x310   : > { %v1761_v21 = vadd.f32 %v1760_v13, %v2991_v3 }
 0x311   : > { %v2489_v55 = vpop.f32.mrf.mxu1 }
 0x312   : > { %2404 = vst [vmem:[%s3680_s28 + $0x58] sm:$0xff] %v1761_v21 }
 0x343   : > { %v1962_v53 = vpop.f32.mrf.mxu0 }
 0x344   : > { %v1963_v59 = vadd.f32 %v1962_v53, %v2993_v14 }
 0x345   : > { %v2494_v51 = vpop.f32.mrf.mxu0 }
 0x346   : > { %2414 = vst [vmem:[%s3680_s28 + $0x60] sm:$0xff] %v1963_v59 }
 0x347   : > { %v1965_v46 = vpop.f32.mrf.mxu0 }
 0x348   : > { %v1966_v41 = vadd.f32 %v1965_v46, %v2991_v3 }
 0x349   : > { %v2495_v37 = vpop.f32.mrf.mxu0 }
 0x34a   : > { %2415 = vst [vmem:[%s3680_s28 + $0x68] sm:$0xff] %v1966_v41 }
 0x34b   : > { %v2168_v17 = vpop.f32.mrf.mxu1 }
 0x34c   : > { %v2169_v58 = vadd.f32 %v2168_v17, %v2993_v14 }
 0x34d   : > { %v2500_v50 = vpop.f32.mrf.mxu1 }
 0x34e   : > { %2425 = vst [vmem:[%s3680_s28 + $0x70] sm:$0xff] %v2169_v58 }
 0x34f   : > { %v2171_v43 = vpop.f32.mrf.mxu1 }
 0x350   : > { %v2172_v5 = vadd.f32 %v2171_v43, %v2991_v3 }
 0x351   : > { %v2501_v34 = vpop.f32.mrf.mxu1 }
 0x352   : > { %2426 = vst [vmem:[%s3680_s28 + $0x78] sm:$0xff] %v2172_v5 }
 0x353 PF: > { %s16_s25 = sadd.s32 1, %s2590_s25   ;;  %s3865_s21 = smov %s2582_s23 }
 0x354   : > { %p13_p9 = scmp.ge.s32.totalorder %s16_s25, 6   ;;  %s3866_s22 = smov %s2586_s24 }
 0x355   : > { %s3867_s23 = smov %s3870_s26  ;;  %s3868_s24 = smov %s3874_s27 }
 0x356   :  { %15 = sbr.rel (!%p13_p9) target bundleno = 3 (0x3), region = 92 }

</bundles_post_ra>
